<compile_context>
chip_gen: v7x
topology: tpu7x:2x2x1
jax: 0.10.0
libtpu: 0.0.40
codegen_flags: <defaults>
</compile_context>

<pallas_src>
import functools

import jax
import jax.numpy as jnp
from jax import lax
from jax.experimental import pallas as pl
from jax.experimental.pallas import tpu as pltpu


NEG = -10000.0


# -----------------------------------------------------------------------------
# Fused kernel (one batch block): BiLSTM encoder + hidden2tag + CRF partition Z
# + gold emission sum.  Emits a per-block partial loss (Z_sum - gold_emis_sum).
# -----------------------------------------------------------------------------
def _bilstm_crf_kernel(x_ref, lens_ref, bmask_ref, labels_ref,
                       wih_ref, whh_ref, bgate_ref, wout_ref, bout_ref,
                       exp_trans_ref, tstart_ref, tend_ref, tmax_ref,
                       out_ref,
                       xg_s, hid_s, scores_s, h_carry, c_carry,
                       *, S, Bblk, Dp, H, Tp):
    lens_bc = lens_ref[...]             # (Bblk, 1) int32
    bmask = bmask_ref[...]              # (Bblk, 1) f32 (1.0 for real rows)
    t_start = tstart_ref[...]           # (1, Tp)
    t_end = tend_ref[...]               # (1, Tp)
    exp_trans = exp_trans_ref[...]      # (Tp, Tp) f32, exp(trans - tmax)
    tmax = tmax_ref[0, 0]               # SMEM scalar

    # ---------------- input projection (one big bf16 matmul, N = 8H) ----------
    x2d = x_ref[...].reshape(S * Bblk, Dp)                     # bf16
    xg = (jnp.dot(x2d, wih_ref[...], preferred_element_type=jnp.float32)
          + bgate_ref[...])                                    # (S*Bblk, 8H) f32
    xg_s[...] = xg.astype(jnp.bfloat16).reshape(S, Bblk, 8 * H)

    whh = whh_ref[...]                                         # (2H, 8H) bf16

    def lstm_cell(gate_pre, c):
        # PyTorch gate order: i, f, g, o
        i = jax.nn.sigmoid(gate_pre[:, 0 * H:1 * H])
        f = jax.nn.sigmoid(gate_pre[:, 1 * H:2 * H])
        g = jnp.tanh(gate_pre[:, 2 * H:3 * H])
        o = jax.nn.sigmoid(gate_pre[:, 3 * H:4 * H])
        c_new = f * c + i * g
        h_new = o * jnp.tanh(c_new)
        return h_new, c_new

    # ---------------- fused fwd+bwd recurrence (masked ~ pack_padded) ---------
    h_carry[...] = jnp.zeros_like(h_carry)                     # (Bblk, 2H)
    c_carry[...] = jnp.zeros_like(c_carry)                     # (Bblk, 2H)

    def step(j, carry):
        tf = j
        tb = S - 1 - j
        h_comb = h_carry[...]                                  # (Bblk, 2H) f32
        c_comb = c_carry[...]
        hpro = jnp.dot(h_comb.astype(jnp.bfloat16), whh,
                       preferred_element_type=jnp.float32)     # (Bblk, 8H)
        gx_f = xg_s[tf, :, :4 * H].astype(jnp.float32)
        gx_b = xg_s[tb, :, 4 * H:].astype(jnp.float32)
        hf_new, cf_new = lstm_cell(gx_f + hpro[:, :4 * H], c_comb[:, :H])
        hb_new, cb_new = lstm_cell(gx_b + hpro[:, 4 * H:], c_comb[:, H:])
        valid_f = tf < lens_bc                                 # (Bblk, 1) bool
        valid_b = tb < lens_bc
        hid_s[tf, :, :H] = jnp.where(valid_f, hf_new, 0.0)     # pad steps -> 0
        hid_s[tb, :, H:] = jnp.where(valid_b, hb_new, 0.0)
        h_carry[:, :H] = jnp.where(valid_f, hf_new, h_comb[:, :H])
        h_carry[:, H:] = jnp.where(valid_b, hb_new, h_comb[:, H:])
        c_carry[:, :H] = jnp.where(valid_f, cf_new, c_comb[:, :H])
        c_carry[:, H:] = jnp.where(valid_b, cb_new, c_comb[:, H:])
        return carry

    lax.fori_loop(0, S, step, 0, unroll=min(8, S))

    # ---------------- hidden2tag: single (S*Bblk, 2H) x (2H, Tp) matmul -------
    hid2d = hid_s[...].reshape(S * Bblk, 2 * H).astype(jnp.bfloat16)
    scores2d = (jnp.dot(hid2d, wout_ref[...],
                        preferred_element_type=jnp.float32)
                + bout_ref[...])                               # (S*Bblk, Tp)
    scores_s[...] = scores2d.reshape(S, Bblk, Tp)

    # ---------------- CRF forward (MXU-matmul recursion) + gold emission ------
    tag_iota = lax.broadcasted_iota(jnp.int32, (Bblk, Tp), 1)

    e0 = scores_s[0]                                           # (Bblk, Tp)
    lab0 = labels_ref[0]                                       # (Bblk, 1)
    gold0 = jnp.sum(jnp.where(lab0 == tag_iota, e0, 0.0), axis=1, keepdims=True)
    gold0 = jnp.where(lens_bc > 0, gold0, 0.0)
    alpha0 = t_start + e0

    def crf_body(i, carry):
        alpha, gold = carry
        e = scores_s[i]                                        # (Bblk, Tp)
        lab = labels_ref[i]                                    # (Bblk, 1)
        valid = i < lens_bc                                    # (Bblk, 1)
        gold_e = jnp.sum(jnp.where(lab == tag_iota, e, 0.0),
                         axis=1, keepdims=True)
        gold = gold + jnp.where(valid, gold_e, 0.0)
        amax = jnp.max(alpha, axis=1, keepdims=True)
        p = jnp.exp(alpha - amax)
        s = jnp.dot(p, exp_trans, preferred_element_type=jnp.float32)
        nxt = jnp.log(jnp.maximum(s, 1e-37)) + amax + tmax + e
        alpha = jnp.where(valid, nxt, alpha)                   # freeze at len-1
        return alpha, gold

    alpha, gold_acc = lax.fori_loop(1, S, crf_body, (alpha0, gold0),
                                    unroll=min(8, max(S - 1, 1)))
    last = alpha + t_end
    lmax = jnp.max(last, axis=1, keepdims=True)
    z = jnp.log(jnp.sum(jnp.exp(last - lmax), axis=1, keepdims=True)) + lmax
    unlabeled = jnp.sum(z * bmask)
    emis_sum = jnp.sum(gold_acc)

    # lane-dense output block; wrapper reads [b, 0, 0]
    out_ref[...] = jnp.zeros(out_ref.shape, jnp.float32) + (unlabeled - emis_sum)


# -----------------------------------------------------------------------------
# Wrapper: embedding lookup, padding/packing, grid setup, gold transition terms
# -----------------------------------------------------------------------------
def bilstm_crf_nll(params, words, word_seq_lens, context_emb, chars,
                   char_seq_lens, labels):
    del chars, char_seq_lens  # use_char_rnn=False
    B, S = words.shape
    word_embed = params["word_embed"]                  # (V, E)
    E = word_embed.shape[1]
    C = context_emb.shape[-1]
    D = E + C
    H = params["whh_f"].shape[1]                       # per-direction hidden
    T = params["wout"].shape[0]                        # label_size (incl. START/END)
    start_idx, end_idx = T - 2, T - 1

    # Batch blocking: 128 rows/block (safe for v5e EUP + v7x 64 MiB VMEM);
    # at production batch sizes use 256 on v6e/v7x for full MXU row occupancy.
    Bp8 = ((B + 7) // 8) * 8
    Bblk = min(Bp8, 128)
    Bp = ((Bp8 + Bblk - 1) // Bblk) * Bblk
    nblk = Bp // Bblk
    Tp = ((T + 127) // 128) * 128                      # lane-pad tag dim
    Dp = ((D + 127) // 128) * 128                      # lane-pad input feature dim

    # Embedder: word embedding lookup + context embedding concat (dropout omitted).
    word_rep = jnp.concatenate(
        [word_embed[words], context_emb.astype(jnp.float32)], axis=-1)   # (B,S,D)
    x_t = jnp.transpose(word_rep, (1, 0, 2))                             # (S,B,D)
    x_t = jnp.pad(x_t, ((0, 0), (0, Bp - B), (0, Dp - D)))
    x_bf = x_t.astype(jnp.bfloat16)

    lens = jnp.pad(word_seq_lens.astype(jnp.int32), (0, Bp - B))         # pad len=0
    lens_bc = lens.reshape(Bp, 1)
    bmask = (jnp.arange(Bp) < B).astype(jnp.float32).reshape(Bp, 1)

    labels_i = labels.astype(jnp.int32)
    labels3 = jnp.pad(jnp.transpose(labels_i, (1, 0)),
                      ((0, 0), (0, Bp - B)))[:, :, None]                 # (S,Bp,1)

    # Pack per-direction LSTM weights (gate order i,f,g,o):
    #   wih_comb : (Dp, 8H) bf16, columns [fwd 4H | bwd 4H], zero-padded rows
    #   whh_comb : (2H, 8H) bf16, block-diagonal fwd/bwd
    wih_comb = jnp.zeros((Dp, 8 * H), jnp.float32)
    wih_comb = wih_comb.at[:D, :4 * H].set(params["wih_f"].T)
    wih_comb = wih_comb.at[:D, 4 * H:].set(params["wih_b"].T)
    wih_comb = wih_comb.astype(jnp.bfloat16)
    whh_comb = jnp.zeros((2 * H, 8 * H), jnp.float32)
    whh_comb = whh_comb.at[:H, :4 * H].set(params["whh_f"].T)
    whh_comb = whh_comb.at[H:, 4 * H:].set(params["whh_b"].T)
    whh_comb = whh_comb.astype(jnp.bfloat16)
    bias_comb = jnp.concatenate(
        [params["bih_f"] + params["bhh_f"],
         params["bih_b"] + params["bhh_b"]]).reshape(1, 8 * H)

    # hidden2tag, tag-padded to Tp (padded tags -> exactly 0 emission).
    wout_p = jnp.zeros((2 * H, Tp), jnp.float32).at[:, :T].set(
        params["wout"].T).astype(jnp.bfloat16)
    bout_p = jnp.zeros((1, Tp), jnp.float32).at[0, :T].set(params["bout"])

    # CRF transition (padded tags forbidden); exp(trans - tmax) hoisted to XLA.
    transition = params["transition"]
    trans_p = jnp.full((Tp, Tp), NEG, jnp.float32).at[:T, :T].set(transition)
    tmax = jnp.max(trans_p)
    exp_trans = jnp.exp(trans_p - tmax)
    tmax_arr = tmax.reshape(1, 1)
    t_start_p = jnp.full((1, Tp), NEG, jnp.float32).at[0, :T].set(
        transition[start_idx])
    t_end_p = jnp.full((1, Tp), NEG, jnp.float32).at[0, :T].set(
        transition[:, end_idx])

    kernel = functools.partial(_bilstm_crf_kernel,
                               S=S, Bblk=Bblk, Dp=Dp, H=H, Tp=Tp)

    def wconst(shape):  # constant-index weight block
        return pl.BlockSpec(shape, lambda b: (0,) * len(shape))

    partials = pl.pallas_call(
        kernel,
        grid=(nblk,),
        out_shape=jax.ShapeDtypeStruct((nblk, 8, 128), jnp.float32),
        in_specs=[
            pl.BlockSpec((S, Bblk, Dp), lambda b: (0, b, 0)),   # x
            pl.BlockSpec((Bblk, 1), lambda b: (b, 0)),          # lens
            pl.BlockSpec((Bblk, 1), lambda b: (b, 0)),          # batch mask
            pl.BlockSpec((S, Bblk, 1), lambda b: (0, b, 0)),    # labels
            wconst((Dp, 8 * H)),                                # wih
            wconst((2 * H, 8 * H)),                             # whh
            wconst((1, 8 * H)),                                 # gate bias
            wconst((2 * H, Tp)),                                # wout
            wconst((1, Tp)),                                    # bout
            wconst((Tp, Tp)),                                   # exp_trans
            wconst((1, Tp)),                                    # t_start
            wconst((1, Tp)),                                    # t_end
            pl.BlockSpec(memory_space=pltpu.MemorySpace.SMEM),  # tmax scalar
        ],
        out_specs=pl.BlockSpec((1, 8, 128), lambda b: (b, 0, 0)),
        scratch_shapes=[
            pltpu.VMEM((S, Bblk, 8 * H), jnp.bfloat16),   # input-projected gates
            pltpu.VMEM((S, Bblk, 2 * H), jnp.float32),    # combined fwd|bwd hidden
            pltpu.VMEM((S, Bblk, Tp), jnp.float32),       # emission scores (resident)
            pltpu.VMEM((Bblk, 2 * H), jnp.float32),       # hidden carry
            pltpu.VMEM((Bblk, 2 * H), jnp.float32),       # cell carry
        ],
        compiler_params=pltpu.CompilerParams(
            dimension_semantics=("parallel",),
            vmem_limit_bytes=32 * 1024 * 1024),
    )(x_bf, lens_bc, bmask, labels3,
      wih_comb, whh_comb, bias_comb, wout_p, bout_p,
      exp_trans, t_start_p, t_end_p, tmax_arr)

    kernel_part = jnp.sum(partials[:, 0, 0])      # sum_b (Z_b - gold_emis_b)

    # Gold-path transition/begin/end terms depend only on labels + transition:
    # compute them with plain XLA in the wrapper (removed from the kernel).
    seq_mask = (jnp.arange(S)[None, :] <
                word_seq_lens[:, None]).astype(jnp.float32)    # (B, S)
    row_valid = (word_seq_lens > 0).astype(jnp.float32)
    if S > 1:
        mid = transition[labels_i[:, :-1], labels_i[:, 1:]]    # (B, S-1)
        mid_sum = jnp.sum(mid * seq_mask[:, 1:])
    else:
        mid_sum = jnp.float32(0.0)
    begin_sum = jnp.sum(transition[start_idx, labels_i[:, 0]] * row_valid)
    last_pos = jnp.clip(word_seq_lens.astype(jnp.int32) - 1, 0, S - 1)
    last_lab = jnp.take_along_axis(labels_i, last_pos[:, None], axis=1)[:, 0]
    end_sum = jnp.sum(transition[last_lab, end_idx] * row_valid)

    # loss = unlabeled - labeled = (Z - emis) - (mid + begin + end)
    return kernel_part - (mid_sum + begin_sum + end_sum)


# -----------------------------------------------------------------------------
# Deterministic parameter init + example run
# -----------------------------------------------------------------------------
def init_params(key, *, vocab_size, embedding_dim, context_emb_size,
                hidden_dim, label_size):
    E, C = embedding_dim, context_emb_size
    D = E + C
    H = hidden_dim // 2          # per-direction hidden (nn.LSTM bidirectional)
    T = label_size
    ks = jax.random.split(key, 16)

    scale = jnp.sqrt(3.0 / E)
    word_embed = jax.random.uniform(ks[0], (vocab_size, E), jnp.float32,
                                    minval=-scale, maxval=scale)

    u = 1.0 / jnp.sqrt(H)
    def unif(k, shape):
        return jax.random.uniform(k, shape, jnp.float32, minval=-u, maxval=u)

    params = {
        "word_embed": word_embed,
        "wih_f": unif(ks[1], (4 * H, D)),
        "whh_f": unif(ks[2], (4 * H, H)),
        "bih_f": unif(ks[3], (4 * H,)),
        "bhh_f": unif(ks[4], (4 * H,)),
        "wih_b": unif(ks[5], (4 * H, D)),
        "whh_b": unif(ks[6], (4 * H, H)),
        "bih_b": unif(ks[7], (4 * H,)),
        "bhh_b": unif(ks[8], (4 * H,)),
        "wout": unif(ks[9], (T, 2 * H)),
        "bout": unif(ks[10], (T,)),
    }
    # CRF transition: randn, then forbid transitions into START and out of END.
    trans = jax.random.normal(ks[11], (T, T), jnp.float32)
    start_idx, end_idx = T - 2, T - 1
    trans = trans.at[:, start_idx].set(NEG)
    trans = trans.at[end_idx, :].set(NEG)
    params["transition"] = trans
    return params


if __name__ == "__main__":
    key = jax.random.PRNGKey(0)
    B, S = 2, 8
    V, E, C = 50, 16, 8
    HIDDEN_DIM = 32           # bidirectional -> 16 per direction (8H = 128 lanes)
    NUM_REAL_LABELS = 8
    T = NUM_REAL_LABELS + 2   # + START, END
    MAX_CHAR_LEN = 4

    k_param, k_words, k_ctx, k_lab = jax.random.split(key, 4)
    params = init_params(k_param, vocab_size=V, embedding_dim=E,
                         context_emb_size=C, hidden_dim=HIDDEN_DIM, label_size=T)

    words = jax.random.randint(k_words, (B, S), 0, V, dtype=jnp.int32)
    word_seq_lens = jnp.array([S, 5], dtype=jnp.int32)
    context_emb = jax.random.normal(k_ctx, (B, S, C), jnp.float32)
    chars = jnp.zeros((B, S, MAX_CHAR_LEN), jnp.int32)          # unused (no char RNN)
    char_seq_lens = jnp.ones((B, S), jnp.int32)                 # unused
    labels = jax.random.randint(k_lab, (B, S), 0, NUM_REAL_LABELS, dtype=jnp.int32)

    nll = bilstm_crf_nll(params, words, word_seq_lens, context_emb,
                         chars, char_seq_lens, labels)
    jax.block_until_ready(nll)
    print("KERNEL_OK")
</pallas_src>

<mosaic_0001>
module attributes {stable_mosaic.version = 11 : i64} {
  func.func @_bilstm_crf_kernel(%arg0: i32, %arg1: memref<8x8x128xbf16, #tpu.memory_space<vmem>>, %arg2: memref<8x1xi32, #tpu.memory_space<vmem>>, %arg3: memref<8x1xf32, #tpu.memory_space<vmem>>, %arg4: memref<8x8x1xi32, #tpu.memory_space<vmem>>, %arg5: memref<128x128xbf16, #tpu.memory_space<vmem>>, %arg6: memref<32x128xbf16, #tpu.memory_space<vmem>>, %arg7: memref<1x128xf32, #tpu.memory_space<vmem>>, %arg8: memref<32x128xbf16, #tpu.memory_space<vmem>>, %arg9: memref<1x128xf32, #tpu.memory_space<vmem>>, %arg10: memref<128x128xf32, #tpu.memory_space<vmem>>, %arg11: memref<1x128xf32, #tpu.memory_space<vmem>>, %arg12: memref<1x128xf32, #tpu.memory_space<vmem>>, %arg13: memref<1x1xf32, #tpu.memory_space<smem>>, %arg14: memref<1x8x128xf32, #tpu.memory_space<vmem>>, %arg15: memref<8x8x128xbf16, #tpu.memory_space<vmem>>, %arg16: memref<8x8x32xf32, #tpu.memory_space<vmem>>, %arg17: memref<8x8x128xf32, #tpu.memory_space<vmem>>, %arg18: memref<8x32xf32, #tpu.memory_space<vmem>>, %arg19: memref<8x32xf32, #tpu.memory_space<vmem>>) attributes {dimension_semantics = [#tpu.dimension_semantics<parallel>], iteration_bounds = array<i64: 1>, scalar_prefetch = 0 : i64, scratch_operands = 5 : i64, tpu.core_type = #tpu.core_type<tc>, window_params = [{transform_indices = @transform_0, window_bounds = array<i64: 8, 8, 128>}, {transform_indices = @transform_1, window_bounds = array<i64: 8, 1>}, {transform_indices = @transform_2, window_bounds = array<i64: 8, 1>}, {transform_indices = @transform_3, window_bounds = array<i64: 8, 8, 1>}, {pipeline_mode = #tpu.pipeline_mode<synchronous>, transform_indices = @transform_4, window_bounds = array<i64: 128, 128>}, {pipeline_mode = #tpu.pipeline_mode<synchronous>, transform_indices = @transform_5, window_bounds = array<i64: 32, 128>}, {pipeline_mode = #tpu.pipeline_mode<synchronous>, transform_indices = @transform_6, window_bounds = array<i64: 1, 128>}, {pipeline_mode = #tpu.pipeline_mode<synchronous>, transform_indices = @transform_7, window_bounds = array<i64: 32, 128>}, {pipeline_mode = #tpu.pipeline_mode<synchronous>, transform_indices = @transform_8, window_bounds = array<i64: 1, 128>}, {pipeline_mode = #tpu.pipeline_mode<synchronous>, transform_indices = @transform_9, window_bounds = array<i64: 128, 128>}, {pipeline_mode = #tpu.pipeline_mode<synchronous>, transform_indices = @transform_10, window_bounds = array<i64: 1, 128>}, {pipeline_mode = #tpu.pipeline_mode<synchronous>, transform_indices = @transform_11, window_bounds = array<i64: 1, 128>}, {transform_indices = @transform_12, window_bounds = array<i64: 1, 1>}, {transform_indices = @transform_13, window_bounds = array<i64: 1, 8, 128>}]} {
    %c0 = arith.constant 0 : index
    %c0_0 = arith.constant 0 : index
    %0 = vector.load %arg2[%c0, %c0_0] : memref<8x1xi32, #tpu.memory_space<vmem>>, vector<8x1xi32>
    %c0_1 = arith.constant 0 : index
    %c0_2 = arith.constant 0 : index
    %1 = vector.load %arg3[%c0_1, %c0_2] : memref<8x1xf32, #tpu.memory_space<vmem>>, vector<8x1xf32>
    %c0_3 = arith.constant 0 : index
    %c0_4 = arith.constant 0 : index
    %2 = vector.load %arg11[%c0_3, %c0_4] : memref<1x128xf32, #tpu.memory_space<vmem>>, vector<1x128xf32>
    %c0_5 = arith.constant 0 : index
    %c0_6 = arith.constant 0 : index
    %3 = vector.load %arg12[%c0_5, %c0_6] : memref<1x128xf32, #tpu.memory_space<vmem>>, vector<1x128xf32>
    %c0_7 = arith.constant 0 : index
    %c0_8 = arith.constant 0 : index
    %4 = vector.load %arg10[%c0_7, %c0_8] : memref<128x128xf32, #tpu.memory_space<vmem>>, vector<128x128xf32>
    %c0_9 = arith.constant 0 : index
    %c0_10 = arith.constant 0 : index
    %5 = memref.load %arg13[%c0_9, %c0_10] : memref<1x1xf32, #tpu.memory_space<smem>>
    %c0_11 = arith.constant 0 : index
    %c0_12 = arith.constant 0 : index
    %c0_13 = arith.constant 0 : index
    %6 = vector.load %arg1[%c0_11, %c0_12, %c0_13] : memref<8x8x128xbf16, #tpu.memory_space<vmem>>, vector<8x8x128xbf16>
    %7 = vector.shape_cast %6 : vector<8x8x128xbf16> to vector<64x128xbf16>
    %c0_14 = arith.constant 0 : index
    %c0_15 = arith.constant 0 : index
    %8 = vector.load %arg5[%c0_14, %c0_15] : memref<128x128xbf16, #tpu.memory_space<vmem>>, vector<128x128xbf16>
    %cst = arith.constant dense<0.000000e+00> : vector<64x128xf32>
    %9 = tpu.matmul %7, %8, %cst {dimension_numbers = #tpu.dot_dimension_numbers<[1], [0], [0], [1], [0, 0, 1, 1], [], []>} : vector<64x128xbf16>, vector<128x128xbf16>, vector<64x128xf32> -> vector<64x128xf32>
    %c0_16 = arith.constant 0 : index
    %c0_17 = arith.constant 0 : index
    %10 = vector.load %arg7[%c0_16, %c0_17] : memref<1x128xf32, #tpu.memory_space<vmem>>, vector<1x128xf32>
    %11 = vector.broadcast %10 : vector<1x128xf32> to vector<64x128xf32>
    %12 = arith.addf %9, %11 : vector<64x128xf32>
    %13 = arith.truncf %12 : vector<64x128xf32> to vector<64x128xbf16>
    %14 = vector.shape_cast %13 : vector<64x128xbf16> to vector<8x8x128xbf16>
    %c0_18 = arith.constant 0 : index
    %c0_19 = arith.constant 0 : index
    %c0_20 = arith.constant 0 : index
    %15 = vector.load %arg15[%c0_18, %c0_19, %c0_20] : memref<8x8x128xbf16, #tpu.memory_space<vmem>>, vector<8x8x128xbf16>
    tpu.vector_store %arg15[%c0_18, %c0_19, %c0_20], %14 {strides = array<i32>} : memref<8x8x128xbf16, #tpu.memory_space<vmem>>, vector<8x8x128xbf16>,
    %c0_21 = arith.constant 0 : index
    %c0_22 = arith.constant 0 : index
    %16 = vector.load %arg6[%c0_21, %c0_22] : memref<32x128xbf16, #tpu.memory_space<vmem>>, vector<32x128xbf16>
    %cst_23 = arith.constant 0.000000e+00 : f32
    %17 = vector.broadcast %cst_23 : f32 to vector<8x32xf32>
    %c0_24 = arith.constant 0 : index
    %c0_25 = arith.constant 0 : index
    %18 = vector.load %arg18[%c0_24, %c0_25] : memref<8x32xf32, #tpu.memory_space<vmem>>, vector<8x32xf32>
    tpu.vector_store %arg18[%c0_24, %c0_25], %17 {strides = array<i32>} : memref<8x32xf32, #tpu.memory_space<vmem>>, vector<8x32xf32>,
    %cst_26 = arith.constant 0.000000e+00 : f32
    %19 = vector.broadcast %cst_26 : f32 to vector<8x32xf32>
    %c0_27 = arith.constant 0 : index
    %c0_28 = arith.constant 0 : index
    %20 = vector.load %arg19[%c0_27, %c0_28] : memref<8x32xf32, #tpu.memory_space<vmem>>, vector<8x32xf32>
    tpu.vector_store %arg19[%c0_27, %c0_28], %19 {strides = array<i32>} : memref<8x32xf32, #tpu.memory_space<vmem>>, vector<8x32xf32>,
    %c0_i32 = arith.constant 0 : i32
    %c7_i32 = arith.constant 7 : i32
    %21 = arith.subi %c7_i32, %c0_i32 : i32
    %c0_29 = arith.constant 0 : index
    %c0_30 = arith.constant 0 : index
    %22 = vector.load %arg18[%c0_29, %c0_30] : memref<8x32xf32, #tpu.memory_space<vmem>>, vector<8x32xf32>
    %c0_31 = arith.constant 0 : index
    %c0_32 = arith.constant 0 : index
    %23 = vector.load %arg19[%c0_31, %c0_32] : memref<8x32xf32, #tpu.memory_space<vmem>>, vector<8x32xf32>
    %24 = arith.truncf %22 : vector<8x32xf32> to vector<8x32xbf16>
    %cst_33 = arith.constant dense<0.000000e+00> : vector<8x128xf32>
    %25 = tpu.matmul %24, %16, %cst_33 {dimension_numbers = #tpu.dot_dimension_numbers<[1], [0], [0], [1], [0, 0, 1, 1], [], []>} : vector<8x32xbf16>, vector<32x128xbf16>, vector<8x128xf32> -> vector<8x128xf32>
    %26 = arith.index_cast %c0_i32 : i32 to index
    %c0_34 = arith.constant 0 : index
    %c0_35 = arith.constant 0 : index
    %27 = vector.load %arg15[%26, %c0_34, %c0_35] : memref<8x8x128xbf16, #tpu.memory_space<vmem>>, vector<1x8x64xbf16>
    %28 = vector.shape_cast %27 : vector<1x8x64xbf16> to vector<8x64xbf16>
    %29 = arith.extf %28 : vector<8x64xbf16> to vector<8x64xf32>
    %30 = arith.index_cast %21 : i32 to index
    %c0_36 = arith.constant 0 : index
    %c64 = arith.constant 64 : index
    %31 = vector.load %arg15[%30, %c0_36, %c64] : memref<8x8x128xbf16, #tpu.memory_space<vmem>>, vector<1x8x64xbf16>
    %32 = vector.shape_cast %31 : vector<1x8x64xbf16> to vector<8x64xbf16>
    %33 = arith.extf %32 : vector<8x64xbf16> to vector<8x64xf32>
    %34 = vector.extract_strided_slice %25 {offsets = [0, 0], sizes = [8, 64], strides = [1, 1]} : vector<8x128xf32> to vector<8x64xf32>
    %35 = arith.addf %29, %34 : vector<8x64xf32>
    %36 = vector.extract_strided_slice %23 {offsets = [0, 0], sizes = [8, 16], strides = [1, 1]} : vector<8x32xf32> to vector<8x16xf32>
    %37 = vector.extract_strided_slice %35 {offsets = [0, 0], sizes = [8, 16], strides = [1, 1]} : vector<8x64xf32> to vector<8x16xf32>
    %38 = arith.negf %37 : vector<8x16xf32>
    %39 = math.exp %38 : vector<8x16xf32>
    %cst_37 = arith.constant 1.000000e+00 : f32
    %40 = vector.broadcast %cst_37 : f32 to vector<8x16xf32>
    %41 = arith.addf %40, %39 : vector<8x16xf32>
    %42 = arith.divf %40, %41 : vector<8x16xf32>
    %43 = vector.extract_strided_slice %35 {offsets = [0, 16], sizes = [8, 16], strides = [1, 1]} : vector<8x64xf32> to vector<8x16xf32>
    %44 = arith.negf %43 : vector<8x16xf32>
    %45 = math.exp %44 : vector<8x16xf32>
    %cst_38 = arith.constant 1.000000e+00 : f32
    %46 = vector.broadcast %cst_38 : f32 to vector<8x16xf32>
    %47 = arith.addf %46, %45 : vector<8x16xf32>
    %48 = arith.divf %46, %47 : vector<8x16xf32>
    %49 = vector.extract_strided_slice %35 {offsets = [0, 32], sizes = [8, 16], strides = [1, 1]} : vector<8x64xf32> to vector<8x16xf32>
    %50 = math.tanh %49 : vector<8x16xf32>
    %51 = vector.extract_strided_slice %35 {offsets = [0, 48], sizes = [8, 16], strides = [1, 1]} : vector<8x64xf32> to vector<8x16xf32>
    %52 = arith.negf %51 : vector<8x16xf32>
    %53 = math.exp %52 : vector<8x16xf32>
    %cst_39 = arith.constant 1.000000e+00 : f32
    %54 = vector.broadcast %cst_39 : f32 to vector<8x16xf32>
    %55 = arith.addf %54, %53 : vector<8x16xf32>
    %56 = arith.divf %54, %55 : vector<8x16xf32>
    %57 = arith.mulf %48, %36 : vector<8x16xf32>
    %58 = arith.mulf %42, %50 : vector<8x16xf32>
    %59 = arith.addf %57, %58 : vector<8x16xf32>
    %60 = math.tanh %59 : vector<8x16xf32>
    %61 = arith.mulf %56, %60 : vector<8x16xf32>
    %62 = vector.extract_strided_slice %25 {offsets = [0, 64], sizes = [8, 64], strides = [1, 1]} : vector<8x128xf32> to vector<8x64xf32>
    %63 = arith.addf %33, %62 : vector<8x64xf32>
    %64 = vector.extract_strided_slice %23 {offsets = [0, 16], sizes = [8, 16], strides = [1, 1]} : vector<8x32xf32> to vector<8x16xf32>
    %65 = vector.extract_strided_slice %63 {offsets = [0, 0], sizes = [8, 16], strides = [1, 1]} : vector<8x64xf32> to vector<8x16xf32>
    %66 = arith.negf %65 : vector<8x16xf32>
    %67 = math.exp %66 : vector<8x16xf32>
    %cst_40 = arith.constant 1.000000e+00 : f32
    %68 = vector.broadcast %cst_40 : f32 to vector<8x16xf32>
    %69 = arith.addf %68, %67 : vector<8x16xf32>
    %70 = arith.divf %68, %69 : vector<8x16xf32>
    %71 = vector.extract_strided_slice %63 {offsets = [0, 16], sizes = [8, 16], strides = [1, 1]} : vector<8x64xf32> to vector<8x16xf32>
    %72 = arith.negf %71 : vector<8x16xf32>
    %73 = math.exp %72 : vector<8x16xf32>
    %cst_41 = arith.constant 1.000000e+00 : f32
    %74 = vector.broadcast %cst_41 : f32 to vector<8x16xf32>
    %75 = arith.addf %74, %73 : vector<8x16xf32>
    %76 = arith.divf %74, %75 : vector<8x16xf32>
    %77 = vector.extract_strided_slice %63 {offsets = [0, 32], sizes = [8, 16], strides = [1, 1]} : vector<8x64xf32> to vector<8x16xf32>
    %78 = math.tanh %77 : vector<8x16xf32>
    %79 = vector.extract_strided_slice %63 {offsets = [0, 48], sizes = [8, 16], strides = [1, 1]} : vector<8x64xf32> to vector<8x16xf32>
    %80 = arith.negf %79 : vector<8x16xf32>
    %81 = math.exp %80 : vector<8x16xf32>
    %cst_42 = arith.constant 1.000000e+00 : f32
    %82 = vector.broadcast %cst_42 : f32 to vector<8x16xf32>
    %83 = arith.addf %82, %81 : vector<8x16xf32>
    %84 = arith.divf %82, %83 : vector<8x16xf32>
    %85 = arith.mulf %76, %64 : vector<8x16xf32>
    %86 = arith.mulf %70, %78 : vector<8x16xf32>
    %87 = arith.addf %85, %86 : vector<8x16xf32>
    %88 = math.tanh %87 : vector<8x16xf32>
    %89 = arith.mulf %84, %88 : vector<8x16xf32>
    %90 = vector.broadcast %c0_i32 : i32 to vector<8x1xi32>
    %91 = arith.cmpi slt, %90, %0 : vector<8x1xi32>
    %92 = vector.broadcast %21 : i32 to vector<8x1xi32>
    %93 = arith.cmpi slt, %92, %0 : vector<8x1xi32>
    %cst_43 = arith.constant 0.000000e+00 : f32
    %94 = vector.shape_cast %91 : vector<8x1xi1> to vector<8x1xi1>
    %95 = vector.broadcast %94 : vector<8x1xi1> to vector<8x16xi1>
    %96 = vector.broadcast %cst_43 : f32 to vector<8x16xf32>
    %97 = arith.select %95, %61, %96 : vector<8x16xi1>, vector<8x16xf32>
    %98 = arith.index_cast %c0_i32 : i32 to index
    %c0_44 = arith.constant 0 : index
    %c0_45 = arith.constant 0 : index
    %99 = vector.load %arg16[%98, %c0_44, %c0_45] : memref<8x8x32xf32, #tpu.memory_space<vmem>>, vector<1x8x16xf32>
    %100 = vector.shape_cast %99 : vector<1x8x16xf32> to vector<8x16xf32>
    %101 = vector.shape_cast %97 : vector<8x16xf32> to vector<1x8x16xf32>
    tpu.vector_store %arg16[%98, %c0_44, %c0_45], %101 {strides = array<i32>} : memref<8x8x32xf32, #tpu.memory_space<vmem>>, vector<1x8x16xf32>,
    %cst_46 = arith.constant 0.000000e+00 : f32
    %102 = vector.shape_cast %93 : vector<8x1xi1> to vector<8x1xi1>
    %103 = vector.broadcast %102 : vector<8x1xi1> to vector<8x16xi1>
    %104 = vector.broadcast %cst_46 : f32 to vector<8x16xf32>
    %105 = arith.select %103, %89, %104 : vector<8x16xi1>, vector<8x16xf32>
    %106 = arith.index_cast %21 : i32 to index
    %c0_47 = arith.constant 0 : index
    %c16 = arith.constant 16 : index
    %107 = vector.load %arg16[%106, %c0_47, %c16] : memref<8x8x32xf32, #tpu.memory_space<vmem>>, vector<1x8x16xf32>
    %108 = vector.shape_cast %107 : vector<1x8x16xf32> to vector<8x16xf32>
    %109 = vector.shape_cast %105 : vector<8x16xf32> to vector<1x8x16xf32>
    tpu.vector_store %arg16[%106, %c0_47, %c16], %109 {strides = array<i32>} : memref<8x8x32xf32, #tpu.memory_space<vmem>>, vector<1x8x16xf32>,
    %110 = vector.extract_strided_slice %22 {offsets = [0, 0], sizes = [8, 16], strides = [1, 1]} : vector<8x32xf32> to vector<8x16xf32>
    %111 = vector.shape_cast %91 : vector<8x1xi1> to vector<8x1xi1>
    %112 = vector.broadcast %111 : vector<8x1xi1> to vector<8x16xi1>
    %113 = arith.select %112, %61, %110 : vector<8x16xi1>, vector<8x16xf32>
    %c0_48 = arith.constant 0 : index
    %c0_49 = arith.constant 0 : index
    %114 = vector.load %arg18[%c0_48, %c0_49] : memref<8x32xf32, #tpu.memory_space<vmem>>, vector<8x16xf32>
    tpu.vector_store %arg18[%c0_48, %c0_49], %113 {strides = array<i32>} : memref<8x32xf32, #tpu.memory_space<vmem>>, vector<8x16xf32>,
    %115 = vector.extract_strided_slice %22 {offsets = [0, 16], sizes = [8, 16], strides = [1, 1]} : vector<8x32xf32> to vector<8x16xf32>
    %116 = vector.shape_cast %93 : vector<8x1xi1> to vector<8x1xi1>
    %117 = vector.broadcast %116 : vector<8x1xi1> to vector<8x16xi1>
    %118 = arith.select %117, %89, %115 : vector<8x16xi1>, vector<8x16xf32>
    %c0_50 = arith.constant 0 : index
    %c16_51 = arith.constant 16 : index
    %119 = vector.load %arg18[%c0_50, %c16_51] : memref<8x32xf32, #tpu.memory_space<vmem>>, vector<8x16xf32>
    tpu.vector_store %arg18[%c0_50, %c16_51], %118 {strides = array<i32>} : memref<8x32xf32, #tpu.memory_space<vmem>>, vector<8x16xf32>,
    %120 = vector.extract_strided_slice %23 {offsets = [0, 0], sizes = [8, 16], strides = [1, 1]} : vector<8x32xf32> to vector<8x16xf32>
    %121 = vector.shape_cast %91 : vector<8x1xi1> to vector<8x1xi1>
    %122 = vector.broadcast %121 : vector<8x1xi1> to vector<8x16xi1>
    %123 = arith.select %122, %59, %120 : vector<8x16xi1>, vector<8x16xf32>
    %c0_52 = arith.constant 0 : index
    %c0_53 = arith.constant 0 : index
    %124 = vector.load %arg19[%c0_52, %c0_53] : memref<8x32xf32, #tpu.memory_space<vmem>>, vector<8x16xf32>
    tpu.vector_store %arg19[%c0_52, %c0_53], %123 {strides = array<i32>} : memref<8x32xf32, #tpu.memory_space<vmem>>, vector<8x16xf32>,
    %125 = vector.extract_strided_slice %23 {offsets = [0, 16], sizes = [8, 16], strides = [1, 1]} : vector<8x32xf32> to vector<8x16xf32>
    %126 = vector.shape_cast %93 : vector<8x1xi1> to vector<8x1xi1>
    %127 = vector.broadcast %126 : vector<8x1xi1> to vector<8x16xi1>
    %128 = arith.select %127, %87, %125 : vector<8x16xi1>, vector<8x16xf32>
    %c0_54 = arith.constant 0 : index
    %c16_55 = arith.constant 16 : index
    %129 = vector.load %arg19[%c0_54, %c16_55] : memref<8x32xf32, #tpu.memory_space<vmem>>, vector<8x16xf32>
    tpu.vector_store %arg19[%c0_54, %c16_55], %128 {strides = array<i32>} : memref<8x32xf32, #tpu.memory_space<vmem>>, vector<8x16xf32>,
    %c1_i32 = arith.constant 1 : i32
    %c7_i32_56 = arith.constant 7 : i32
    %130 = arith.subi %c7_i32_56, %c1_i32 : i32
    %c0_57 = arith.constant 0 : index
    %c0_58 = arith.constant 0 : index
    %131 = vector.load %arg18[%c0_57, %c0_58] : memref<8x32xf32, #tpu.memory_space<vmem>>, vector<8x32xf32>
    %c0_59 = arith.constant 0 : index
    %c0_60 = arith.constant 0 : index
    %132 = vector.load %arg19[%c0_59, %c0_60] : memref<8x32xf32, #tpu.memory_space<vmem>>, vector<8x32xf32>
    %133 = arith.truncf %131 : vector<8x32xf32> to vector<8x32xbf16>
    %cst_61 = arith.constant dense<0.000000e+00> : vector<8x128xf32>
    %134 = tpu.matmul %133, %16, %cst_61 {dimension_numbers = #tpu.dot_dimension_numbers<[1], [0], [0], [1], [0, 0, 1, 1], [], []>} : vector<8x32xbf16>, vector<32x128xbf16>, vector<8x128xf32> -> vector<8x128xf32>
    %135 = arith.index_cast %c1_i32 : i32 to index
    %c0_62 = arith.constant 0 : index
    %c0_63 = arith.constant 0 : index
    %136 = vector.load %arg15[%135, %c0_62, %c0_63] : memref<8x8x128xbf16, #tpu.memory_space<vmem>>, vector<1x8x64xbf16>
    %137 = vector.shape_cast %136 : vector<1x8x64xbf16> to vector<8x64xbf16>
    %138 = arith.extf %137 : vector<8x64xbf16> to vector<8x64xf32>
    %139 = arith.index_cast %130 : i32 to index
    %c0_64 = arith.constant 0 : index
    %c64_65 = arith.constant 64 : index
    %140 = vector.load %arg15[%139, %c0_64, %c64_65] : memref<8x8x128xbf16, #tpu.memory_space<vmem>>, vector<1x8x64xbf16>
    %141 = vector.shape_cast %140 : vector<1x8x64xbf16> to vector<8x64xbf16>
    %142 = arith.extf %141 : vector<8x64xbf16> to vector<8x64xf32>
    %143 = vector.extract_strided_slice %134 {offsets = [0, 0], sizes = [8, 64], strides = [1, 1]} : vector<8x128xf32> to vector<8x64xf32>
    %144 = arith.addf %138, %143 : vector<8x64xf32>
    %145 = vector.extract_strided_slice %132 {offsets = [0, 0], sizes = [8, 16], strides = [1, 1]} : vector<8x32xf32> to vector<8x16xf32>
    %146 = vector.extract_strided_slice %144 {offsets = [0, 0], sizes = [8, 16], strides = [1, 1]} : vector<8x64xf32> to vector<8x16xf32>
    %147 = arith.negf %146 : vector<8x16xf32>
    %148 = math.exp %147 : vector<8x16xf32>
    %cst_66 = arith.constant 1.000000e+00 : f32
    %149 = vector.broadcast %cst_66 : f32 to vector<8x16xf32>
    %150 = arith.addf %149, %148 : vector<8x16xf32>
    %151 = arith.divf %149, %150 : vector<8x16xf32>
    %152 = vector.extract_strided_slice %144 {offsets = [0, 16], sizes = [8, 16], strides = [1, 1]} : vector<8x64xf32> to vector<8x16xf32>
    %153 = arith.negf %152 : vector<8x16xf32>
    %154 = math.exp %153 : vector<8x16xf32>
    %cst_67 = arith.constant 1.000000e+00 : f32
    %155 = vector.broadcast %cst_67 : f32 to vector<8x16xf32>
    %156 = arith.addf %155, %154 : vector<8x16xf32>
    %157 = arith.divf %155, %156 : vector<8x16xf32>
    %158 = vector.extract_strided_slice %144 {offsets = [0, 32], sizes = [8, 16], strides = [1, 1]} : vector<8x64xf32> to vector<8x16xf32>
    %159 = math.tanh %158 : vector<8x16xf32>
    %160 = vector.extract_strided_slice %144 {offsets = [0, 48], sizes = [8, 16], strides = [1, 1]} : vector<8x64xf32> to vector<8x16xf32>
    %161 = arith.negf %160 : vector<8x16xf32>
    %162 = math.exp %161 : vector<8x16xf32>
    %cst_68 = arith.constant 1.000000e+00 : f32
    %163 = vector.broadcast %cst_68 : f32 to vector<8x16xf32>
    %164 = arith.addf %163, %162 : vector<8x16xf32>
    %165 = arith.divf %163, %164 : vector<8x16xf32>
    %166 = arith.mulf %157, %145 : vector<8x16xf32>
    %167 = arith.mulf %151, %159 : vector<8x16xf32>
    %168 = arith.addf %166, %167 : vector<8x16xf32>
    %169 = math.tanh %168 : vector<8x16xf32>
    %170 = arith.mulf %165, %169 : vector<8x16xf32>
    %171 = vector.extract_strided_slice %134 {offsets = [0, 64], sizes = [8, 64], strides = [1, 1]} : vector<8x128xf32> to vector<8x64xf32>
    %172 = arith.addf %142, %171 : vector<8x64xf32>
    %173 = vector.extract_strided_slice %132 {offsets = [0, 16], sizes = [8, 16], strides = [1, 1]} : vector<8x32xf32> to vector<8x16xf32>
    %174 = vector.extract_strided_slice %172 {offsets = [0, 0], sizes = [8, 16], strides = [1, 1]} : vector<8x64xf32> to vector<8x16xf32>
    %175 = arith.negf %174 : vector<8x16xf32>
    %176 = math.exp %175 : vector<8x16xf32>
    %cst_69 = arith.constant 1.000000e+00 : f32
    %177 = vector.broadcast %cst_69 : f32 to vector<8x16xf32>
    %178 = arith.addf %177, %176 : vector<8x16xf32>
    %179 = arith.divf %177, %178 : vector<8x16xf32>
    %180 = vector.extract_strided_slice %172 {offsets = [0, 16], sizes = [8, 16], strides = [1, 1]} : vector<8x64xf32> to vector<8x16xf32>
    %181 = arith.negf %180 : vector<8x16xf32>
    %182 = math.exp %181 : vector<8x16xf32>
    %cst_70 = arith.constant 1.000000e+00 : f32
    %183 = vector.broadcast %cst_70 : f32 to vector<8x16xf32>
    %184 = arith.addf %183, %182 : vector<8x16xf32>
    %185 = arith.divf %183, %184 : vector<8x16xf32>
    %186 = vector.extract_strided_slice %172 {offsets = [0, 32], sizes = [8, 16], strides = [1, 1]} : vector<8x64xf32> to vector<8x16xf32>
    %187 = math.tanh %186 : vector<8x16xf32>
    %188 = vector.extract_strided_slice %172 {offsets = [0, 48], sizes = [8, 16], strides = [1, 1]} : vector<8x64xf32> to vector<8x16xf32>
    %189 = arith.negf %188 : vector<8x16xf32>
    %190 = math.exp %189 : vector<8x16xf32>
    %cst_71 = arith.constant 1.000000e+00 : f32
    %191 = vector.broadcast %cst_71 : f32 to vector<8x16xf32>
    %192 = arith.addf %191, %190 : vector<8x16xf32>
    %193 = arith.divf %191, %192 : vector<8x16xf32>
    %194 = arith.mulf %185, %173 : vector<8x16xf32>
    %195 = arith.mulf %179, %187 : vector<8x16xf32>
    %196 = arith.addf %194, %195 : vector<8x16xf32>
    %197 = math.tanh %196 : vector<8x16xf32>
    %198 = arith.mulf %193, %197 : vector<8x16xf32>
    %199 = vector.broadcast %c1_i32 : i32 to vector<8x1xi32>
    %200 = arith.cmpi slt, %199, %0 : vector<8x1xi32>
    %201 = vector.broadcast %130 : i32 to vector<8x1xi32>
    %202 = arith.cmpi slt, %201, %0 : vector<8x1xi32>
    %cst_72 = arith.constant 0.000000e+00 : f32
    %203 = vector.shape_cast %200 : vector<8x1xi1> to vector<8x1xi1>
    %204 = vector.broadcast %203 : vector<8x1xi1> to vector<8x16xi1>
    %205 = vector.broadcast %cst_72 : f32 to vector<8x16xf32>
    %206 = arith.select %204, %170, %205 : vector<8x16xi1>, vector<8x16xf32>
    %207 = arith.index_cast %c1_i32 : i32 to index
    %c0_73 = arith.constant 0 : index
    %c0_74 = arith.constant 0 : index
    %208 = vector.load %arg16[%207, %c0_73, %c0_74] : memref<8x8x32xf32, #tpu.memory_space<vmem>>, vector<1x8x16xf32>
    %209 = vector.shape_cast %208 : vector<1x8x16xf32> to vector<8x16xf32>
    %210 = vector.shape_cast %206 : vector<8x16xf32> to vector<1x8x16xf32>
    tpu.vector_store %arg16[%207, %c0_73, %c0_74], %210 {strides = array<i32>} : memref<8x8x32xf32, #tpu.memory_space<vmem>>, vector<1x8x16xf32>,
    %cst_75 = arith.constant 0.000000e+00 : f32
    %211 = vector.shape_cast %202 : vector<8x1xi1> to vector<8x1xi1>
    %212 = vector.broadcast %211 : vector<8x1xi1> to vector<8x16xi1>
    %213 = vector.broadcast %cst_75 : f32 to vector<8x16xf32>
    %214 = arith.select %212, %198, %213 : vector<8x16xi1>, vector<8x16xf32>
    %215 = arith.index_cast %130 : i32 to index
    %c0_76 = arith.constant 0 : index
    %c16_77 = arith.constant 16 : index
    %216 = vector.load %arg16[%215, %c0_76, %c16_77] : memref<8x8x32xf32, #tpu.memory_space<vmem>>, vector<1x8x16xf32>
    %217 = vector.shape_cast %216 : vector<1x8x16xf32> to vector<8x16xf32>
    %218 = vector.shape_cast %214 : vector<8x16xf32> to vector<1x8x16xf32>
    tpu.vector_store %arg16[%215, %c0_76, %c16_77], %218 {strides = array<i32>} : memref<8x8x32xf32, #tpu.memory_space<vmem>>, vector<1x8x16xf32>,
    %219 = vector.extract_strided_slice %131 {offsets = [0, 0], sizes = [8, 16], strides = [1, 1]} : vector<8x32xf32> to vector<8x16xf32>
    %220 = vector.shape_cast %200 : vector<8x1xi1> to vector<8x1xi1>
    %221 = vector.broadcast %220 : vector<8x1xi1> to vector<8x16xi1>
    %222 = arith.select %221, %170, %219 : vector<8x16xi1>, vector<8x16xf32>
    %c0_78 = arith.constant 0 : index
    %c0_79 = arith.constant 0 : index
    %223 = vector.load %arg18[%c0_78, %c0_79] : memref<8x32xf32, #tpu.memory_space<vmem>>, vector<8x16xf32>
    tpu.vector_store %arg18[%c0_78, %c0_79], %222 {strides = array<i32>} : memref<8x32xf32, #tpu.memory_space<vmem>>, vector<8x16xf32>,
    %224 = vector.extract_strided_slice %131 {offsets = [0, 16], sizes = [8, 16], strides = [1, 1]} : vector<8x32xf32> to vector<8x16xf32>
    %225 = vector.shape_cast %202 : vector<8x1xi1> to vector<8x1xi1>
    %226 = vector.broadcast %225 : vector<8x1xi1> to vector<8x16xi1>
    %227 = arith.select %226, %198, %224 : vector<8x16xi1>, vector<8x16xf32>
    %c0_80 = arith.constant 0 : index
    %c16_81 = arith.constant 16 : index
    %228 = vector.load %arg18[%c0_80, %c16_81] : memref<8x32xf32, #tpu.memory_space<vmem>>, vector<8x16xf32>
    tpu.vector_store %arg18[%c0_80, %c16_81], %227 {strides = array<i32>} : memref<8x32xf32, #tpu.memory_space<vmem>>, vector<8x16xf32>,
    %229 = vector.extract_strided_slice %132 {offsets = [0, 0], sizes = [8, 16], strides = [1, 1]} : vector<8x32xf32> to vector<8x16xf32>
    %230 = vector.shape_cast %200 : vector<8x1xi1> to vector<8x1xi1>
    %231 = vector.broadcast %230 : vector<8x1xi1> to vector<8x16xi1>
    %232 = arith.select %231, %168, %229 : vector<8x16xi1>, vector<8x16xf32>
    %c0_82 = arith.constant 0 : index
    %c0_83 = arith.constant 0 : index
    %233 = vector.load %arg19[%c0_82, %c0_83] : memref<8x32xf32, #tpu.memory_space<vmem>>, vector<8x16xf32>
    tpu.vector_store %arg19[%c0_82, %c0_83], %232 {strides = array<i32>} : memref<8x32xf32, #tpu.memory_space<vmem>>, vector<8x16xf32>,
    %234 = vector.extract_strided_slice %132 {offsets = [0, 16], sizes = [8, 16], strides = [1, 1]} : vector<8x32xf32> to vector<8x16xf32>
    %235 = vector.shape_cast %202 : vector<8x1xi1> to vector<8x1xi1>
    %236 = vector.broadcast %235 : vector<8x1xi1> to vector<8x16xi1>
    %237 = arith.select %236, %196, %234 : vector<8x16xi1>, vector<8x16xf32>
    %c0_84 = arith.constant 0 : index
    %c16_85 = arith.constant 16 : index
    %238 = vector.load %arg19[%c0_84, %c16_85] : memref<8x32xf32, #tpu.memory_space<vmem>>, vector<8x16xf32>
    tpu.vector_store %arg19[%c0_84, %c16_85], %237 {strides = array<i32>} : memref<8x32xf32, #tpu.memory_space<vmem>>, vector<8x16xf32>,
    %c2_i32 = arith.constant 2 : i32
    %c7_i32_86 = arith.constant 7 : i32
    %239 = arith.subi %c7_i32_86, %c2_i32 : i32
    %c0_87 = arith.constant 0 : index
    %c0_88 = arith.constant 0 : index
    %240 = vector.load %arg18[%c0_87, %c0_88] : memref<8x32xf32, #tpu.memory_space<vmem>>, vector<8x32xf32>
    %c0_89 = arith.constant 0 : index
    %c0_90 = arith.constant 0 : index
    %241 = vector.load %arg19[%c0_89, %c0_90] : memref<8x32xf32, #tpu.memory_space<vmem>>, vector<8x32xf32>
    %242 = arith.truncf %240 : vector<8x32xf32> to vector<8x32xbf16>
    %cst_91 = arith.constant dense<0.000000e+00> : vector<8x128xf32>
    %243 = tpu.matmul %242, %16, %cst_91 {dimension_numbers = #tpu.dot_dimension_numbers<[1], [0], [0], [1], [0, 0, 1, 1], [], []>} : vector<8x32xbf16>, vector<32x128xbf16>, vector<8x128xf32> -> vector<8x128xf32>
    %244 = arith.index_cast %c2_i32 : i32 to index
    %c0_92 = arith.constant 0 : index
    %c0_93 = arith.constant 0 : index
    %245 = vector.load %arg15[%244, %c0_92, %c0_93] : memref<8x8x128xbf16, #tpu.memory_space<vmem>>, vector<1x8x64xbf16>
    %246 = vector.shape_cast %245 : vector<1x8x64xbf16> to vector<8x64xbf16>
    %247 = arith.extf %246 : vector<8x64xbf16> to vector<8x64xf32>
    %248 = arith.index_cast %239 : i32 to index
    %c0_94 = arith.constant 0 : index
    %c64_95 = arith.constant 64 : index
    %249 = vector.load %arg15[%248, %c0_94, %c64_95] : memref<8x8x128xbf16, #tpu.memory_space<vmem>>, vector<1x8x64xbf16>
    %250 = vector.shape_cast %249 : vector<1x8x64xbf16> to vector<8x64xbf16>
    %251 = arith.extf %250 : vector<8x64xbf16> to vector<8x64xf32>
    %252 = vector.extract_strided_slice %243 {offsets = [0, 0], sizes = [8, 64], strides = [1, 1]} : vector<8x128xf32> to vector<8x64xf32>
    %253 = arith.addf %247, %252 : vector<8x64xf32>
    %254 = vector.extract_strided_slice %241 {offsets = [0, 0], sizes = [8, 16], strides = [1, 1]} : vector<8x32xf32> to vector<8x16xf32>
    %255 = vector.extract_strided_slice %253 {offsets = [0, 0], sizes = [8, 16], strides = [1, 1]} : vector<8x64xf32> to vector<8x16xf32>
    %256 = arith.negf %255 : vector<8x16xf32>
    %257 = math.exp %256 : vector<8x16xf32>
    %cst_96 = arith.constant 1.000000e+00 : f32
    %258 = vector.broadcast %cst_96 : f32 to vector<8x16xf32>
    %259 = arith.addf %258, %257 : vector<8x16xf32>
    %260 = arith.divf %258, %259 : vector<8x16xf32>
    %261 = vector.extract_strided_slice %253 {offsets = [0, 16], sizes = [8, 16], strides = [1, 1]} : vector<8x64xf32> to vector<8x16xf32>
    %262 = arith.negf %261 : vector<8x16xf32>
    %263 = math.exp %262 : vector<8x16xf32>
    %cst_97 = arith.constant 1.000000e+00 : f32
    %264 = vector.broadcast %cst_97 : f32 to vector<8x16xf32>
    %265 = arith.addf %264, %263 : vector<8x16xf32>
    %266 = arith.divf %264, %265 : vector<8x16xf32>
    %267 = vector.extract_strided_slice %253 {offsets = [0, 32], sizes = [8, 16], strides = [1, 1]} : vector<8x64xf32> to vector<8x16xf32>
    %268 = math.tanh %267 : vector<8x16xf32>
    %269 = vector.extract_strided_slice %253 {offsets = [0, 48], sizes = [8, 16], strides = [1, 1]} : vector<8x64xf32> to vector<8x16xf32>
    %270 = arith.negf %269 : vector<8x16xf32>
    %271 = math.exp %270 : vector<8x16xf32>
    %cst_98 = arith.constant 1.000000e+00 : f32
    %272 = vector.broadcast %cst_98 : f32 to vector<8x16xf32>
    %273 = arith.addf %272, %271 : vector<8x16xf32>
    %274 = arith.divf %272, %273 : vector<8x16xf32>
    %275 = arith.mulf %266, %254 : vector<8x16xf32>
    %276 = arith.mulf %260, %268 : vector<8x16xf32>
    %277 = arith.addf %275, %276 : vector<8x16xf32>
    %278 = math.tanh %277 : vector<8x16xf32>
    %279 = arith.mulf %274, %278 : vector<8x16xf32>
    %280 = vector.extract_strided_slice %243 {offsets = [0, 64], sizes = [8, 64], strides = [1, 1]} : vector<8x128xf32> to vector<8x64xf32>
    %281 = arith.addf %251, %280 : vector<8x64xf32>
    %282 = vector.extract_strided_slice %241 {offsets = [0, 16], sizes = [8, 16], strides = [1, 1]} : vector<8x32xf32> to vector<8x16xf32>
    %283 = vector.extract_strided_slice %281 {offsets = [0, 0], sizes = [8, 16], strides = [1, 1]} : vector<8x64xf32> to vector<8x16xf32>
    %284 = arith.negf %283 : vector<8x16xf32>
    %285 = math.exp %284 : vector<8x16xf32>
    %cst_99 = arith.constant 1.000000e+00 : f32
    %286 = vector.broadcast %cst_99 : f32 to vector<8x16xf32>
    %287 = arith.addf %286, %285 : vector<8x16xf32>
    %288 = arith.divf %286, %287 : vector<8x16xf32>
    %289 = vector.extract_strided_slice %281 {offsets = [0, 16], sizes = [8, 16], strides = [1, 1]} : vector<8x64xf32> to vector<8x16xf32>
    %290 = arith.negf %289 : vector<8x16xf32>
    %291 = math.exp %290 : vector<8x16xf32>
    %cst_100 = arith.constant 1.000000e+00 : f32
    %292 = vector.broadcast %cst_100 : f32 to vector<8x16xf32>
    %293 = arith.addf %292, %291 : vector<8x16xf32>
    %294 = arith.divf %292, %293 : vector<8x16xf32>
    %295 = vector.extract_strided_slice %281 {offsets = [0, 32], sizes = [8, 16], strides = [1, 1]} : vector<8x64xf32> to vector<8x16xf32>
    %296 = math.tanh %295 : vector<8x16xf32>
    %297 = vector.extract_strided_slice %281 {offsets = [0, 48], sizes = [8, 16], strides = [1, 1]} : vector<8x64xf32> to vector<8x16xf32>
    %298 = arith.negf %297 : vector<8x16xf32>
    %299 = math.exp %298 : vector<8x16xf32>
    %cst_101 = arith.constant 1.000000e+00 : f32
    %300 = vector.broadcast %cst_101 : f32 to vector<8x16xf32>
    %301 = arith.addf %300, %299 : vector<8x16xf32>
    %302 = arith.divf %300, %301 : vector<8x16xf32>
    %303 = arith.mulf %294, %282 : vector<8x16xf32>
    %304 = arith.mulf %288, %296 : vector<8x16xf32>
    %305 = arith.addf %303, %304 : vector<8x16xf32>
    %306 = math.tanh %305 : vector<8x16xf32>
    %307 = arith.mulf %302, %306 : vector<8x16xf32>
    %308 = vector.broadcast %c2_i32 : i32 to vector<8x1xi32>
    %309 = arith.cmpi slt, %308, %0 : vector<8x1xi32>
    %310 = vector.broadcast %239 : i32 to vector<8x1xi32>
    %311 = arith.cmpi slt, %310, %0 : vector<8x1xi32>
    %cst_102 = arith.constant 0.000000e+00 : f32
    %312 = vector.shape_cast %309 : vector<8x1xi1> to vector<8x1xi1>
    %313 = vector.broadcast %312 : vector<8x1xi1> to vector<8x16xi1>
    %314 = vector.broadcast %cst_102 : f32 to vector<8x16xf32>
    %315 = arith.select %313, %279, %314 : vector<8x16xi1>, vector<8x16xf32>
    %316 = arith.index_cast %c2_i32 : i32 to index
    %c0_103 = arith.constant 0 : index
    %c0_104 = arith.constant 0 : index
    %317 = vector.load %arg16[%316, %c0_103, %c0_104] : memref<8x8x32xf32, #tpu.memory_space<vmem>>, vector<1x8x16xf32>
    %318 = vector.shape_cast %317 : vector<1x8x16xf32> to vector<8x16xf32>
    %319 = vector.shape_cast %315 : vector<8x16xf32> to vector<1x8x16xf32>
    tpu.vector_store %arg16[%316, %c0_103, %c0_104], %319 {strides = array<i32>} : memref<8x8x32xf32, #tpu.memory_space<vmem>>, vector<1x8x16xf32>,
    %cst_105 = arith.constant 0.000000e+00 : f32
    %320 = vector.shape_cast %311 : vector<8x1xi1> to vector<8x1xi1>
    %321 = vector.broadcast %320 : vector<8x1xi1> to vector<8x16xi1>
    %322 = vector.broadcast %cst_105 : f32 to vector<8x16xf32>
    %323 = arith.select %321, %307, %322 : vector<8x16xi1>, vector<8x16xf32>
    %324 = arith.index_cast %239 : i32 to index
    %c0_106 = arith.constant 0 : index
    %c16_107 = arith.constant 16 : index
    %325 = vector.load %arg16[%324, %c0_106, %c16_107] : memref<8x8x32xf32, #tpu.memory_space<vmem>>, vector<1x8x16xf32>
    %326 = vector.shape_cast %325 : vector<1x8x16xf32> to vector<8x16xf32>
    %327 = vector.shape_cast %323 : vector<8x16xf32> to vector<1x8x16xf32>
    tpu.vector_store %arg16[%324, %c0_106, %c16_107], %327 {strides = array<i32>} : memref<8x8x32xf32, #tpu.memory_space<vmem>>, vector<1x8x16xf32>,
    %328 = vector.extract_strided_slice %240 {offsets = [0, 0], sizes = [8, 16], strides = [1, 1]} : vector<8x32xf32> to vector<8x16xf32>
    %329 = vector.shape_cast %309 : vector<8x1xi1> to vector<8x1xi1>
    %330 = vector.broadcast %329 : vector<8x1xi1> to vector<8x16xi1>
    %331 = arith.select %330, %279, %328 : vector<8x16xi1>, vector<8x16xf32>
    %c0_108 = arith.constant 0 : index
    %c0_109 = arith.constant 0 : index
    %332 = vector.load %arg18[%c0_108, %c0_109] : memref<8x32xf32, #tpu.memory_space<vmem>>, vector<8x16xf32>
    tpu.vector_store %arg18[%c0_108, %c0_109], %331 {strides = array<i32>} : memref<8x32xf32, #tpu.memory_space<vmem>>, vector<8x16xf32>,
    %333 = vector.extract_strided_slice %240 {offsets = [0, 16], sizes = [8, 16], strides = [1, 1]} : vector<8x32xf32> to vector<8x16xf32>
    %334 = vector.shape_cast %311 : vector<8x1xi1> to vector<8x1xi1>
    %335 = vector.broadcast %334 : vector<8x1xi1> to vector<8x16xi1>
    %336 = arith.select %335, %307, %333 : vector<8x16xi1>, vector<8x16xf32>
    %c0_110 = arith.constant 0 : index
    %c16_111 = arith.constant 16 : index
    %337 = vector.load %arg18[%c0_110, %c16_111] : memref<8x32xf32, #tpu.memory_space<vmem>>, vector<8x16xf32>
    tpu.vector_store %arg18[%c0_110, %c16_111], %336 {strides = array<i32>} : memref<8x32xf32, #tpu.memory_space<vmem>>, vector<8x16xf32>,
    %338 = vector.extract_strided_slice %241 {offsets = [0, 0], sizes = [8, 16], strides = [1, 1]} : vector<8x32xf32> to vector<8x16xf32>
    %339 = vector.shape_cast %309 : vector<8x1xi1> to vector<8x1xi1>
    %340 = vector.broadcast %339 : vector<8x1xi1> to vector<8x16xi1>
    %341 = arith.select %340, %277, %338 : vector<8x16xi1>, vector<8x16xf32>
    %c0_112 = arith.constant 0 : index
    %c0_113 = arith.constant 0 : index
    %342 = vector.load %arg19[%c0_112, %c0_113] : memref<8x32xf32, #tpu.memory_space<vmem>>, vector<8x16xf32>
    tpu.vector_store %arg19[%c0_112, %c0_113], %341 {strides = array<i32>} : memref<8x32xf32, #tpu.memory_space<vmem>>, vector<8x16xf32>,
    %343 = vector.extract_strided_slice %241 {offsets = [0, 16], sizes = [8, 16], strides = [1, 1]} : vector<8x32xf32> to vector<8x16xf32>
    %344 = vector.shape_cast %311 : vector<8x1xi1> to vector<8x1xi1>
    %345 = vector.broadcast %344 : vector<8x1xi1> to vector<8x16xi1>
    %346 = arith.select %345, %305, %343 : vector<8x16xi1>, vector<8x16xf32>
    %c0_114 = arith.constant 0 : index
    %c16_115 = arith.constant 16 : index
    %347 = vector.load %arg19[%c0_114, %c16_115] : memref<8x32xf32, #tpu.memory_space<vmem>>, vector<8x16xf32>
    tpu.vector_store %arg19[%c0_114, %c16_115], %346 {strides = array<i32>} : memref<8x32xf32, #tpu.memory_space<vmem>>, vector<8x16xf32>,
    %c3_i32 = arith.constant 3 : i32
    %c7_i32_116 = arith.constant 7 : i32
    %348 = arith.subi %c7_i32_116, %c3_i32 : i32
    %c0_117 = arith.constant 0 : index
    %c0_118 = arith.constant 0 : index
    %349 = vector.load %arg18[%c0_117, %c0_118] : memref<8x32xf32, #tpu.memory_space<vmem>>, vector<8x32xf32>
    %c0_119 = arith.constant 0 : index
    %c0_120 = arith.constant 0 : index
    %350 = vector.load %arg19[%c0_119, %c0_120] : memref<8x32xf32, #tpu.memory_space<vmem>>, vector<8x32xf32>
    %351 = arith.truncf %349 : vector<8x32xf32> to vector<8x32xbf16>
    %cst_121 = arith.constant dense<0.000000e+00> : vector<8x128xf32>
    %352 = tpu.matmul %351, %16, %cst_121 {dimension_numbers = #tpu.dot_dimension_numbers<[1], [0], [0], [1], [0, 0, 1, 1], [], []>} : vector<8x32xbf16>, vector<32x128xbf16>, vector<8x128xf32> -> vector<8x128xf32>
    %353 = arith.index_cast %c3_i32 : i32 to index
    %c0_122 = arith.constant 0 : index
    %c0_123 = arith.constant 0 : index
    %354 = vector.load %arg15[%353, %c0_122, %c0_123] : memref<8x8x128xbf16, #tpu.memory_space<vmem>>, vector<1x8x64xbf16>
    %355 = vector.shape_cast %354 : vector<1x8x64xbf16> to vector<8x64xbf16>
    %356 = arith.extf %355 : vector<8x64xbf16> to vector<8x64xf32>
    %357 = arith.index_cast %348 : i32 to index
    %c0_124 = arith.constant 0 : index
    %c64_125 = arith.constant 64 : index
    %358 = vector.load %arg15[%357, %c0_124, %c64_125] : memref<8x8x128xbf16, #tpu.memory_space<vmem>>, vector<1x8x64xbf16>
    %359 = vector.shape_cast %358 : vector<1x8x64xbf16> to vector<8x64xbf16>
    %360 = arith.extf %359 : vector<8x64xbf16> to vector<8x64xf32>
    %361 = vector.extract_strided_slice %352 {offsets = [0, 0], sizes = [8, 64], strides = [1, 1]} : vector<8x128xf32> to vector<8x64xf32>
    %362 = arith.addf %356, %361 : vector<8x64xf32>
    %363 = vector.extract_strided_slice %350 {offsets = [0, 0], sizes = [8, 16], strides = [1, 1]} : vector<8x32xf32> to vector<8x16xf32>
    %364 = vector.extract_strided_slice %362 {offsets = [0, 0], sizes = [8, 16], strides = [1, 1]} : vector<8x64xf32> to vector<8x16xf32>
    %365 = arith.negf %364 : vector<8x16xf32>
    %366 = math.exp %365 : vector<8x16xf32>
    %cst_126 = arith.constant 1.000000e+00 : f32
    %367 = vector.broadcast %cst_126 : f32 to vector<8x16xf32>
    %368 = arith.addf %367, %366 : vector<8x16xf32>
    %369 = arith.divf %367, %368 : vector<8x16xf32>
    %370 = vector.extract_strided_slice %362 {offsets = [0, 16], sizes = [8, 16], strides = [1, 1]} : vector<8x64xf32> to vector<8x16xf32>
    %371 = arith.negf %370 : vector<8x16xf32>
    %372 = math.exp %371 : vector<8x16xf32>
    %cst_127 = arith.constant 1.000000e+00 : f32
    %373 = vector.broadcast %cst_127 : f32 to vector<8x16xf32>
    %374 = arith.addf %373, %372 : vector<8x16xf32>
    %375 = arith.divf %373, %374 : vector<8x16xf32>
    %376 = vector.extract_strided_slice %362 {offsets = [0, 32], sizes = [8, 16], strides = [1, 1]} : vector<8x64xf32> to vector<8x16xf32>
    %377 = math.tanh %376 : vector<8x16xf32>
    %378 = vector.extract_strided_slice %362 {offsets = [0, 48], sizes = [8, 16], strides = [1, 1]} : vector<8x64xf32> to vector<8x16xf32>
    %379 = arith.negf %378 : vector<8x16xf32>
    %380 = math.exp %379 : vector<8x16xf32>
    %cst_128 = arith.constant 1.000000e+00 : f32
    %381 = vector.broadcast %cst_128 : f32 to vector<8x16xf32>
    %382 = arith.addf %381, %380 : vector<8x16xf32>
    %383 = arith.divf %381, %382 : vector<8x16xf32>
    %384 = arith.mulf %375, %363 : vector<8x16xf32>
    %385 = arith.mulf %369, %377 : vector<8x16xf32>
    %386 = arith.addf %384, %385 : vector<8x16xf32>
    %387 = math.tanh %386 : vector<8x16xf32>
    %388 = arith.mulf %383, %387 : vector<8x16xf32>
    %389 = vector.extract_strided_slice %352 {offsets = [0, 64], sizes = [8, 64], strides = [1, 1]} : vector<8x128xf32> to vector<8x64xf32>
    %390 = arith.addf %360, %389 : vector<8x64xf32>
    %391 = vector.extract_strided_slice %350 {offsets = [0, 16], sizes = [8, 16], strides = [1, 1]} : vector<8x32xf32> to vector<8x16xf32>
    %392 = vector.extract_strided_slice %390 {offsets = [0, 0], sizes = [8, 16], strides = [1, 1]} : vector<8x64xf32> to vector<8x16xf32>
    %393 = arith.negf %392 : vector<8x16xf32>
    %394 = math.exp %393 : vector<8x16xf32>
    %cst_129 = arith.constant 1.000000e+00 : f32
    %395 = vector.broadcast %cst_129 : f32 to vector<8x16xf32>
    %396 = arith.addf %395, %394 : vector<8x16xf32>
    %397 = arith.divf %395, %396 : vector<8x16xf32>
    %398 = vector.extract_strided_slice %390 {offsets = [0, 16], sizes = [8, 16], strides = [1, 1]} : vector<8x64xf32> to vector<8x16xf32>
    %399 = arith.negf %398 : vector<8x16xf32>
    %400 = math.exp %399 : vector<8x16xf32>
    %cst_130 = arith.constant 1.000000e+00 : f32
    %401 = vector.broadcast %cst_130 : f32 to vector<8x16xf32>
    %402 = arith.addf %401, %400 : vector<8x16xf32>
    %403 = arith.divf %401, %402 : vector<8x16xf32>
    %404 = vector.extract_strided_slice %390 {offsets = [0, 32], sizes = [8, 16], strides = [1, 1]} : vector<8x64xf32> to vector<8x16xf32>
    %405 = math.tanh %404 : vector<8x16xf32>
    %406 = vector.extract_strided_slice %390 {offsets = [0, 48], sizes = [8, 16], strides = [1, 1]} : vector<8x64xf32> to vector<8x16xf32>
    %407 = arith.negf %406 : vector<8x16xf32>
    %408 = math.exp %407 : vector<8x16xf32>
    %cst_131 = arith.constant 1.000000e+00 : f32
    %409 = vector.broadcast %cst_131 : f32 to vector<8x16xf32>
    %410 = arith.addf %409, %408 : vector<8x16xf32>
    %411 = arith.divf %409, %410 : vector<8x16xf32>
    %412 = arith.mulf %403, %391 : vector<8x16xf32>
    %413 = arith.mulf %397, %405 : vector<8x16xf32>
    %414 = arith.addf %412, %413 : vector<8x16xf32>
    %415 = math.tanh %414 : vector<8x16xf32>
    %416 = arith.mulf %411, %415 : vector<8x16xf32>
    %417 = vector.broadcast %c3_i32 : i32 to vector<8x1xi32>
    %418 = arith.cmpi slt, %417, %0 : vector<8x1xi32>
    %419 = vector.broadcast %348 : i32 to vector<8x1xi32>
    %420 = arith.cmpi slt, %419, %0 : vector<8x1xi32>
    %cst_132 = arith.constant 0.000000e+00 : f32
    %421 = vector.shape_cast %418 : vector<8x1xi1> to vector<8x1xi1>
    %422 = vector.broadcast %421 : vector<8x1xi1> to vector<8x16xi1>
    %423 = vector.broadcast %cst_132 : f32 to vector<8x16xf32>
    %424 = arith.select %422, %388, %423 : vector<8x16xi1>, vector<8x16xf32>
    %425 = arith.index_cast %c3_i32 : i32 to index
    %c0_133 = arith.constant 0 : index
    %c0_134 = arith.constant 0 : index
    %426 = vector.load %arg16[%425, %c0_133, %c0_134] : memref<8x8x32xf32, #tpu.memory_space<vmem>>, vector<1x8x16xf32>
    %427 = vector.shape_cast %426 : vector<1x8x16xf32> to vector<8x16xf32>
    %428 = vector.shape_cast %424 : vector<8x16xf32> to vector<1x8x16xf32>
    tpu.vector_store %arg16[%425, %c0_133, %c0_134], %428 {strides = array<i32>} : memref<8x8x32xf32, #tpu.memory_space<vmem>>, vector<1x8x16xf32>,
    %cst_135 = arith.constant 0.000000e+00 : f32
    %429 = vector.shape_cast %420 : vector<8x1xi1> to vector<8x1xi1>
    %430 = vector.broadcast %429 : vector<8x1xi1> to vector<8x16xi1>
    %431 = vector.broadcast %cst_135 : f32 to vector<8x16xf32>
    %432 = arith.select %430, %416, %431 : vector<8x16xi1>, vector<8x16xf32>
    %433 = arith.index_cast %348 : i32 to index
    %c0_136 = arith.constant 0 : index
    %c16_137 = arith.constant 16 : index
    %434 = vector.load %arg16[%433, %c0_136, %c16_137] : memref<8x8x32xf32, #tpu.memory_space<vmem>>, vector<1x8x16xf32>
    %435 = vector.shape_cast %434 : vector<1x8x16xf32> to vector<8x16xf32>
    %436 = vector.shape_cast %432 : vector<8x16xf32> to vector<1x8x16xf32>
    tpu.vector_store %arg16[%433, %c0_136, %c16_137], %436 {strides = array<i32>} : memref<8x8x32xf32, #tpu.memory_space<vmem>>, vector<1x8x16xf32>,
    %437 = vector.extract_strided_slice %349 {offsets = [0, 0], sizes = [8, 16], strides = [1, 1]} : vector<8x32xf32> to vector<8x16xf32>
    %438 = vector.shape_cast %418 : vector<8x1xi1> to vector<8x1xi1>
    %439 = vector.broadcast %438 : vector<8x1xi1> to vector<8x16xi1>
    %440 = arith.select %439, %388, %437 : vector<8x16xi1>, vector<8x16xf32>
    %c0_138 = arith.constant 0 : index
    %c0_139 = arith.constant 0 : index
    %441 = vector.load %arg18[%c0_138, %c0_139] : memref<8x32xf32, #tpu.memory_space<vmem>>, vector<8x16xf32>
    tpu.vector_store %arg18[%c0_138, %c0_139], %440 {strides = array<i32>} : memref<8x32xf32, #tpu.memory_space<vmem>>, vector<8x16xf32>,
    %442 = vector.extract_strided_slice %349 {offsets = [0, 16], sizes = [8, 16], strides = [1, 1]} : vector<8x32xf32> to vector<8x16xf32>
    %443 = vector.shape_cast %420 : vector<8x1xi1> to vector<8x1xi1>
    %444 = vector.broadcast %443 : vector<8x1xi1> to vector<8x16xi1>
    %445 = arith.select %444, %416, %442 : vector<8x16xi1>, vector<8x16xf32>
    %c0_140 = arith.constant 0 : index
    %c16_141 = arith.constant 16 : index
    %446 = vector.load %arg18[%c0_140, %c16_141] : memref<8x32xf32, #tpu.memory_space<vmem>>, vector<8x16xf32>
    tpu.vector_store %arg18[%c0_140, %c16_141], %445 {strides = array<i32>} : memref<8x32xf32, #tpu.memory_space<vmem>>, vector<8x16xf32>,
    %447 = vector.extract_strided_slice %350 {offsets = [0, 0], sizes = [8, 16], strides = [1, 1]} : vector<8x32xf32> to vector<8x16xf32>
    %448 = vector.shape_cast %418 : vector<8x1xi1> to vector<8x1xi1>
    %449 = vector.broadcast %448 : vector<8x1xi1> to vector<8x16xi1>
    %450 = arith.select %449, %386, %447 : vector<8x16xi1>, vector<8x16xf32>
    %c0_142 = arith.constant 0 : index
    %c0_143 = arith.constant 0 : index
    %451 = vector.load %arg19[%c0_142, %c0_143] : memref<8x32xf32, #tpu.memory_space<vmem>>, vector<8x16xf32>
    tpu.vector_store %arg19[%c0_142, %c0_143], %450 {strides = array<i32>} : memref<8x32xf32, #tpu.memory_space<vmem>>, vector<8x16xf32>,
    %452 = vector.extract_strided_slice %350 {offsets = [0, 16], sizes = [8, 16], strides = [1, 1]} : vector<8x32xf32> to vector<8x16xf32>
    %453 = vector.shape_cast %420 : vector<8x1xi1> to vector<8x1xi1>
    %454 = vector.broadcast %453 : vector<8x1xi1> to vector<8x16xi1>
    %455 = arith.select %454, %414, %452 : vector<8x16xi1>, vector<8x16xf32>
    %c0_144 = arith.constant 0 : index
    %c16_145 = arith.constant 16 : index
    %456 = vector.load %arg19[%c0_144, %c16_145] : memref<8x32xf32, #tpu.memory_space<vmem>>, vector<8x16xf32>
    tpu.vector_store %arg19[%c0_144, %c16_145], %455 {strides = array<i32>} : memref<8x32xf32, #tpu.memory_space<vmem>>, vector<8x16xf32>,
    %c4_i32 = arith.constant 4 : i32
    %c7_i32_146 = arith.constant 7 : i32
    %457 = arith.subi %c7_i32_146, %c4_i32 : i32
    %c0_147 = arith.constant 0 : index
    %c0_148 = arith.constant 0 : index
    %458 = vector.load %arg18[%c0_147, %c0_148] : memref<8x32xf32, #tpu.memory_space<vmem>>, vector<8x32xf32>
    %c0_149 = arith.constant 0 : index
    %c0_150 = arith.constant 0 : index
    %459 = vector.load %arg19[%c0_149, %c0_150] : memref<8x32xf32, #tpu.memory_space<vmem>>, vector<8x32xf32>
    %460 = arith.truncf %458 : vector<8x32xf32> to vector<8x32xbf16>
    %cst_151 = arith.constant dense<0.000000e+00> : vector<8x128xf32>
    %461 = tpu.matmul %460, %16, %cst_151 {dimension_numbers = #tpu.dot_dimension_numbers<[1], [0], [0], [1], [0, 0, 1, 1], [], []>} : vector<8x32xbf16>, vector<32x128xbf16>, vector<8x128xf32> -> vector<8x128xf32>
    %462 = arith.index_cast %c4_i32 : i32 to index
    %c0_152 = arith.constant 0 : index
    %c0_153 = arith.constant 0 : index
    %463 = vector.load %arg15[%462, %c0_152, %c0_153] : memref<8x8x128xbf16, #tpu.memory_space<vmem>>, vector<1x8x64xbf16>
    %464 = vector.shape_cast %463 : vector<1x8x64xbf16> to vector<8x64xbf16>
    %465 = arith.extf %464 : vector<8x64xbf16> to vector<8x64xf32>
    %466 = arith.index_cast %457 : i32 to index
    %c0_154 = arith.constant 0 : index
    %c64_155 = arith.constant 64 : index
    %467 = vector.load %arg15[%466, %c0_154, %c64_155] : memref<8x8x128xbf16, #tpu.memory_space<vmem>>, vector<1x8x64xbf16>
    %468 = vector.shape_cast %467 : vector<1x8x64xbf16> to vector<8x64xbf16>
    %469 = arith.extf %468 : vector<8x64xbf16> to vector<8x64xf32>
    %470 = vector.extract_strided_slice %461 {offsets = [0, 0], sizes = [8, 64], strides = [1, 1]} : vector<8x128xf32> to vector<8x64xf32>
    %471 = arith.addf %465, %470 : vector<8x64xf32>
    %472 = vector.extract_strided_slice %459 {offsets = [0, 0], sizes = [8, 16], strides = [1, 1]} : vector<8x32xf32> to vector<8x16xf32>
    %473 = vector.extract_strided_slice %471 {offsets = [0, 0], sizes = [8, 16], strides = [1, 1]} : vector<8x64xf32> to vector<8x16xf32>
    %474 = arith.negf %473 : vector<8x16xf32>
    %475 = math.exp %474 : vector<8x16xf32>
    %cst_156 = arith.constant 1.000000e+00 : f32
    %476 = vector.broadcast %cst_156 : f32 to vector<8x16xf32>
    %477 = arith.addf %476, %475 : vector<8x16xf32>
    %478 = arith.divf %476, %477 : vector<8x16xf32>
    %479 = vector.extract_strided_slice %471 {offsets = [0, 16], sizes = [8, 16], strides = [1, 1]} : vector<8x64xf32> to vector<8x16xf32>
    %480 = arith.negf %479 : vector<8x16xf32>
    %481 = math.exp %480 : vector<8x16xf32>
    %cst_157 = arith.constant 1.000000e+00 : f32
    %482 = vector.broadcast %cst_157 : f32 to vector<8x16xf32>
    %483 = arith.addf %482, %481 : vector<8x16xf32>
    %484 = arith.divf %482, %483 : vector<8x16xf32>
    %485 = vector.extract_strided_slice %471 {offsets = [0, 32], sizes = [8, 16], strides = [1, 1]} : vector<8x64xf32> to vector<8x16xf32>
    %486 = math.tanh %485 : vector<8x16xf32>
    %487 = vector.extract_strided_slice %471 {offsets = [0, 48], sizes = [8, 16], strides = [1, 1]} : vector<8x64xf32> to vector<8x16xf32>
    %488 = arith.negf %487 : vector<8x16xf32>
    %489 = math.exp %488 : vector<8x16xf32>
    %cst_158 = arith.constant 1.000000e+00 : f32
    %490 = vector.broadcast %cst_158 : f32 to vector<8x16xf32>
    %491 = arith.addf %490, %489 : vector<8x16xf32>
    %492 = arith.divf %490, %491 : vector<8x16xf32>
    %493 = arith.mulf %484, %472 : vector<8x16xf32>
    %494 = arith.mulf %478, %486 : vector<8x16xf32>
    %495 = arith.addf %493, %494 : vector<8x16xf32>
    %496 = math.tanh %495 : vector<8x16xf32>
    %497 = arith.mulf %492, %496 : vector<8x16xf32>
    %498 = vector.extract_strided_slice %461 {offsets = [0, 64], sizes = [8, 64], strides = [1, 1]} : vector<8x128xf32> to vector<8x64xf32>
    %499 = arith.addf %469, %498 : vector<8x64xf32>
    %500 = vector.extract_strided_slice %459 {offsets = [0, 16], sizes = [8, 16], strides = [1, 1]} : vector<8x32xf32> to vector<8x16xf32>
    %501 = vector.extract_strided_slice %499 {offsets = [0, 0], sizes = [8, 16], strides = [1, 1]} : vector<8x64xf32> to vector<8x16xf32>
    %502 = arith.negf %501 : vector<8x16xf32>
    %503 = math.exp %502 : vector<8x16xf32>
    %cst_159 = arith.constant 1.000000e+00 : f32
    %504 = vector.broadcast %cst_159 : f32 to vector<8x16xf32>
    %505 = arith.addf %504, %503 : vector<8x16xf32>
    %506 = arith.divf %504, %505 : vector<8x16xf32>
    %507 = vector.extract_strided_slice %499 {offsets = [0, 16], sizes = [8, 16], strides = [1, 1]} : vector<8x64xf32> to vector<8x16xf32>
    %508 = arith.negf %507 : vector<8x16xf32>
    %509 = math.exp %508 : vector<8x16xf32>
    %cst_160 = arith.constant 1.000000e+00 : f32
    %510 = vector.broadcast %cst_160 : f32 to vector<8x16xf32>
    %511 = arith.addf %510, %509 : vector<8x16xf32>
    %512 = arith.divf %510, %511 : vector<8x16xf32>
    %513 = vector.extract_strided_slice %499 {offsets = [0, 32], sizes = [8, 16], strides = [1, 1]} : vector<8x64xf32> to vector<8x16xf32>
    %514 = math.tanh %513 : vector<8x16xf32>
    %515 = vector.extract_strided_slice %499 {offsets = [0, 48], sizes = [8, 16], strides = [1, 1]} : vector<8x64xf32> to vector<8x16xf32>
    %516 = arith.negf %515 : vector<8x16xf32>
    %517 = math.exp %516 : vector<8x16xf32>
    %cst_161 = arith.constant 1.000000e+00 : f32
    %518 = vector.broadcast %cst_161 : f32 to vector<8x16xf32>
    %519 = arith.addf %518, %517 : vector<8x16xf32>
    %520 = arith.divf %518, %519 : vector<8x16xf32>
    %521 = arith.mulf %512, %500 : vector<8x16xf32>
    %522 = arith.mulf %506, %514 : vector<8x16xf32>
    %523 = arith.addf %521, %522 : vector<8x16xf32>
    %524 = math.tanh %523 : vector<8x16xf32>
    %525 = arith.mulf %520, %524 : vector<8x16xf32>
    %526 = vector.broadcast %c4_i32 : i32 to vector<8x1xi32>
    %527 = arith.cmpi slt, %526, %0 : vector<8x1xi32>
    %528 = vector.broadcast %457 : i32 to vector<8x1xi32>
    %529 = arith.cmpi slt, %528, %0 : vector<8x1xi32>
    %cst_162 = arith.constant 0.000000e+00 : f32
    %530 = vector.shape_cast %527 : vector<8x1xi1> to vector<8x1xi1>
    %531 = vector.broadcast %530 : vector<8x1xi1> to vector<8x16xi1>
    %532 = vector.broadcast %cst_162 : f32 to vector<8x16xf32>
    %533 = arith.select %531, %497, %532 : vector<8x16xi1>, vector<8x16xf32>
    %534 = arith.index_cast %c4_i32 : i32 to index
    %c0_163 = arith.constant 0 : index
    %c0_164 = arith.constant 0 : index
    %535 = vector.load %arg16[%534, %c0_163, %c0_164] : memref<8x8x32xf32, #tpu.memory_space<vmem>>, vector<1x8x16xf32>
    %536 = vector.shape_cast %535 : vector<1x8x16xf32> to vector<8x16xf32>
    %537 = vector.shape_cast %533 : vector<8x16xf32> to vector<1x8x16xf32>
    tpu.vector_store %arg16[%534, %c0_163, %c0_164], %537 {strides = array<i32>} : memref<8x8x32xf32, #tpu.memory_space<vmem>>, vector<1x8x16xf32>,
    %cst_165 = arith.constant 0.000000e+00 : f32
    %538 = vector.shape_cast %529 : vector<8x1xi1> to vector<8x1xi1>
    %539 = vector.broadcast %538 : vector<8x1xi1> to vector<8x16xi1>
    %540 = vector.broadcast %cst_165 : f32 to vector<8x16xf32>
    %541 = arith.select %539, %525, %540 : vector<8x16xi1>, vector<8x16xf32>
    %542 = arith.index_cast %457 : i32 to index
    %c0_166 = arith.constant 0 : index
    %c16_167 = arith.constant 16 : index
    %543 = vector.load %arg16[%542, %c0_166, %c16_167] : memref<8x8x32xf32, #tpu.memory_space<vmem>>, vector<1x8x16xf32>
    %544 = vector.shape_cast %543 : vector<1x8x16xf32> to vector<8x16xf32>
    %545 = vector.shape_cast %541 : vector<8x16xf32> to vector<1x8x16xf32>
    tpu.vector_store %arg16[%542, %c0_166, %c16_167], %545 {strides = array<i32>} : memref<8x8x32xf32, #tpu.memory_space<vmem>>, vector<1x8x16xf32>,
    %546 = vector.extract_strided_slice %458 {offsets = [0, 0], sizes = [8, 16], strides = [1, 1]} : vector<8x32xf32> to vector<8x16xf32>
    %547 = vector.shape_cast %527 : vector<8x1xi1> to vector<8x1xi1>
    %548 = vector.broadcast %547 : vector<8x1xi1> to vector<8x16xi1>
    %549 = arith.select %548, %497, %546 : vector<8x16xi1>, vector<8x16xf32>
    %c0_168 = arith.constant 0 : index
    %c0_169 = arith.constant 0 : index
    %550 = vector.load %arg18[%c0_168, %c0_169] : memref<8x32xf32, #tpu.memory_space<vmem>>, vector<8x16xf32>
    tpu.vector_store %arg18[%c0_168, %c0_169], %549 {strides = array<i32>} : memref<8x32xf32, #tpu.memory_space<vmem>>, vector<8x16xf32>,
    %551 = vector.extract_strided_slice %458 {offsets = [0, 16], sizes = [8, 16], strides = [1, 1]} : vector<8x32xf32> to vector<8x16xf32>
    %552 = vector.shape_cast %529 : vector<8x1xi1> to vector<8x1xi1>
    %553 = vector.broadcast %552 : vector<8x1xi1> to vector<8x16xi1>
    %554 = arith.select %553, %525, %551 : vector<8x16xi1>, vector<8x16xf32>
    %c0_170 = arith.constant 0 : index
    %c16_171 = arith.constant 16 : index
    %555 = vector.load %arg18[%c0_170, %c16_171] : memref<8x32xf32, #tpu.memory_space<vmem>>, vector<8x16xf32>
    tpu.vector_store %arg18[%c0_170, %c16_171], %554 {strides = array<i32>} : memref<8x32xf32, #tpu.memory_space<vmem>>, vector<8x16xf32>,
    %556 = vector.extract_strided_slice %459 {offsets = [0, 0], sizes = [8, 16], strides = [1, 1]} : vector<8x32xf32> to vector<8x16xf32>
    %557 = vector.shape_cast %527 : vector<8x1xi1> to vector<8x1xi1>
    %558 = vector.broadcast %557 : vector<8x1xi1> to vector<8x16xi1>
    %559 = arith.select %558, %495, %556 : vector<8x16xi1>, vector<8x16xf32>
    %c0_172 = arith.constant 0 : index
    %c0_173 = arith.constant 0 : index
    %560 = vector.load %arg19[%c0_172, %c0_173] : memref<8x32xf32, #tpu.memory_space<vmem>>, vector<8x16xf32>
    tpu.vector_store %arg19[%c0_172, %c0_173], %559 {strides = array<i32>} : memref<8x32xf32, #tpu.memory_space<vmem>>, vector<8x16xf32>,
    %561 = vector.extract_strided_slice %459 {offsets = [0, 16], sizes = [8, 16], strides = [1, 1]} : vector<8x32xf32> to vector<8x16xf32>
    %562 = vector.shape_cast %529 : vector<8x1xi1> to vector<8x1xi1>
    %563 = vector.broadcast %562 : vector<8x1xi1> to vector<8x16xi1>
    %564 = arith.select %563, %523, %561 : vector<8x16xi1>, vector<8x16xf32>
    %c0_174 = arith.constant 0 : index
    %c16_175 = arith.constant 16 : index
    %565 = vector.load %arg19[%c0_174, %c16_175] : memref<8x32xf32, #tpu.memory_space<vmem>>, vector<8x16xf32>
    tpu.vector_store %arg19[%c0_174, %c16_175], %564 {strides = array<i32>} : memref<8x32xf32, #tpu.memory_space<vmem>>, vector<8x16xf32>,
    %c5_i32 = arith.constant 5 : i32
    %c7_i32_176 = arith.constant 7 : i32
    %566 = arith.subi %c7_i32_176, %c5_i32 : i32
    %c0_177 = arith.constant 0 : index
    %c0_178 = arith.constant 0 : index
    %567 = vector.load %arg18[%c0_177, %c0_178] : memref<8x32xf32, #tpu.memory_space<vmem>>, vector<8x32xf32>
    %c0_179 = arith.constant 0 : index
    %c0_180 = arith.constant 0 : index
    %568 = vector.load %arg19[%c0_179, %c0_180] : memref<8x32xf32, #tpu.memory_space<vmem>>, vector<8x32xf32>
    %569 = arith.truncf %567 : vector<8x32xf32> to vector<8x32xbf16>
    %cst_181 = arith.constant dense<0.000000e+00> : vector<8x128xf32>
    %570 = tpu.matmul %569, %16, %cst_181 {dimension_numbers = #tpu.dot_dimension_numbers<[1], [0], [0], [1], [0, 0, 1, 1], [], []>} : vector<8x32xbf16>, vector<32x128xbf16>, vector<8x128xf32> -> vector<8x128xf32>
    %571 = arith.index_cast %c5_i32 : i32 to index
    %c0_182 = arith.constant 0 : index
    %c0_183 = arith.constant 0 : index
    %572 = vector.load %arg15[%571, %c0_182, %c0_183] : memref<8x8x128xbf16, #tpu.memory_space<vmem>>, vector<1x8x64xbf16>
    %573 = vector.shape_cast %572 : vector<1x8x64xbf16> to vector<8x64xbf16>
    %574 = arith.extf %573 : vector<8x64xbf16> to vector<8x64xf32>
    %575 = arith.index_cast %566 : i32 to index
    %c0_184 = arith.constant 0 : index
    %c64_185 = arith.constant 64 : index
    %576 = vector.load %arg15[%575, %c0_184, %c64_185] : memref<8x8x128xbf16, #tpu.memory_space<vmem>>, vector<1x8x64xbf16>
    %577 = vector.shape_cast %576 : vector<1x8x64xbf16> to vector<8x64xbf16>
    %578 = arith.extf %577 : vector<8x64xbf16> to vector<8x64xf32>
    %579 = vector.extract_strided_slice %570 {offsets = [0, 0], sizes = [8, 64], strides = [1, 1]} : vector<8x128xf32> to vector<8x64xf32>
    %580 = arith.addf %574, %579 : vector<8x64xf32>
    %581 = vector.extract_strided_slice %568 {offsets = [0, 0], sizes = [8, 16], strides = [1, 1]} : vector<8x32xf32> to vector<8x16xf32>
    %582 = vector.extract_strided_slice %580 {offsets = [0, 0], sizes = [8, 16], strides = [1, 1]} : vector<8x64xf32> to vector<8x16xf32>
    %583 = arith.negf %582 : vector<8x16xf32>
    %584 = math.exp %583 : vector<8x16xf32>
    %cst_186 = arith.constant 1.000000e+00 : f32
    %585 = vector.broadcast %cst_186 : f32 to vector<8x16xf32>
    %586 = arith.addf %585, %584 : vector<8x16xf32>
    %587 = arith.divf %585, %586 : vector<8x16xf32>
    %588 = vector.extract_strided_slice %580 {offsets = [0, 16], sizes = [8, 16], strides = [1, 1]} : vector<8x64xf32> to vector<8x16xf32>
    %589 = arith.negf %588 : vector<8x16xf32>
    %590 = math.exp %589 : vector<8x16xf32>
    %cst_187 = arith.constant 1.000000e+00 : f32
    %591 = vector.broadcast %cst_187 : f32 to vector<8x16xf32>
    %592 = arith.addf %591, %590 : vector<8x16xf32>
    %593 = arith.divf %591, %592 : vector<8x16xf32>
    %594 = vector.extract_strided_slice %580 {offsets = [0, 32], sizes = [8, 16], strides = [1, 1]} : vector<8x64xf32> to vector<8x16xf32>
    %595 = math.tanh %594 : vector<8x16xf32>
    %596 = vector.extract_strided_slice %580 {offsets = [0, 48], sizes = [8, 16], strides = [1, 1]} : vector<8x64xf32> to vector<8x16xf32>
    %597 = arith.negf %596 : vector<8x16xf32>
    %598 = math.exp %597 : vector<8x16xf32>
    %cst_188 = arith.constant 1.000000e+00 : f32
    %599 = vector.broadcast %cst_188 : f32 to vector<8x16xf32>
    %600 = arith.addf %599, %598 : vector<8x16xf32>
    %601 = arith.divf %599, %600 : vector<8x16xf32>
    %602 = arith.mulf %593, %581 : vector<8x16xf32>
    %603 = arith.mulf %587, %595 : vector<8x16xf32>
    %604 = arith.addf %602, %603 : vector<8x16xf32>
    %605 = math.tanh %604 : vector<8x16xf32>
    %606 = arith.mulf %601, %605 : vector<8x16xf32>
    %607 = vector.extract_strided_slice %570 {offsets = [0, 64], sizes = [8, 64], strides = [1, 1]} : vector<8x128xf32> to vector<8x64xf32>
    %608 = arith.addf %578, %607 : vector<8x64xf32>
    %609 = vector.extract_strided_slice %568 {offsets = [0, 16], sizes = [8, 16], strides = [1, 1]} : vector<8x32xf32> to vector<8x16xf32>
    %610 = vector.extract_strided_slice %608 {offsets = [0, 0], sizes = [8, 16], strides = [1, 1]} : vector<8x64xf32> to vector<8x16xf32>
    %611 = arith.negf %610 : vector<8x16xf32>
    %612 = math.exp %611 : vector<8x16xf32>
    %cst_189 = arith.constant 1.000000e+00 : f32
    %613 = vector.broadcast %cst_189 : f32 to vector<8x16xf32>
    %614 = arith.addf %613, %612 : vector<8x16xf32>
    %615 = arith.divf %613, %614 : vector<8x16xf32>
    %616 = vector.extract_strided_slice %608 {offsets = [0, 16], sizes = [8, 16], strides = [1, 1]} : vector<8x64xf32> to vector<8x16xf32>
    %617 = arith.negf %616 : vector<8x16xf32>
    %618 = math.exp %617 : vector<8x16xf32>
    %cst_190 = arith.constant 1.000000e+00 : f32
    %619 = vector.broadcast %cst_190 : f32 to vector<8x16xf32>
    %620 = arith.addf %619, %618 : vector<8x16xf32>
    %621 = arith.divf %619, %620 : vector<8x16xf32>
    %622 = vector.extract_strided_slice %608 {offsets = [0, 32], sizes = [8, 16], strides = [1, 1]} : vector<8x64xf32> to vector<8x16xf32>
    %623 = math.tanh %622 : vector<8x16xf32>
    %624 = vector.extract_strided_slice %608 {offsets = [0, 48], sizes = [8, 16], strides = [1, 1]} : vector<8x64xf32> to vector<8x16xf32>
    %625 = arith.negf %624 : vector<8x16xf32>
    %626 = math.exp %625 : vector<8x16xf32>
    %cst_191 = arith.constant 1.000000e+00 : f32
    %627 = vector.broadcast %cst_191 : f32 to vector<8x16xf32>
    %628 = arith.addf %627, %626 : vector<8x16xf32>
    %629 = arith.divf %627, %628 : vector<8x16xf32>
    %630 = arith.mulf %621, %609 : vector<8x16xf32>
    %631 = arith.mulf %615, %623 : vector<8x16xf32>
    %632 = arith.addf %630, %631 : vector<8x16xf32>
    %633 = math.tanh %632 : vector<8x16xf32>
    %634 = arith.mulf %629, %633 : vector<8x16xf32>
    %635 = vector.broadcast %c5_i32 : i32 to vector<8x1xi32>
    %636 = arith.cmpi slt, %635, %0 : vector<8x1xi32>
    %637 = vector.broadcast %566 : i32 to vector<8x1xi32>
    %638 = arith.cmpi slt, %637, %0 : vector<8x1xi32>
    %cst_192 = arith.constant 0.000000e+00 : f32
    %639 = vector.shape_cast %636 : vector<8x1xi1> to vector<8x1xi1>
    %640 = vector.broadcast %639 : vector<8x1xi1> to vector<8x16xi1>
    %641 = vector.broadcast %cst_192 : f32 to vector<8x16xf32>
    %642 = arith.select %640, %606, %641 : vector<8x16xi1>, vector<8x16xf32>
    %643 = arith.index_cast %c5_i32 : i32 to index
    %c0_193 = arith.constant 0 : index
    %c0_194 = arith.constant 0 : index
    %644 = vector.load %arg16[%643, %c0_193, %c0_194] : memref<8x8x32xf32, #tpu.memory_space<vmem>>, vector<1x8x16xf32>
    %645 = vector.shape_cast %644 : vector<1x8x16xf32> to vector<8x16xf32>
    %646 = vector.shape_cast %642 : vector<8x16xf32> to vector<1x8x16xf32>
    tpu.vector_store %arg16[%643, %c0_193, %c0_194], %646 {strides = array<i32>} : memref<8x8x32xf32, #tpu.memory_space<vmem>>, vector<1x8x16xf32>,
    %cst_195 = arith.constant 0.000000e+00 : f32
    %647 = vector.shape_cast %638 : vector<8x1xi1> to vector<8x1xi1>
    %648 = vector.broadcast %647 : vector<8x1xi1> to vector<8x16xi1>
    %649 = vector.broadcast %cst_195 : f32 to vector<8x16xf32>
    %650 = arith.select %648, %634, %649 : vector<8x16xi1>, vector<8x16xf32>
    %651 = arith.index_cast %566 : i32 to index
    %c0_196 = arith.constant 0 : index
    %c16_197 = arith.constant 16 : index
    %652 = vector.load %arg16[%651, %c0_196, %c16_197] : memref<8x8x32xf32, #tpu.memory_space<vmem>>, vector<1x8x16xf32>
    %653 = vector.shape_cast %652 : vector<1x8x16xf32> to vector<8x16xf32>
    %654 = vector.shape_cast %650 : vector<8x16xf32> to vector<1x8x16xf32>
    tpu.vector_store %arg16[%651, %c0_196, %c16_197], %654 {strides = array<i32>} : memref<8x8x32xf32, #tpu.memory_space<vmem>>, vector<1x8x16xf32>,
    %655 = vector.extract_strided_slice %567 {offsets = [0, 0], sizes = [8, 16], strides = [1, 1]} : vector<8x32xf32> to vector<8x16xf32>
    %656 = vector.shape_cast %636 : vector<8x1xi1> to vector<8x1xi1>
    %657 = vector.broadcast %656 : vector<8x1xi1> to vector<8x16xi1>
    %658 = arith.select %657, %606, %655 : vector<8x16xi1>, vector<8x16xf32>
    %c0_198 = arith.constant 0 : index
    %c0_199 = arith.constant 0 : index
    %659 = vector.load %arg18[%c0_198, %c0_199] : memref<8x32xf32, #tpu.memory_space<vmem>>, vector<8x16xf32>
    tpu.vector_store %arg18[%c0_198, %c0_199], %658 {strides = array<i32>} : memref<8x32xf32, #tpu.memory_space<vmem>>, vector<8x16xf32>,
    %660 = vector.extract_strided_slice %567 {offsets = [0, 16], sizes = [8, 16], strides = [1, 1]} : vector<8x32xf32> to vector<8x16xf32>
    %661 = vector.shape_cast %638 : vector<8x1xi1> to vector<8x1xi1>
    %662 = vector.broadcast %661 : vector<8x1xi1> to vector<8x16xi1>
    %663 = arith.select %662, %634, %660 : vector<8x16xi1>, vector<8x16xf32>
    %c0_200 = arith.constant 0 : index
    %c16_201 = arith.constant 16 : index
    %664 = vector.load %arg18[%c0_200, %c16_201] : memref<8x32xf32, #tpu.memory_space<vmem>>, vector<8x16xf32>
    tpu.vector_store %arg18[%c0_200, %c16_201], %663 {strides = array<i32>} : memref<8x32xf32, #tpu.memory_space<vmem>>, vector<8x16xf32>,
    %665 = vector.extract_strided_slice %568 {offsets = [0, 0], sizes = [8, 16], strides = [1, 1]} : vector<8x32xf32> to vector<8x16xf32>
    %666 = vector.shape_cast %636 : vector<8x1xi1> to vector<8x1xi1>
    %667 = vector.broadcast %666 : vector<8x1xi1> to vector<8x16xi1>
    %668 = arith.select %667, %604, %665 : vector<8x16xi1>, vector<8x16xf32>
    %c0_202 = arith.constant 0 : index
    %c0_203 = arith.constant 0 : index
    %669 = vector.load %arg19[%c0_202, %c0_203] : memref<8x32xf32, #tpu.memory_space<vmem>>, vector<8x16xf32>
    tpu.vector_store %arg19[%c0_202, %c0_203], %668 {strides = array<i32>} : memref<8x32xf32, #tpu.memory_space<vmem>>, vector<8x16xf32>,
    %670 = vector.extract_strided_slice %568 {offsets = [0, 16], sizes = [8, 16], strides = [1, 1]} : vector<8x32xf32> to vector<8x16xf32>
    %671 = vector.shape_cast %638 : vector<8x1xi1> to vector<8x1xi1>
    %672 = vector.broadcast %671 : vector<8x1xi1> to vector<8x16xi1>
    %673 = arith.select %672, %632, %670 : vector<8x16xi1>, vector<8x16xf32>
    %c0_204 = arith.constant 0 : index
    %c16_205 = arith.constant 16 : index
    %674 = vector.load %arg19[%c0_204, %c16_205] : memref<8x32xf32, #tpu.memory_space<vmem>>, vector<8x16xf32>
    tpu.vector_store %arg19[%c0_204, %c16_205], %673 {strides = array<i32>} : memref<8x32xf32, #tpu.memory_space<vmem>>, vector<8x16xf32>,
    %c6_i32 = arith.constant 6 : i32
    %c7_i32_206 = arith.constant 7 : i32
    %675 = arith.subi %c7_i32_206, %c6_i32 : i32
    %c0_207 = arith.constant 0 : index
    %c0_208 = arith.constant 0 : index
    %676 = vector.load %arg18[%c0_207, %c0_208] : memref<8x32xf32, #tpu.memory_space<vmem>>, vector<8x32xf32>
    %c0_209 = arith.constant 0 : index
    %c0_210 = arith.constant 0 : index
    %677 = vector.load %arg19[%c0_209, %c0_210] : memref<8x32xf32, #tpu.memory_space<vmem>>, vector<8x32xf32>
    %678 = arith.truncf %676 : vector<8x32xf32> to vector<8x32xbf16>
    %cst_211 = arith.constant dense<0.000000e+00> : vector<8x128xf32>
    %679 = tpu.matmul %678, %16, %cst_211 {dimension_numbers = #tpu.dot_dimension_numbers<[1], [0], [0], [1], [0, 0, 1, 1], [], []>} : vector<8x32xbf16>, vector<32x128xbf16>, vector<8x128xf32> -> vector<8x128xf32>
    %680 = arith.index_cast %c6_i32 : i32 to index
    %c0_212 = arith.constant 0 : index
    %c0_213 = arith.constant 0 : index
    %681 = vector.load %arg15[%680, %c0_212, %c0_213] : memref<8x8x128xbf16, #tpu.memory_space<vmem>>, vector<1x8x64xbf16>
    %682 = vector.shape_cast %681 : vector<1x8x64xbf16> to vector<8x64xbf16>
    %683 = arith.extf %682 : vector<8x64xbf16> to vector<8x64xf32>
    %684 = arith.index_cast %675 : i32 to index
    %c0_214 = arith.constant 0 : index
    %c64_215 = arith.constant 64 : index
    %685 = vector.load %arg15[%684, %c0_214, %c64_215] : memref<8x8x128xbf16, #tpu.memory_space<vmem>>, vector<1x8x64xbf16>
    %686 = vector.shape_cast %685 : vector<1x8x64xbf16> to vector<8x64xbf16>
    %687 = arith.extf %686 : vector<8x64xbf16> to vector<8x64xf32>
    %688 = vector.extract_strided_slice %679 {offsets = [0, 0], sizes = [8, 64], strides = [1, 1]} : vector<8x128xf32> to vector<8x64xf32>
    %689 = arith.addf %683, %688 : vector<8x64xf32>
    %690 = vector.extract_strided_slice %677 {offsets = [0, 0], sizes = [8, 16], strides = [1, 1]} : vector<8x32xf32> to vector<8x16xf32>
    %691 = vector.extract_strided_slice %689 {offsets = [0, 0], sizes = [8, 16], strides = [1, 1]} : vector<8x64xf32> to vector<8x16xf32>
    %692 = arith.negf %691 : vector<8x16xf32>
    %693 = math.exp %692 : vector<8x16xf32>
    %cst_216 = arith.constant 1.000000e+00 : f32
    %694 = vector.broadcast %cst_216 : f32 to vector<8x16xf32>
    %695 = arith.addf %694, %693 : vector<8x16xf32>
    %696 = arith.divf %694, %695 : vector<8x16xf32>
    %697 = vector.extract_strided_slice %689 {offsets = [0, 16], sizes = [8, 16], strides = [1, 1]} : vector<8x64xf32> to vector<8x16xf32>
    %698 = arith.negf %697 : vector<8x16xf32>
    %699 = math.exp %698 : vector<8x16xf32>
    %cst_217 = arith.constant 1.000000e+00 : f32
    %700 = vector.broadcast %cst_217 : f32 to vector<8x16xf32>
    %701 = arith.addf %700, %699 : vector<8x16xf32>
    %702 = arith.divf %700, %701 : vector<8x16xf32>
    %703 = vector.extract_strided_slice %689 {offsets = [0, 32], sizes = [8, 16], strides = [1, 1]} : vector<8x64xf32> to vector<8x16xf32>
    %704 = math.tanh %703 : vector<8x16xf32>
    %705 = vector.extract_strided_slice %689 {offsets = [0, 48], sizes = [8, 16], strides = [1, 1]} : vector<8x64xf32> to vector<8x16xf32>
    %706 = arith.negf %705 : vector<8x16xf32>
    %707 = math.exp %706 : vector<8x16xf32>
    %cst_218 = arith.constant 1.000000e+00 : f32
    %708 = vector.broadcast %cst_218 : f32 to vector<8x16xf32>
    %709 = arith.addf %708, %707 : vector<8x16xf32>
    %710 = arith.divf %708, %709 : vector<8x16xf32>
    %711 = arith.mulf %702, %690 : vector<8x16xf32>
    %712 = arith.mulf %696, %704 : vector<8x16xf32>
    %713 = arith.addf %711, %712 : vector<8x16xf32>
    %714 = math.tanh %713 : vector<8x16xf32>
    %715 = arith.mulf %710, %714 : vector<8x16xf32>
    %716 = vector.extract_strided_slice %679 {offsets = [0, 64], sizes = [8, 64], strides = [1, 1]} : vector<8x128xf32> to vector<8x64xf32>
    %717 = arith.addf %687, %716 : vector<8x64xf32>
    %718 = vector.extract_strided_slice %677 {offsets = [0, 16], sizes = [8, 16], strides = [1, 1]} : vector<8x32xf32> to vector<8x16xf32>
    %719 = vector.extract_strided_slice %717 {offsets = [0, 0], sizes = [8, 16], strides = [1, 1]} : vector<8x64xf32> to vector<8x16xf32>
    %720 = arith.negf %719 : vector<8x16xf32>
    %721 = math.exp %720 : vector<8x16xf32>
    %cst_219 = arith.constant 1.000000e+00 : f32
    %722 = vector.broadcast %cst_219 : f32 to vector<8x16xf32>
    %723 = arith.addf %722, %721 : vector<8x16xf32>
    %724 = arith.divf %722, %723 : vector<8x16xf32>
    %725 = vector.extract_strided_slice %717 {offsets = [0, 16], sizes = [8, 16], strides = [1, 1]} : vector<8x64xf32> to vector<8x16xf32>
    %726 = arith.negf %725 : vector<8x16xf32>
    %727 = math.exp %726 : vector<8x16xf32>
    %cst_220 = arith.constant 1.000000e+00 : f32
    %728 = vector.broadcast %cst_220 : f32 to vector<8x16xf32>
    %729 = arith.addf %728, %727 : vector<8x16xf32>
    %730 = arith.divf %728, %729 : vector<8x16xf32>
    %731 = vector.extract_strided_slice %717 {offsets = [0, 32], sizes = [8, 16], strides = [1, 1]} : vector<8x64xf32> to vector<8x16xf32>
    %732 = math.tanh %731 : vector<8x16xf32>
    %733 = vector.extract_strided_slice %717 {offsets = [0, 48], sizes = [8, 16], strides = [1, 1]} : vector<8x64xf32> to vector<8x16xf32>
    %734 = arith.negf %733 : vector<8x16xf32>
    %735 = math.exp %734 : vector<8x16xf32>
    %cst_221 = arith.constant 1.000000e+00 : f32
    %736 = vector.broadcast %cst_221 : f32 to vector<8x16xf32>
    %737 = arith.addf %736, %735 : vector<8x16xf32>
    %738 = arith.divf %736, %737 : vector<8x16xf32>
    %739 = arith.mulf %730, %718 : vector<8x16xf32>
    %740 = arith.mulf %724, %732 : vector<8x16xf32>
    %741 = arith.addf %739, %740 : vector<8x16xf32>
    %742 = math.tanh %741 : vector<8x16xf32>
    %743 = arith.mulf %738, %742 : vector<8x16xf32>
    %744 = vector.broadcast %c6_i32 : i32 to vector<8x1xi32>
    %745 = arith.cmpi slt, %744, %0 : vector<8x1xi32>
    %746 = vector.broadcast %675 : i32 to vector<8x1xi32>
    %747 = arith.cmpi slt, %746, %0 : vector<8x1xi32>
    %cst_222 = arith.constant 0.000000e+00 : f32
    %748 = vector.shape_cast %745 : vector<8x1xi1> to vector<8x1xi1>
    %749 = vector.broadcast %748 : vector<8x1xi1> to vector<8x16xi1>
    %750 = vector.broadcast %cst_222 : f32 to vector<8x16xf32>
    %751 = arith.select %749, %715, %750 : vector<8x16xi1>, vector<8x16xf32>
    %752 = arith.index_cast %c6_i32 : i32 to index
    %c0_223 = arith.constant 0 : index
    %c0_224 = arith.constant 0 : index
    %753 = vector.load %arg16[%752, %c0_223, %c0_224] : memref<8x8x32xf32, #tpu.memory_space<vmem>>, vector<1x8x16xf32>
    %754 = vector.shape_cast %753 : vector<1x8x16xf32> to vector<8x16xf32>
    %755 = vector.shape_cast %751 : vector<8x16xf32> to vector<1x8x16xf32>
    tpu.vector_store %arg16[%752, %c0_223, %c0_224], %755 {strides = array<i32>} : memref<8x8x32xf32, #tpu.memory_space<vmem>>, vector<1x8x16xf32>,
    %cst_225 = arith.constant 0.000000e+00 : f32
    %756 = vector.shape_cast %747 : vector<8x1xi1> to vector<8x1xi1>
    %757 = vector.broadcast %756 : vector<8x1xi1> to vector<8x16xi1>
    %758 = vector.broadcast %cst_225 : f32 to vector<8x16xf32>
    %759 = arith.select %757, %743, %758 : vector<8x16xi1>, vector<8x16xf32>
    %760 = arith.index_cast %675 : i32 to index
    %c0_226 = arith.constant 0 : index
    %c16_227 = arith.constant 16 : index
    %761 = vector.load %arg16[%760, %c0_226, %c16_227] : memref<8x8x32xf32, #tpu.memory_space<vmem>>, vector<1x8x16xf32>
    %762 = vector.shape_cast %761 : vector<1x8x16xf32> to vector<8x16xf32>
    %763 = vector.shape_cast %759 : vector<8x16xf32> to vector<1x8x16xf32>
    tpu.vector_store %arg16[%760, %c0_226, %c16_227], %763 {strides = array<i32>} : memref<8x8x32xf32, #tpu.memory_space<vmem>>, vector<1x8x16xf32>,
    %764 = vector.extract_strided_slice %676 {offsets = [0, 0], sizes = [8, 16], strides = [1, 1]} : vector<8x32xf32> to vector<8x16xf32>
    %765 = vector.shape_cast %745 : vector<8x1xi1> to vector<8x1xi1>
    %766 = vector.broadcast %765 : vector<8x1xi1> to vector<8x16xi1>
    %767 = arith.select %766, %715, %764 : vector<8x16xi1>, vector<8x16xf32>
    %c0_228 = arith.constant 0 : index
    %c0_229 = arith.constant 0 : index
    %768 = vector.load %arg18[%c0_228, %c0_229] : memref<8x32xf32, #tpu.memory_space<vmem>>, vector<8x16xf32>
    tpu.vector_store %arg18[%c0_228, %c0_229], %767 {strides = array<i32>} : memref<8x32xf32, #tpu.memory_space<vmem>>, vector<8x16xf32>,
    %769 = vector.extract_strided_slice %676 {offsets = [0, 16], sizes = [8, 16], strides = [1, 1]} : vector<8x32xf32> to vector<8x16xf32>
    %770 = vector.shape_cast %747 : vector<8x1xi1> to vector<8x1xi1>
    %771 = vector.broadcast %770 : vector<8x1xi1> to vector<8x16xi1>
    %772 = arith.select %771, %743, %769 : vector<8x16xi1>, vector<8x16xf32>
    %c0_230 = arith.constant 0 : index
    %c16_231 = arith.constant 16 : index
    %773 = vector.load %arg18[%c0_230, %c16_231] : memref<8x32xf32, #tpu.memory_space<vmem>>, vector<8x16xf32>
    tpu.vector_store %arg18[%c0_230, %c16_231], %772 {strides = array<i32>} : memref<8x32xf32, #tpu.memory_space<vmem>>, vector<8x16xf32>,
    %774 = vector.extract_strided_slice %677 {offsets = [0, 0], sizes = [8, 16], strides = [1, 1]} : vector<8x32xf32> to vector<8x16xf32>
    %775 = vector.shape_cast %745 : vector<8x1xi1> to vector<8x1xi1>
    %776 = vector.broadcast %775 : vector<8x1xi1> to vector<8x16xi1>
    %777 = arith.select %776, %713, %774 : vector<8x16xi1>, vector<8x16xf32>
    %c0_232 = arith.constant 0 : index
    %c0_233 = arith.constant 0 : index
    %778 = vector.load %arg19[%c0_232, %c0_233] : memref<8x32xf32, #tpu.memory_space<vmem>>, vector<8x16xf32>
    tpu.vector_store %arg19[%c0_232, %c0_233], %777 {strides = array<i32>} : memref<8x32xf32, #tpu.memory_space<vmem>>, vector<8x16xf32>,
    %779 = vector.extract_strided_slice %677 {offsets = [0, 16], sizes = [8, 16], strides = [1, 1]} : vector<8x32xf32> to vector<8x16xf32>
    %780 = vector.shape_cast %747 : vector<8x1xi1> to vector<8x1xi1>
    %781 = vector.broadcast %780 : vector<8x1xi1> to vector<8x16xi1>
    %782 = arith.select %781, %741, %779 : vector<8x16xi1>, vector<8x16xf32>
    %c0_234 = arith.constant 0 : index
    %c16_235 = arith.constant 16 : index
    %783 = vector.load %arg19[%c0_234, %c16_235] : memref<8x32xf32, #tpu.memory_space<vmem>>, vector<8x16xf32>
    tpu.vector_store %arg19[%c0_234, %c16_235], %782 {strides = array<i32>} : memref<8x32xf32, #tpu.memory_space<vmem>>, vector<8x16xf32>,
    %c7_i32_236 = arith.constant 7 : i32
    %c7_i32_237 = arith.constant 7 : i32
    %784 = arith.subi %c7_i32_237, %c7_i32_236 : i32
    %c0_238 = arith.constant 0 : index
    %c0_239 = arith.constant 0 : index
    %785 = vector.load %arg18[%c0_238, %c0_239] : memref<8x32xf32, #tpu.memory_space<vmem>>, vector<8x32xf32>
    %c0_240 = arith.constant 0 : index
    %c0_241 = arith.constant 0 : index
    %786 = vector.load %arg19[%c0_240, %c0_241] : memref<8x32xf32, #tpu.memory_space<vmem>>, vector<8x32xf32>
    %787 = arith.truncf %785 : vector<8x32xf32> to vector<8x32xbf16>
    %cst_242 = arith.constant dense<0.000000e+00> : vector<8x128xf32>
    %788 = tpu.matmul %787, %16, %cst_242 {dimension_numbers = #tpu.dot_dimension_numbers<[1], [0], [0], [1], [0, 0, 1, 1], [], []>} : vector<8x32xbf16>, vector<32x128xbf16>, vector<8x128xf32> -> vector<8x128xf32>
    %789 = arith.index_cast %c7_i32_236 : i32 to index
    %c0_243 = arith.constant 0 : index
    %c0_244 = arith.constant 0 : index
    %790 = vector.load %arg15[%789, %c0_243, %c0_244] : memref<8x8x128xbf16, #tpu.memory_space<vmem>>, vector<1x8x64xbf16>
    %791 = vector.shape_cast %790 : vector<1x8x64xbf16> to vector<8x64xbf16>
    %792 = arith.extf %791 : vector<8x64xbf16> to vector<8x64xf32>
    %793 = arith.index_cast %784 : i32 to index
    %c0_245 = arith.constant 0 : index
    %c64_246 = arith.constant 64 : index
    %794 = vector.load %arg15[%793, %c0_245, %c64_246] : memref<8x8x128xbf16, #tpu.memory_space<vmem>>, vector<1x8x64xbf16>
    %795 = vector.shape_cast %794 : vector<1x8x64xbf16> to vector<8x64xbf16>
    %796 = arith.extf %795 : vector<8x64xbf16> to vector<8x64xf32>
    %797 = vector.extract_strided_slice %788 {offsets = [0, 0], sizes = [8, 64], strides = [1, 1]} : vector<8x128xf32> to vector<8x64xf32>
    %798 = arith.addf %792, %797 : vector<8x64xf32>
    %799 = vector.extract_strided_slice %786 {offsets = [0, 0], sizes = [8, 16], strides = [1, 1]} : vector<8x32xf32> to vector<8x16xf32>
    %800 = vector.extract_strided_slice %798 {offsets = [0, 0], sizes = [8, 16], strides = [1, 1]} : vector<8x64xf32> to vector<8x16xf32>
    %801 = arith.negf %800 : vector<8x16xf32>
    %802 = math.exp %801 : vector<8x16xf32>
    %cst_247 = arith.constant 1.000000e+00 : f32
    %803 = vector.broadcast %cst_247 : f32 to vector<8x16xf32>
    %804 = arith.addf %803, %802 : vector<8x16xf32>
    %805 = arith.divf %803, %804 : vector<8x16xf32>
    %806 = vector.extract_strided_slice %798 {offsets = [0, 16], sizes = [8, 16], strides = [1, 1]} : vector<8x64xf32> to vector<8x16xf32>
    %807 = arith.negf %806 : vector<8x16xf32>
    %808 = math.exp %807 : vector<8x16xf32>
    %cst_248 = arith.constant 1.000000e+00 : f32
    %809 = vector.broadcast %cst_248 : f32 to vector<8x16xf32>
    %810 = arith.addf %809, %808 : vector<8x16xf32>
    %811 = arith.divf %809, %810 : vector<8x16xf32>
    %812 = vector.extract_strided_slice %798 {offsets = [0, 32], sizes = [8, 16], strides = [1, 1]} : vector<8x64xf32> to vector<8x16xf32>
    %813 = math.tanh %812 : vector<8x16xf32>
    %814 = vector.extract_strided_slice %798 {offsets = [0, 48], sizes = [8, 16], strides = [1, 1]} : vector<8x64xf32> to vector<8x16xf32>
    %815 = arith.negf %814 : vector<8x16xf32>
    %816 = math.exp %815 : vector<8x16xf32>
    %cst_249 = arith.constant 1.000000e+00 : f32
    %817 = vector.broadcast %cst_249 : f32 to vector<8x16xf32>
    %818 = arith.addf %817, %816 : vector<8x16xf32>
    %819 = arith.divf %817, %818 : vector<8x16xf32>
    %820 = arith.mulf %811, %799 : vector<8x16xf32>
    %821 = arith.mulf %805, %813 : vector<8x16xf32>
    %822 = arith.addf %820, %821 : vector<8x16xf32>
    %823 = math.tanh %822 : vector<8x16xf32>
    %824 = arith.mulf %819, %823 : vector<8x16xf32>
    %825 = vector.extract_strided_slice %788 {offsets = [0, 64], sizes = [8, 64], strides = [1, 1]} : vector<8x128xf32> to vector<8x64xf32>
    %826 = arith.addf %796, %825 : vector<8x64xf32>
    %827 = vector.extract_strided_slice %786 {offsets = [0, 16], sizes = [8, 16], strides = [1, 1]} : vector<8x32xf32> to vector<8x16xf32>
    %828 = vector.extract_strided_slice %826 {offsets = [0, 0], sizes = [8, 16], strides = [1, 1]} : vector<8x64xf32> to vector<8x16xf32>
    %829 = arith.negf %828 : vector<8x16xf32>
    %830 = math.exp %829 : vector<8x16xf32>
    %cst_250 = arith.constant 1.000000e+00 : f32
    %831 = vector.broadcast %cst_250 : f32 to vector<8x16xf32>
    %832 = arith.addf %831, %830 : vector<8x16xf32>
    %833 = arith.divf %831, %832 : vector<8x16xf32>
    %834 = vector.extract_strided_slice %826 {offsets = [0, 16], sizes = [8, 16], strides = [1, 1]} : vector<8x64xf32> to vector<8x16xf32>
    %835 = arith.negf %834 : vector<8x16xf32>
    %836 = math.exp %835 : vector<8x16xf32>
    %cst_251 = arith.constant 1.000000e+00 : f32
    %837 = vector.broadcast %cst_251 : f32 to vector<8x16xf32>
    %838 = arith.addf %837, %836 : vector<8x16xf32>
    %839 = arith.divf %837, %838 : vector<8x16xf32>
    %840 = vector.extract_strided_slice %826 {offsets = [0, 32], sizes = [8, 16], strides = [1, 1]} : vector<8x64xf32> to vector<8x16xf32>
    %841 = math.tanh %840 : vector<8x16xf32>
    %842 = vector.extract_strided_slice %826 {offsets = [0, 48], sizes = [8, 16], strides = [1, 1]} : vector<8x64xf32> to vector<8x16xf32>
    %843 = arith.negf %842 : vector<8x16xf32>
    %844 = math.exp %843 : vector<8x16xf32>
    %cst_252 = arith.constant 1.000000e+00 : f32
    %845 = vector.broadcast %cst_252 : f32 to vector<8x16xf32>
    %846 = arith.addf %845, %844 : vector<8x16xf32>
    %847 = arith.divf %845, %846 : vector<8x16xf32>
    %848 = arith.mulf %839, %827 : vector<8x16xf32>
    %849 = arith.mulf %833, %841 : vector<8x16xf32>
    %850 = arith.addf %848, %849 : vector<8x16xf32>
    %851 = math.tanh %850 : vector<8x16xf32>
    %852 = arith.mulf %847, %851 : vector<8x16xf32>
    %853 = vector.broadcast %c7_i32_236 : i32 to vector<8x1xi32>
    %854 = arith.cmpi slt, %853, %0 : vector<8x1xi32>
    %855 = vector.broadcast %784 : i32 to vector<8x1xi32>
    %856 = arith.cmpi slt, %855, %0 : vector<8x1xi32>
    %cst_253 = arith.constant 0.000000e+00 : f32
    %857 = vector.shape_cast %854 : vector<8x1xi1> to vector<8x1xi1>
    %858 = vector.broadcast %857 : vector<8x1xi1> to vector<8x16xi1>
    %859 = vector.broadcast %cst_253 : f32 to vector<8x16xf32>
    %860 = arith.select %858, %824, %859 : vector<8x16xi1>, vector<8x16xf32>
    %861 = arith.index_cast %c7_i32_236 : i32 to index
    %c0_254 = arith.constant 0 : index
    %c0_255 = arith.constant 0 : index
    %862 = vector.load %arg16[%861, %c0_254, %c0_255] : memref<8x8x32xf32, #tpu.memory_space<vmem>>, vector<1x8x16xf32>
    %863 = vector.shape_cast %862 : vector<1x8x16xf32> to vector<8x16xf32>
    %864 = vector.shape_cast %860 : vector<8x16xf32> to vector<1x8x16xf32>
    tpu.vector_store %arg16[%861, %c0_254, %c0_255], %864 {strides = array<i32>} : memref<8x8x32xf32, #tpu.memory_space<vmem>>, vector<1x8x16xf32>,
    %cst_256 = arith.constant 0.000000e+00 : f32
    %865 = vector.shape_cast %856 : vector<8x1xi1> to vector<8x1xi1>
    %866 = vector.broadcast %865 : vector<8x1xi1> to vector<8x16xi1>
    %867 = vector.broadcast %cst_256 : f32 to vector<8x16xf32>
    %868 = arith.select %866, %852, %867 : vector<8x16xi1>, vector<8x16xf32>
    %869 = arith.index_cast %784 : i32 to index
    %c0_257 = arith.constant 0 : index
    %c16_258 = arith.constant 16 : index
    %870 = vector.load %arg16[%869, %c0_257, %c16_258] : memref<8x8x32xf32, #tpu.memory_space<vmem>>, vector<1x8x16xf32>
    %871 = vector.shape_cast %870 : vector<1x8x16xf32> to vector<8x16xf32>
    %872 = vector.shape_cast %868 : vector<8x16xf32> to vector<1x8x16xf32>
    tpu.vector_store %arg16[%869, %c0_257, %c16_258], %872 {strides = array<i32>} : memref<8x8x32xf32, #tpu.memory_space<vmem>>, vector<1x8x16xf32>,
    %873 = vector.extract_strided_slice %785 {offsets = [0, 0], sizes = [8, 16], strides = [1, 1]} : vector<8x32xf32> to vector<8x16xf32>
    %874 = vector.shape_cast %854 : vector<8x1xi1> to vector<8x1xi1>
    %875 = vector.broadcast %874 : vector<8x1xi1> to vector<8x16xi1>
    %876 = arith.select %875, %824, %873 : vector<8x16xi1>, vector<8x16xf32>
    %c0_259 = arith.constant 0 : index
    %c0_260 = arith.constant 0 : index
    %877 = vector.load %arg18[%c0_259, %c0_260] : memref<8x32xf32, #tpu.memory_space<vmem>>, vector<8x16xf32>
    tpu.vector_store %arg18[%c0_259, %c0_260], %876 {strides = array<i32>} : memref<8x32xf32, #tpu.memory_space<vmem>>, vector<8x16xf32>,
    %878 = vector.extract_strided_slice %785 {offsets = [0, 16], sizes = [8, 16], strides = [1, 1]} : vector<8x32xf32> to vector<8x16xf32>
    %879 = vector.shape_cast %856 : vector<8x1xi1> to vector<8x1xi1>
    %880 = vector.broadcast %879 : vector<8x1xi1> to vector<8x16xi1>
    %881 = arith.select %880, %852, %878 : vector<8x16xi1>, vector<8x16xf32>
    %c0_261 = arith.constant 0 : index
    %c16_262 = arith.constant 16 : index
    %882 = vector.load %arg18[%c0_261, %c16_262] : memref<8x32xf32, #tpu.memory_space<vmem>>, vector<8x16xf32>
    tpu.vector_store %arg18[%c0_261, %c16_262], %881 {strides = array<i32>} : memref<8x32xf32, #tpu.memory_space<vmem>>, vector<8x16xf32>,
    %883 = vector.extract_strided_slice %786 {offsets = [0, 0], sizes = [8, 16], strides = [1, 1]} : vector<8x32xf32> to vector<8x16xf32>
    %884 = vector.shape_cast %854 : vector<8x1xi1> to vector<8x1xi1>
    %885 = vector.broadcast %884 : vector<8x1xi1> to vector<8x16xi1>
    %886 = arith.select %885, %822, %883 : vector<8x16xi1>, vector<8x16xf32>
    %c0_263 = arith.constant 0 : index
    %c0_264 = arith.constant 0 : index
    %887 = vector.load %arg19[%c0_263, %c0_264] : memref<8x32xf32, #tpu.memory_space<vmem>>, vector<8x16xf32>
    tpu.vector_store %arg19[%c0_263, %c0_264], %886 {strides = array<i32>} : memref<8x32xf32, #tpu.memory_space<vmem>>, vector<8x16xf32>,
    %888 = vector.extract_strided_slice %786 {offsets = [0, 16], sizes = [8, 16], strides = [1, 1]} : vector<8x32xf32> to vector<8x16xf32>
    %889 = vector.shape_cast %856 : vector<8x1xi1> to vector<8x1xi1>
    %890 = vector.broadcast %889 : vector<8x1xi1> to vector<8x16xi1>
    %891 = arith.select %890, %850, %888 : vector<8x16xi1>, vector<8x16xf32>
    %c0_265 = arith.constant 0 : index
    %c16_266 = arith.constant 16 : index
    %892 = vector.load %arg19[%c0_265, %c16_266] : memref<8x32xf32, #tpu.memory_space<vmem>>, vector<8x16xf32>
    tpu.vector_store %arg19[%c0_265, %c16_266], %891 {strides = array<i32>} : memref<8x32xf32, #tpu.memory_space<vmem>>, vector<8x16xf32>,
    %c8_i32 = arith.constant 8 : i32
    %c0_267 = arith.constant 0 : index
    %c0_268 = arith.constant 0 : index
    %c0_269 = arith.constant 0 : index
    %893 = vector.load %arg16[%c0_267, %c0_268, %c0_269] : memref<8x8x32xf32, #tpu.memory_space<vmem>>, vector<8x8x32xf32>
    %894 = vector.shape_cast %893 : vector<8x8x32xf32> to vector<64x32xf32>
    %895 = arith.truncf %894 : vector<64x32xf32> to vector<64x32xbf16>
    %c0_270 = arith.constant 0 : index
    %c0_271 = arith.constant 0 : index
    %896 = vector.load %arg8[%c0_270, %c0_271] : memref<32x128xbf16, #tpu.memory_space<vmem>>, vector<32x128xbf16>
    %cst_272 = arith.constant dense<0.000000e+00> : vector<64x128xf32>
    %897 = tpu.matmul %895, %896, %cst_272 {dimension_numbers = #tpu.dot_dimension_numbers<[1], [0], [0], [1], [0, 0, 1, 1], [], []>} : vector<64x32xbf16>, vector<32x128xbf16>, vector<64x128xf32> -> vector<64x128xf32>
    %c0_273 = arith.constant 0 : index
    %c0_274 = arith.constant 0 : index
    %898 = vector.load %arg9[%c0_273, %c0_274] : memref<1x128xf32, #tpu.memory_space<vmem>>, vector<1x128xf32>
    %899 = vector.broadcast %898 : vector<1x128xf32> to vector<64x128xf32>
    %900 = arith.addf %897, %899 : vector<64x128xf32>
    %901 = vector.shape_cast %900 : vector<64x128xf32> to vector<8x8x128xf32>
    %c0_275 = arith.constant 0 : index
    %c0_276 = arith.constant 0 : index
    %c0_277 = arith.constant 0 : index
    %902 = vector.load %arg17[%c0_275, %c0_276, %c0_277] : memref<8x8x128xf32, #tpu.memory_space<vmem>>, vector<8x8x128xf32>
    tpu.vector_store %arg17[%c0_275, %c0_276, %c0_277], %901 {strides = array<i32>} : memref<8x8x128xf32, #tpu.memory_space<vmem>>, vector<8x8x128xf32>,
    %903 = tpu.iota {dimensions = array<i32: 1>} : vector<8x128xi32>
    %c0_278 = arith.constant 0 : index
    %c0_279 = arith.constant 0 : index
    %c0_280 = arith.constant 0 : index
    %904 = vector.load %arg17[%c0_278, %c0_279, %c0_280] : memref<8x8x128xf32, #tpu.memory_space<vmem>>, vector<1x8x128xf32>
    %905 = vector.shape_cast %904 : vector<1x8x128xf32> to vector<8x128xf32>
    %c0_281 = arith.constant 0 : index
    %c0_282 = arith.constant 0 : index
    %c0_283 = arith.constant 0 : index
    %906 = vector.load %arg4[%c0_281, %c0_282, %c0_283] : memref<8x8x1xi32, #tpu.memory_space<vmem>>, vector<1x8x1xi32>
    %907 = vector.shape_cast %906 : vector<1x8x1xi32> to vector<8x1xi32>
    %908 = vector.broadcast %907 : vector<8x1xi32> to vector<8x128xi32>
    %909 = arith.cmpi eq, %908, %903 : vector<8x128xi32>
    %cst_284 = arith.constant 0.000000e+00 : f32
    %910 = vector.broadcast %cst_284 : f32 to vector<8x128xf32>
    %911 = arith.select %909, %905, %910 : vector<8x128xi1>, vector<8x128xf32>
    %cst_285 = arith.constant dense<0.000000e+00> : vector<8xf32>
    %912 = vector.multi_reduction <add>, %911, %cst_285 [1] : vector<8x128xf32> to vector<8xf32>
    %913 = vector.shape_cast %912 : vector<8xf32> to vector<8x1xf32>
    %c0_i32_286 = arith.constant 0 : i32
    %914 = vector.broadcast %c0_i32_286 : i32 to vector<8x1xi32>
    %915 = arith.cmpi sgt, %0, %914 : vector<8x1xi32>
    %cst_287 = arith.constant 0.000000e+00 : f32
    %916 = vector.broadcast %cst_287 : f32 to vector<8x1xf32>
    %917 = arith.select %915, %913, %916 : vector<8x1xi1>, vector<8x1xf32>
    %918 = vector.broadcast %2 : vector<1x128xf32> to vector<8x128xf32>
    %919 = arith.addf %918, %905 : vector<8x128xf32>
    %c1_i32_288 = arith.constant 1 : i32
    %920 = arith.index_cast %c1_i32_288 : i32 to index
    %c0_289 = arith.constant 0 : index
    %c0_290 = arith.constant 0 : index
    %921 = vector.load %arg17[%920, %c0_289, %c0_290] : memref<8x8x128xf32, #tpu.memory_space<vmem>>, vector<1x8x128xf32>
    %922 = vector.shape_cast %921 : vector<1x8x128xf32> to vector<8x128xf32>
    %923 = arith.index_cast %c1_i32_288 : i32 to index
    %c0_291 = arith.constant 0 : index
    %c0_292 = arith.constant 0 : index
    %924 = vector.load %arg4[%923, %c0_291, %c0_292] : memref<8x8x1xi32, #tpu.memory_space<vmem>>, vector<1x8x1xi32>
    %925 = vector.shape_cast %924 : vector<1x8x1xi32> to vector<8x1xi32>
    %926 = vector.broadcast %c1_i32_288 : i32 to vector<8x1xi32>
    %927 = arith.cmpi slt, %926, %0 : vector<8x1xi32>
    %928 = vector.broadcast %925 : vector<8x1xi32> to vector<8x128xi32>
    %929 = arith.cmpi eq, %928, %903 : vector<8x128xi32>
    %cst_293 = arith.constant 0.000000e+00 : f32
    %930 = vector.broadcast %cst_293 : f32 to vector<8x128xf32>
    %931 = arith.select %929, %922, %930 : vector<8x128xi1>, vector<8x128xf32>
    %cst_294 = arith.constant dense<0.000000e+00> : vector<8xf32>
    %932 = vector.multi_reduction <add>, %931, %cst_294 [1] : vector<8x128xf32> to vector<8xf32>
    %933 = vector.shape_cast %932 : vector<8xf32> to vector<8x1xf32>
    %cst_295 = arith.constant 0.000000e+00 : f32
    %934 = vector.broadcast %cst_295 : f32 to vector<8x1xf32>
    %935 = arith.select %927, %933, %934 : vector<8x1xi1>, vector<8x1xf32>
    %936 = arith.addf %917, %935 : vector<8x1xf32>
    %cst_296 = arith.constant dense<0xFF800000> : vector<8xf32>
    %937 = vector.multi_reduction <maximumf>, %919, %cst_296 [1] : vector<8x128xf32> to vector<8xf32>
    %938 = vector.shape_cast %937 : vector<8xf32> to vector<8x1xf32>
    %939 = vector.broadcast %938 : vector<8x1xf32> to vector<8x128xf32>
    %940 = arith.subf %919, %939 : vector<8x128xf32>
    %941 = math.exp %940 : vector<8x128xf32>
    %cst_297 = arith.constant dense<0.000000e+00> : vector<8x128xf32>
    %942 = tpu.matmul %941, %4, %cst_297 {dimension_numbers = #tpu.dot_dimension_numbers<[1], [0], [0], [1], [0, 0, 1, 1], [], []>} : vector<8x128xf32>, vector<128x128xf32>, vector<8x128xf32> -> vector<8x128xf32>
    %cst_298 = arith.constant 9.99999991E-38 : f32
    %943 = vector.broadcast %cst_298 : f32 to vector<8x128xf32>
    %944 = arith.maximumf %942, %943 : vector<8x128xf32>
    %945 = math.log %944 : vector<8x128xf32>
    %946 = vector.broadcast %938 : vector<8x1xf32> to vector<8x128xf32>
    %947 = arith.addf %945, %946 : vector<8x128xf32>
    %948 = vector.broadcast %5 : f32 to vector<8x128xf32>
    %949 = arith.addf %947, %948 : vector<8x128xf32>
    %950 = arith.addf %949, %922 : vector<8x128xf32>
    %951 = vector.shape_cast %927 : vector<8x1xi1> to vector<8x1xi1>
    %952 = vector.broadcast %951 : vector<8x1xi1> to vector<8x128xi1>
    %953 = arith.select %952, %950, %919 : vector<8x128xi1>, vector<8x128xf32>
    %c2_i32_299 = arith.constant 2 : i32
    %954 = arith.index_cast %c2_i32_299 : i32 to index
    %c0_300 = arith.constant 0 : index
    %c0_301 = arith.constant 0 : index
    %955 = vector.load %arg17[%954, %c0_300, %c0_301] : memref<8x8x128xf32, #tpu.memory_space<vmem>>, vector<1x8x128xf32>
    %956 = vector.shape_cast %955 : vector<1x8x128xf32> to vector<8x128xf32>
    %957 = arith.index_cast %c2_i32_299 : i32 to index
    %c0_302 = arith.constant 0 : index
    %c0_303 = arith.constant 0 : index
    %958 = vector.load %arg4[%957, %c0_302, %c0_303] : memref<8x8x1xi32, #tpu.memory_space<vmem>>, vector<1x8x1xi32>
    %959 = vector.shape_cast %958 : vector<1x8x1xi32> to vector<8x1xi32>
    %960 = vector.broadcast %c2_i32_299 : i32 to vector<8x1xi32>
    %961 = arith.cmpi slt, %960, %0 : vector<8x1xi32>
    %962 = vector.broadcast %959 : vector<8x1xi32> to vector<8x128xi32>
    %963 = arith.cmpi eq, %962, %903 : vector<8x128xi32>
    %cst_304 = arith.constant 0.000000e+00 : f32
    %964 = vector.broadcast %cst_304 : f32 to vector<8x128xf32>
    %965 = arith.select %963, %956, %964 : vector<8x128xi1>, vector<8x128xf32>
    %cst_305 = arith.constant dense<0.000000e+00> : vector<8xf32>
    %966 = vector.multi_reduction <add>, %965, %cst_305 [1] : vector<8x128xf32> to vector<8xf32>
    %967 = vector.shape_cast %966 : vector<8xf32> to vector<8x1xf32>
    %cst_306 = arith.constant 0.000000e+00 : f32
    %968 = vector.broadcast %cst_306 : f32 to vector<8x1xf32>
    %969 = arith.select %961, %967, %968 : vector<8x1xi1>, vector<8x1xf32>
    %970 = arith.addf %936, %969 : vector<8x1xf32>
    %cst_307 = arith.constant dense<0xFF800000> : vector<8xf32>
    %971 = vector.multi_reduction <maximumf>, %953, %cst_307 [1] : vector<8x128xf32> to vector<8xf32>
    %972 = vector.shape_cast %971 : vector<8xf32> to vector<8x1xf32>
    %973 = vector.broadcast %972 : vector<8x1xf32> to vector<8x128xf32>
    %974 = arith.subf %953, %973 : vector<8x128xf32>
    %975 = math.exp %974 : vector<8x128xf32>
    %cst_308 = arith.constant dense<0.000000e+00> : vector<8x128xf32>
    %976 = tpu.matmul %975, %4, %cst_308 {dimension_numbers = #tpu.dot_dimension_numbers<[1], [0], [0], [1], [0, 0, 1, 1], [], []>} : vector<8x128xf32>, vector<128x128xf32>, vector<8x128xf32> -> vector<8x128xf32>
    %cst_309 = arith.constant 9.99999991E-38 : f32
    %977 = vector.broadcast %cst_309 : f32 to vector<8x128xf32>
    %978 = arith.maximumf %976, %977 : vector<8x128xf32>
    %979 = math.log %978 : vector<8x128xf32>
    %980 = vector.broadcast %972 : vector<8x1xf32> to vector<8x128xf32>
    %981 = arith.addf %979, %980 : vector<8x128xf32>
    %982 = vector.broadcast %5 : f32 to vector<8x128xf32>
    %983 = arith.addf %981, %982 : vector<8x128xf32>
    %984 = arith.addf %983, %956 : vector<8x128xf32>
    %985 = vector.shape_cast %961 : vector<8x1xi1> to vector<8x1xi1>
    %986 = vector.broadcast %985 : vector<8x1xi1> to vector<8x128xi1>
    %987 = arith.select %986, %984, %953 : vector<8x128xi1>, vector<8x128xf32>
    %c3_i32_310 = arith.constant 3 : i32
    %988 = arith.index_cast %c3_i32_310 : i32 to index
    %c0_311 = arith.constant 0 : index
    %c0_312 = arith.constant 0 : index
    %989 = vector.load %arg17[%988, %c0_311, %c0_312] : memref<8x8x128xf32, #tpu.memory_space<vmem>>, vector<1x8x128xf32>
    %990 = vector.shape_cast %989 : vector<1x8x128xf32> to vector<8x128xf32>
    %991 = arith.index_cast %c3_i32_310 : i32 to index
    %c0_313 = arith.constant 0 : index
    %c0_314 = arith.constant 0 : index
    %992 = vector.load %arg4[%991, %c0_313, %c0_314] : memref<8x8x1xi32, #tpu.memory_space<vmem>>, vector<1x8x1xi32>
    %993 = vector.shape_cast %992 : vector<1x8x1xi32> to vector<8x1xi32>
    %994 = vector.broadcast %c3_i32_310 : i32 to vector<8x1xi32>
    %995 = arith.cmpi slt, %994, %0 : vector<8x1xi32>
    %996 = vector.broadcast %993 : vector<8x1xi32> to vector<8x128xi32>
    %997 = arith.cmpi eq, %996, %903 : vector<8x128xi32>
    %cst_315 = arith.constant 0.000000e+00 : f32
    %998 = vector.broadcast %cst_315 : f32 to vector<8x128xf32>
    %999 = arith.select %997, %990, %998 : vector<8x128xi1>, vector<8x128xf32>
    %cst_316 = arith.constant dense<0.000000e+00> : vector<8xf32>
    %1000 = vector.multi_reduction <add>, %999, %cst_316 [1] : vector<8x128xf32> to vector<8xf32>
    %1001 = vector.shape_cast %1000 : vector<8xf32> to vector<8x1xf32>
    %cst_317 = arith.constant 0.000000e+00 : f32
    %1002 = vector.broadcast %cst_317 : f32 to vector<8x1xf32>
    %1003 = arith.select %995, %1001, %1002 : vector<8x1xi1>, vector<8x1xf32>
    %1004 = arith.addf %970, %1003 : vector<8x1xf32>
    %cst_318 = arith.constant dense<0xFF800000> : vector<8xf32>
    %1005 = vector.multi_reduction <maximumf>, %987, %cst_318 [1] : vector<8x128xf32> to vector<8xf32>
    %1006 = vector.shape_cast %1005 : vector<8xf32> to vector<8x1xf32>
    %1007 = vector.broadcast %1006 : vector<8x1xf32> to vector<8x128xf32>
    %1008 = arith.subf %987, %1007 : vector<8x128xf32>
    %1009 = math.exp %1008 : vector<8x128xf32>
    %cst_319 = arith.constant dense<0.000000e+00> : vector<8x128xf32>
    %1010 = tpu.matmul %1009, %4, %cst_319 {dimension_numbers = #tpu.dot_dimension_numbers<[1], [0], [0], [1], [0, 0, 1, 1], [], []>} : vector<8x128xf32>, vector<128x128xf32>, vector<8x128xf32> -> vector<8x128xf32>
    %cst_320 = arith.constant 9.99999991E-38 : f32
    %1011 = vector.broadcast %cst_320 : f32 to vector<8x128xf32>
    %1012 = arith.maximumf %1010, %1011 : vector<8x128xf32>
    %1013 = math.log %1012 : vector<8x128xf32>
    %1014 = vector.broadcast %1006 : vector<8x1xf32> to vector<8x128xf32>
    %1015 = arith.addf %1013, %1014 : vector<8x128xf32>
    %1016 = vector.broadcast %5 : f32 to vector<8x128xf32>
    %1017 = arith.addf %1015, %1016 : vector<8x128xf32>
    %1018 = arith.addf %1017, %990 : vector<8x128xf32>
    %1019 = vector.shape_cast %995 : vector<8x1xi1> to vector<8x1xi1>
    %1020 = vector.broadcast %1019 : vector<8x1xi1> to vector<8x128xi1>
    %1021 = arith.select %1020, %1018, %987 : vector<8x128xi1>, vector<8x128xf32>
    %c4_i32_321 = arith.constant 4 : i32
    %1022 = arith.index_cast %c4_i32_321 : i32 to index
    %c0_322 = arith.constant 0 : index
    %c0_323 = arith.constant 0 : index
    %1023 = vector.load %arg17[%1022, %c0_322, %c0_323] : memref<8x8x128xf32, #tpu.memory_space<vmem>>, vector<1x8x128xf32>
    %1024 = vector.shape_cast %1023 : vector<1x8x128xf32> to vector<8x128xf32>
    %1025 = arith.index_cast %c4_i32_321 : i32 to index
    %c0_324 = arith.constant 0 : index
    %c0_325 = arith.constant 0 : index
    %1026 = vector.load %arg4[%1025, %c0_324, %c0_325] : memref<8x8x1xi32, #tpu.memory_space<vmem>>, vector<1x8x1xi32>
    %1027 = vector.shape_cast %1026 : vector<1x8x1xi32> to vector<8x1xi32>
    %1028 = vector.broadcast %c4_i32_321 : i32 to vector<8x1xi32>
    %1029 = arith.cmpi slt, %1028, %0 : vector<8x1xi32>
    %1030 = vector.broadcast %1027 : vector<8x1xi32> to vector<8x128xi32>
    %1031 = arith.cmpi eq, %1030, %903 : vector<8x128xi32>
    %cst_326 = arith.constant 0.000000e+00 : f32
    %1032 = vector.broadcast %cst_326 : f32 to vector<8x128xf32>
    %1033 = arith.select %1031, %1024, %1032 : vector<8x128xi1>, vector<8x128xf32>
    %cst_327 = arith.constant dense<0.000000e+00> : vector<8xf32>
    %1034 = vector.multi_reduction <add>, %1033, %cst_327 [1] : vector<8x128xf32> to vector<8xf32>
    %1035 = vector.shape_cast %1034 : vector<8xf32> to vector<8x1xf32>
    %cst_328 = arith.constant 0.000000e+00 : f32
    %1036 = vector.broadcast %cst_328 : f32 to vector<8x1xf32>
    %1037 = arith.select %1029, %1035, %1036 : vector<8x1xi1>, vector<8x1xf32>
    %1038 = arith.addf %1004, %1037 : vector<8x1xf32>
    %cst_329 = arith.constant dense<0xFF800000> : vector<8xf32>
    %1039 = vector.multi_reduction <maximumf>, %1021, %cst_329 [1] : vector<8x128xf32> to vector<8xf32>
    %1040 = vector.shape_cast %1039 : vector<8xf32> to vector<8x1xf32>
    %1041 = vector.broadcast %1040 : vector<8x1xf32> to vector<8x128xf32>
    %1042 = arith.subf %1021, %1041 : vector<8x128xf32>
    %1043 = math.exp %1042 : vector<8x128xf32>
    %cst_330 = arith.constant dense<0.000000e+00> : vector<8x128xf32>
    %1044 = tpu.matmul %1043, %4, %cst_330 {dimension_numbers = #tpu.dot_dimension_numbers<[1], [0], [0], [1], [0, 0, 1, 1], [], []>} : vector<8x128xf32>, vector<128x128xf32>, vector<8x128xf32> -> vector<8x128xf32>
    %cst_331 = arith.constant 9.99999991E-38 : f32
    %1045 = vector.broadcast %cst_331 : f32 to vector<8x128xf32>
    %1046 = arith.maximumf %1044, %1045 : vector<8x128xf32>
    %1047 = math.log %1046 : vector<8x128xf32>
    %1048 = vector.broadcast %1040 : vector<8x1xf32> to vector<8x128xf32>
    %1049 = arith.addf %1047, %1048 : vector<8x128xf32>
    %1050 = vector.broadcast %5 : f32 to vector<8x128xf32>
    %1051 = arith.addf %1049, %1050 : vector<8x128xf32>
    %1052 = arith.addf %1051, %1024 : vector<8x128xf32>
    %1053 = vector.shape_cast %1029 : vector<8x1xi1> to vector<8x1xi1>
    %1054 = vector.broadcast %1053 : vector<8x1xi1> to vector<8x128xi1>
    %1055 = arith.select %1054, %1052, %1021 : vector<8x128xi1>, vector<8x128xf32>
    %c5_i32_332 = arith.constant 5 : i32
    %1056 = arith.index_cast %c5_i32_332 : i32 to index
    %c0_333 = arith.constant 0 : index
    %c0_334 = arith.constant 0 : index
    %1057 = vector.load %arg17[%1056, %c0_333, %c0_334] : memref<8x8x128xf32, #tpu.memory_space<vmem>>, vector<1x8x128xf32>
    %1058 = vector.shape_cast %1057 : vector<1x8x128xf32> to vector<8x128xf32>
    %1059 = arith.index_cast %c5_i32_332 : i32 to index
    %c0_335 = arith.constant 0 : index
    %c0_336 = arith.constant 0 : index
    %1060 = vector.load %arg4[%1059, %c0_335, %c0_336] : memref<8x8x1xi32, #tpu.memory_space<vmem>>, vector<1x8x1xi32>
    %1061 = vector.shape_cast %1060 : vector<1x8x1xi32> to vector<8x1xi32>
    %1062 = vector.broadcast %c5_i32_332 : i32 to vector<8x1xi32>
    %1063 = arith.cmpi slt, %1062, %0 : vector<8x1xi32>
    %1064 = vector.broadcast %1061 : vector<8x1xi32> to vector<8x128xi32>
    %1065 = arith.cmpi eq, %1064, %903 : vector<8x128xi32>
    %cst_337 = arith.constant 0.000000e+00 : f32
    %1066 = vector.broadcast %cst_337 : f32 to vector<8x128xf32>
    %1067 = arith.select %1065, %1058, %1066 : vector<8x128xi1>, vector<8x128xf32>
    %cst_338 = arith.constant dense<0.000000e+00> : vector<8xf32>
    %1068 = vector.multi_reduction <add>, %1067, %cst_338 [1] : vector<8x128xf32> to vector<8xf32>
    %1069 = vector.shape_cast %1068 : vector<8xf32> to vector<8x1xf32>
    %cst_339 = arith.constant 0.000000e+00 : f32
    %1070 = vector.broadcast %cst_339 : f32 to vector<8x1xf32>
    %1071 = arith.select %1063, %1069, %1070 : vector<8x1xi1>, vector<8x1xf32>
    %1072 = arith.addf %1038, %1071 : vector<8x1xf32>
    %cst_340 = arith.constant dense<0xFF800000> : vector<8xf32>
    %1073 = vector.multi_reduction <maximumf>, %1055, %cst_340 [1] : vector<8x128xf32> to vector<8xf32>
    %1074 = vector.shape_cast %1073 : vector<8xf32> to vector<8x1xf32>
    %1075 = vector.broadcast %1074 : vector<8x1xf32> to vector<8x128xf32>
    %1076 = arith.subf %1055, %1075 : vector<8x128xf32>
    %1077 = math.exp %1076 : vector<8x128xf32>
    %cst_341 = arith.constant dense<0.000000e+00> : vector<8x128xf32>
    %1078 = tpu.matmul %1077, %4, %cst_341 {dimension_numbers = #tpu.dot_dimension_numbers<[1], [0], [0], [1], [0, 0, 1, 1], [], []>} : vector<8x128xf32>, vector<128x128xf32>, vector<8x128xf32> -> vector<8x128xf32>
    %cst_342 = arith.constant 9.99999991E-38 : f32
    %1079 = vector.broadcast %cst_342 : f32 to vector<8x128xf32>
    %1080 = arith.maximumf %1078, %1079 : vector<8x128xf32>
    %1081 = math.log %1080 : vector<8x128xf32>
    %1082 = vector.broadcast %1074 : vector<8x1xf32> to vector<8x128xf32>
    %1083 = arith.addf %1081, %1082 : vector<8x128xf32>
    %1084 = vector.broadcast %5 : f32 to vector<8x128xf32>
    %1085 = arith.addf %1083, %1084 : vector<8x128xf32>
    %1086 = arith.addf %1085, %1058 : vector<8x128xf32>
    %1087 = vector.shape_cast %1063 : vector<8x1xi1> to vector<8x1xi1>
    %1088 = vector.broadcast %1087 : vector<8x1xi1> to vector<8x128xi1>
    %1089 = arith.select %1088, %1086, %1055 : vector<8x128xi1>, vector<8x128xf32>
    %c6_i32_343 = arith.constant 6 : i32
    %1090 = arith.index_cast %c6_i32_343 : i32 to index
    %c0_344 = arith.constant 0 : index
    %c0_345 = arith.constant 0 : index
    %1091 = vector.load %arg17[%1090, %c0_344, %c0_345] : memref<8x8x128xf32, #tpu.memory_space<vmem>>, vector<1x8x128xf32>
    %1092 = vector.shape_cast %1091 : vector<1x8x128xf32> to vector<8x128xf32>
    %1093 = arith.index_cast %c6_i32_343 : i32 to index
    %c0_346 = arith.constant 0 : index
    %c0_347 = arith.constant 0 : index
    %1094 = vector.load %arg4[%1093, %c0_346, %c0_347] : memref<8x8x1xi32, #tpu.memory_space<vmem>>, vector<1x8x1xi32>
    %1095 = vector.shape_cast %1094 : vector<1x8x1xi32> to vector<8x1xi32>
    %1096 = vector.broadcast %c6_i32_343 : i32 to vector<8x1xi32>
    %1097 = arith.cmpi slt, %1096, %0 : vector<8x1xi32>
    %1098 = vector.broadcast %1095 : vector<8x1xi32> to vector<8x128xi32>
    %1099 = arith.cmpi eq, %1098, %903 : vector<8x128xi32>
    %cst_348 = arith.constant 0.000000e+00 : f32
    %1100 = vector.broadcast %cst_348 : f32 to vector<8x128xf32>
    %1101 = arith.select %1099, %1092, %1100 : vector<8x128xi1>, vector<8x128xf32>
    %cst_349 = arith.constant dense<0.000000e+00> : vector<8xf32>
    %1102 = vector.multi_reduction <add>, %1101, %cst_349 [1] : vector<8x128xf32> to vector<8xf32>
    %1103 = vector.shape_cast %1102 : vector<8xf32> to vector<8x1xf32>
    %cst_350 = arith.constant 0.000000e+00 : f32
    %1104 = vector.broadcast %cst_350 : f32 to vector<8x1xf32>
    %1105 = arith.select %1097, %1103, %1104 : vector<8x1xi1>, vector<8x1xf32>
    %1106 = arith.addf %1072, %1105 : vector<8x1xf32>
    %cst_351 = arith.constant dense<0xFF800000> : vector<8xf32>
    %1107 = vector.multi_reduction <maximumf>, %1089, %cst_351 [1] : vector<8x128xf32> to vector<8xf32>
    %1108 = vector.shape_cast %1107 : vector<8xf32> to vector<8x1xf32>
    %1109 = vector.broadcast %1108 : vector<8x1xf32> to vector<8x128xf32>
    %1110 = arith.subf %1089, %1109 : vector<8x128xf32>
    %1111 = math.exp %1110 : vector<8x128xf32>
    %cst_352 = arith.constant dense<0.000000e+00> : vector<8x128xf32>
    %1112 = tpu.matmul %1111, %4, %cst_352 {dimension_numbers = #tpu.dot_dimension_numbers<[1], [0], [0], [1], [0, 0, 1, 1], [], []>} : vector<8x128xf32>, vector<128x128xf32>, vector<8x128xf32> -> vector<8x128xf32>
    %cst_353 = arith.constant 9.99999991E-38 : f32
    %1113 = vector.broadcast %cst_353 : f32 to vector<8x128xf32>
    %1114 = arith.maximumf %1112, %1113 : vector<8x128xf32>
    %1115 = math.log %1114 : vector<8x128xf32>
    %1116 = vector.broadcast %1108 : vector<8x1xf32> to vector<8x128xf32>
    %1117 = arith.addf %1115, %1116 : vector<8x128xf32>
    %1118 = vector.broadcast %5 : f32 to vector<8x128xf32>
    %1119 = arith.addf %1117, %1118 : vector<8x128xf32>
    %1120 = arith.addf %1119, %1092 : vector<8x128xf32>
    %1121 = vector.shape_cast %1097 : vector<8x1xi1> to vector<8x1xi1>
    %1122 = vector.broadcast %1121 : vector<8x1xi1> to vector<8x128xi1>
    %1123 = arith.select %1122, %1120, %1089 : vector<8x128xi1>, vector<8x128xf32>
    %c7_i32_354 = arith.constant 7 : i32
    %1124 = arith.index_cast %c7_i32_354 : i32 to index
    %c0_355 = arith.constant 0 : index
    %c0_356 = arith.constant 0 : index
    %1125 = vector.load %arg17[%1124, %c0_355, %c0_356] : memref<8x8x128xf32, #tpu.memory_space<vmem>>, vector<1x8x128xf32>
    %1126 = vector.shape_cast %1125 : vector<1x8x128xf32> to vector<8x128xf32>
    %1127 = arith.index_cast %c7_i32_354 : i32 to index
    %c0_357 = arith.constant 0 : index
    %c0_358 = arith.constant 0 : index
    %1128 = vector.load %arg4[%1127, %c0_357, %c0_358] : memref<8x8x1xi32, #tpu.memory_space<vmem>>, vector<1x8x1xi32>
    %1129 = vector.shape_cast %1128 : vector<1x8x1xi32> to vector<8x1xi32>
    %1130 = vector.broadcast %c7_i32_354 : i32 to vector<8x1xi32>
    %1131 = arith.cmpi slt, %1130, %0 : vector<8x1xi32>
    %1132 = vector.broadcast %1129 : vector<8x1xi32> to vector<8x128xi32>
    %1133 = arith.cmpi eq, %1132, %903 : vector<8x128xi32>
    %cst_359 = arith.constant 0.000000e+00 : f32
    %1134 = vector.broadcast %cst_359 : f32 to vector<8x128xf32>
    %1135 = arith.select %1133, %1126, %1134 : vector<8x128xi1>, vector<8x128xf32>
    %cst_360 = arith.constant dense<0.000000e+00> : vector<8xf32>
    %1136 = vector.multi_reduction <add>, %1135, %cst_360 [1] : vector<8x128xf32> to vector<8xf32>
    %1137 = vector.shape_cast %1136 : vector<8xf32> to vector<8x1xf32>
    %cst_361 = arith.constant 0.000000e+00 : f32
    %1138 = vector.broadcast %cst_361 : f32 to vector<8x1xf32>
    %1139 = arith.select %1131, %1137, %1138 : vector<8x1xi1>, vector<8x1xf32>
    %1140 = arith.addf %1106, %1139 : vector<8x1xf32>
    %cst_362 = arith.constant dense<0xFF800000> : vector<8xf32>
    %1141 = vector.multi_reduction <maximumf>, %1123, %cst_362 [1] : vector<8x128xf32> to vector<8xf32>
    %1142 = vector.shape_cast %1141 : vector<8xf32> to vector<8x1xf32>
    %1143 = vector.broadcast %1142 : vector<8x1xf32> to vector<8x128xf32>
    %1144 = arith.subf %1123, %1143 : vector<8x128xf32>
    %1145 = math.exp %1144 : vector<8x128xf32>
    %cst_363 = arith.constant dense<0.000000e+00> : vector<8x128xf32>
    %1146 = tpu.matmul %1145, %4, %cst_363 {dimension_numbers = #tpu.dot_dimension_numbers<[1], [0], [0], [1], [0, 0, 1, 1], [], []>} : vector<8x128xf32>, vector<128x128xf32>, vector<8x128xf32> -> vector<8x128xf32>
    %cst_364 = arith.constant 9.99999991E-38 : f32
    %1147 = vector.broadcast %cst_364 : f32 to vector<8x128xf32>
    %1148 = arith.maximumf %1146, %1147 : vector<8x128xf32>
    %1149 = math.log %1148 : vector<8x128xf32>
    %1150 = vector.broadcast %1142 : vector<8x1xf32> to vector<8x128xf32>
    %1151 = arith.addf %1149, %1150 : vector<8x128xf32>
    %1152 = vector.broadcast %5 : f32 to vector<8x128xf32>
    %1153 = arith.addf %1151, %1152 : vector<8x128xf32>
    %1154 = arith.addf %1153, %1126 : vector<8x128xf32>
    %1155 = vector.shape_cast %1131 : vector<8x1xi1> to vector<8x1xi1>
    %1156 = vector.broadcast %1155 : vector<8x1xi1> to vector<8x128xi1>
    %1157 = arith.select %1156, %1154, %1123 : vector<8x128xi1>, vector<8x128xf32>
    %c7_i32_365 = arith.constant 7 : i32
    %1158 = vector.broadcast %3 : vector<1x128xf32> to vector<8x128xf32>
    %1159 = arith.addf %1157, %1158 : vector<8x128xf32>
    %cst_366 = arith.constant dense<0xFF800000> : vector<8xf32>
    %1160 = vector.multi_reduction <maximumf>, %1159, %cst_366 [1] : vector<8x128xf32> to vector<8xf32>
    %1161 = vector.shape_cast %1160 : vector<8xf32> to vector<8x1xf32>
    %1162 = vector.broadcast %1161 : vector<8x1xf32> to vector<8x128xf32>
    %1163 = arith.subf %1159, %1162 : vector<8x128xf32>
    %1164 = math.exp %1163 : vector<8x128xf32>
    %cst_367 = arith.constant dense<0.000000e+00> : vector<8xf32>
    %1165 = vector.multi_reduction <add>, %1164, %cst_367 [1] : vector<8x128xf32> to vector<8xf32>
    %1166 = vector.shape_cast %1165 : vector<8xf32> to vector<8x1xf32>
    %1167 = math.log %1166 : vector<8x1xf32>
    %1168 = arith.addf %1167, %1161 : vector<8x1xf32>
    %1169 = arith.mulf %1168, %1 : vector<8x1xf32>
    %1170 = vector.shape_cast %1169 : vector<8x1xf32> to vector<1x8x1xf32>
    %cst_368 = arith.constant dense<0.000000e+00> : vector<1xf32>
    %1171 = vector.multi_reduction <add>, %1170, %cst_368 [1, 2] : vector<1x8x1xf32> to vector<1xf32>
    %1172 = vector.shape_cast %1171 : vector<1xf32> to vector<1x1x1xf32>
    %1173 = vector.extract %1172[0, 0, 0] : f32 from vector<1x1x1xf32>
    %1174 = vector.shape_cast %1140 : vector<8x1xf32> to vector<1x8x1xf32>
    %cst_369 = arith.constant dense<0.000000e+00> : vector<1xf32>
    %1175 = vector.multi_reduction <add>, %1174, %cst_369 [1, 2] : vector<1x8x1xf32> to vector<1xf32>
    %1176 = vector.shape_cast %1175 : vector<1xf32> to vector<1x1x1xf32>
    %1177 = vector.extract %1176[0, 0, 0] : f32 from vector<1x1x1xf32>
    %cst_370 = arith.constant 0.000000e+00 : f32
    %1178 = vector.broadcast %cst_370 : f32 to vector<1x8x128xf32>
    %1179 = arith.subf %1173, %1177 : f32
    %1180 = vector.broadcast %1179 : f32 to vector<1x8x128xf32>
    %1181 = arith.addf %1178, %1180 : vector<1x8x128xf32>
    %c0_371 = arith.constant 0 : index
    %c0_372 = arith.constant 0 : index
    %c0_373 = arith.constant 0 : index
    %1182 = vector.load %arg14[%c0_371, %c0_372, %c0_373] : memref<1x8x128xf32, #tpu.memory_space<vmem>>, vector<1x8x128xf32>
    tpu.vector_store %arg14[%c0_371, %c0_372, %c0_373], %1181 {strides = array<i32>} : memref<1x8x128xf32, #tpu.memory_space<vmem>>, vector<1x8x128xf32>,
    return
  }
  func.func @transform_0(%arg0: i32) -> (i32, i32, i32) {
    %c0_i32 = arith.constant 0 : i32
    %c0_i32_0 = arith.constant 0 : i32
    %c0_i32_1 = arith.constant 0 : i32
    return %c0_i32, %arg0, %c0_i32_0 : i32, i32, i32
  }
  func.func @transform_1(%arg0: i32) -> (i32, i32) {
    %c0_i32 = arith.constant 0 : i32
    %c0_i32_0 = arith.constant 0 : i32
    return %arg0, %c0_i32 : i32, i32
  }
  func.func @transform_2(%arg0: i32) -> (i32, i32) {
    %c0_i32 = arith.constant 0 : i32
    %c0_i32_0 = arith.constant 0 : i32
    return %arg0, %c0_i32 : i32, i32
  }
  func.func @transform_3(%arg0: i32) -> (i32, i32, i32) {
    %c0_i32 = arith.constant 0 : i32
    %c0_i32_0 = arith.constant 0 : i32
    %c0_i32_1 = arith.constant 0 : i32
    return %c0_i32, %arg0, %c0_i32_0 : i32, i32, i32
  }
  func.func @transform_4(%arg0: i32) -> (i32, i32) {
    %c0_i32 = arith.constant 0 : i32
    %c0_i32_0 = arith.constant 0 : i32
    %c0_i32_1 = arith.constant 0 : i32
    return %c0_i32, %c0_i32_0 : i32, i32
  }
  func.func @transform_5(%arg0: i32) -> (i32, i32) {
    %c0_i32 = arith.constant 0 : i32
    %c0_i32_0 = arith.constant 0 : i32
    %c0_i32_1 = arith.constant 0 : i32
    return %c0_i32, %c0_i32_0 : i32, i32
  }
  func.func @transform_6(%arg0: i32) -> (i32, i32) {
    %c0_i32 = arith.constant 0 : i32
    %c0_i32_0 = arith.constant 0 : i32
    %c0_i32_1 = arith.constant 0 : i32
    return %c0_i32, %c0_i32_0 : i32, i32
  }
  func.func @transform_7(%arg0: i32) -> (i32, i32) {
    %c0_i32 = arith.constant 0 : i32
    %c0_i32_0 = arith.constant 0 : i32
    %c0_i32_1 = arith.constant 0 : i32
    return %c0_i32, %c0_i32_0 : i32, i32
  }
  func.func @transform_8(%arg0: i32) -> (i32, i32) {
    %c0_i32 = arith.constant 0 : i32
    %c0_i32_0 = arith.constant 0 : i32
    %c0_i32_1 = arith.constant 0 : i32
    return %c0_i32, %c0_i32_0 : i32, i32
  }
  func.func @transform_9(%arg0: i32) -> (i32, i32) {
    %c0_i32 = arith.constant 0 : i32
    %c0_i32_0 = arith.constant 0 : i32
    %c0_i32_1 = arith.constant 0 : i32
    return %c0_i32, %c0_i32_0 : i32, i32
  }
  func.func @transform_10(%arg0: i32) -> (i32, i32) {
    %c0_i32 = arith.constant 0 : i32
    %c0_i32_0 = arith.constant 0 : i32
    %c0_i32_1 = arith.constant 0 : i32
    return %c0_i32, %c0_i32_0 : i32, i32
  }
  func.func @transform_11(%arg0: i32) -> (i32, i32) {
    %c0_i32 = arith.constant 0 : i32
    %c0_i32_0 = arith.constant 0 : i32
    %c0_i32_1 = arith.constant 0 : i32
    return %c0_i32, %c0_i32_0 : i32, i32
  }
  func.func @transform_12(%arg0: i32) -> (i32, i32) {
    %c0_i32 = arith.constant 0 : i32
    %c0_i32_0 = arith.constant 0 : i32
    %c0_i32_1 = arith.constant 0 : i32
    return %c0_i32, %c0_i32_0 : i32, i32
  }
  func.func @transform_13(%arg0: i32) -> (i32, i32, i32) {
    %c0_i32 = arith.constant 0 : i32
    %c0_i32_0 = arith.constant 0 : i32
    %c0_i32_1 = arith.constant 0 : i32
    return %arg0, %c0_i32, %c0_i32_0 : i32, i32, i32
  }
}

</mosaic_0001>

<bundles_post_ra>
// kernel: tpu_custom_call.1
= control target key start
LH: loop header
LB: loop body
LE: loop exit
PB: predicated region body
PF: predicated region fallthrough
CT: control target
= control target key end

     0   :  { %19 = vsyncpa [#allocation9], 0  ;;  %s4509_s0 = inlined_call_operand.vmem [shape: bf16[8,8,128], index: 0, kind: input, shape index: {}]   ;;  %s4510_s1 = inlined_call_operand.vmem [shape: s32[8,1], index: 1, kind: input, shape index: {}]   ;;  %s4511_s2 = inlined_call_operand.vmem [shape: f32[8,1], index: 2, kind: input, shape index: {}]   ;;  %s4512_s3 = inlined_call_operand.vmem [shape: s32[8,8,1], index: 3, kind: input, shape index: {}]   ;;  %s4513_s4 = inlined_call_operand.vmem [shape: bf16[128,128], index: 4, kind: input, shape index: {}]   ;;  %s4514_s5 = inlined_call_operand.vmem [shape: bf16[32,128], index: 5, kind: input, shape index: {}]   ;;  %s4515_s6 = inlined_call_operand.vmem [shape: f32[1,128], index: 6, kind: input, shape index: {}]   ;;  %s4516_s7 = inlined_call_operand.hbm [shape: bf16[32,128], index: 7, kind: input, shape index: {}]   ;;  %s4517_s8 = inlined_call_operand.vmem [shape: f32[1,128], index: 8, kind: input, shape index: {}]   ;;  %s4518_s9 = inlined_call_operand.hbm [shape: f32[128,128], index: 9, kind: input, shape index: {}]   ;;  %s4519_s10 = inlined_call_operand.vmem [shape: f32[1,128], index: 10, kind: input, shape index: {}]   ;;  %s4520_s11 = inlined_call_operand.vmem [shape: f32[1,128], index: 11, kind: input, shape index: {}]   ;;  %s4521_s12 = inlined_call_operand.<no memory space> [shape: f32[1,1], index: 12, kind: input, shape index: {}]   ;;  %s4522_s13 = inlined_call_operand.hbm [shape: f32[1,8,128], index: 13, kind: output, shape index: {}]  }
   0x1   :  { %20 = vsyncpa [#allocation12], 0 }
   0x2   :  { %21 = vsyncpa [#allocation10], 0  ;;  %s3492_s25 = smov [#allocation8]   ;;  %s3420_s29 = scalar_lea.hbm %s4516_s7, 256 }
   0x3   :  { %s41_s26 = sshll.u32 %s3492_s25, 4  ;;  %p3421_p0 = scmp.ne.s32.totalorder %s4516_s7, %s3420_s29  ;;  %s42_s26 = int_to_ptr.vmem [resolvable:$true] %s41_s26 }
   0x4   :  { %p3424_p1 = scmp.lt.u32.totalorder %s3420_s29, %s4516_s7 }
   0x6   :  { %p3426_p2 = pnand %p3424_p1, %p3421_p0 }
   0x8   :  { %3429 = shalt.err (!%p3426_p2)
}
   0x9   :  { %s3430_s17 = scalar_lea.vmem %s42_s26, 256  ;;  %p3435_p4 = scmp.lt.s32.totalorder %s42_s26, %s42_s26 }
   0xa   :  { %p3431_p3 = scmp.ne.s32.totalorder %s42_s26, %s3430_s17  ;;  %p3436_p5 = scmp.lt.s32.totalorder %s3430_s17, %s3430_s17 }
   0xc   :  { %p3437_p6 = por %p3436_p5, %p3435_p4 }
   0xe   :  { %p3438_p7 = pnand %p3437_p6, %p3431_p3 }
  0x10   :  { %3441 = shalt.err (!%p3438_p7)
}
  0x11   :  { %s3493_s18 = smov 64   ;;  %s3494_s19 = smov 4  }
  0x12   :  { %47 = dma.hbm_to_vmem [thread:$0]  %s4516_s7, 256, %s42_s26, [#allocation9], %s3493_s18, %s3493_s18, %s3494_s19  }
  0x13   :  { %s3495_s22 = smov [#allocation11]   ;;  %s3442_s27 = scalar_lea.hbm %s4518_s9, 2048 }
  0x14   :  { %s55_s23 = sshll.u32 %s3495_s22, 4  ;;  %p3443_p8 = scmp.ne.s32.totalorder %s4518_s9, %s3442_s27  ;;  %s56_s23 = int_to_ptr.vmem [resolvable:$true] %s55_s23 }
  0x15   :  { %p3446_p9 = scmp.lt.u32.totalorder %s3442_s27, %s4518_s9 }
  0x17   :  { %p3448_p10 = pnand %p3446_p9, %p3443_p8 }
  0x19   :  { %3451 = shalt.err (!%p3448_p10)
}
  0x1a   :  { %s3452_s15 = scalar_lea.vmem %s56_s23, 2048  ;;  %p3457_p12 = scmp.lt.s32.totalorder %s56_s23, %s56_s23 }
  0x1b   :  { %p3453_p11 = scmp.ne.s32.totalorder %s56_s23, %s3452_s15  ;;  %p3458_p13 = scmp.lt.s32.totalorder %s3452_s15, %s3452_s15 }
  0x1d   :  { %p3459_p0 = por %p3458_p13, %p3457_p12 }
  0x1f   :  { %p3460_p1 = pnand %p3459_p0, %p3453_p11 }
  0x21   :  { %3463 = shalt.err (!%p3460_p1)
}
  0x22   :  { %s3496_s7 = smov 128   ;;  %s3497_s26 = smov 8  }
  0x23   :  { %61 = dma.hbm_to_vmem [thread:$0]  %s4518_s9, 2048, %s56_s23, [#allocation12], %s3496_s7, %s3496_s7, %s3497_s26  }
  0x24   :  { %3486 = dma.done.wait [#allocation9], 256  }
  0x25   :  { %3487 = vsyncadd [#allocation9], 4294967040 }
  0x26   :  { %3488 = dma.done.wait [#allocation12], 2048  }
  0x27   :  { %3489 = vsyncadd [#allocation12], 4294965248  ;;  %vm308_vm0 = vcmask 261120   ;;  %v3498_v0 = vmov 0.0   ;;  %vm3499_vm1 = vmmov 0   ;;  %v3242_v1 = vld [vmem:[%s4513_s4] sm:$0xff]  }
  0x28   :  { %2730 = vmatprep.subr.bf16.mxu1 %v3498_v0  ;;  %2734 = vmatprep.mubr.msk.bf16.mxu1 %vm3499_vm1, %v3498_v0  ;;  %309 = vst.msk [vmem:[#allocation5] sm:$0xff] %vm308_vm0, %v3498_v0  ;;  %310 = vst.msk [vmem:[#allocation6] sm:$0xff] %vm308_vm0, %v3498_v0  ;;  %v3243_v2 = vld [vmem:[%s4513_s4 + $0x8] sm:$0xff]   ;;  %v3244_v3 = vld [vmem:[%s4513_s4 + $0x10] sm:$0xff]   ;;  %s3500_s19 = smov 16   ;;  %v3501_v46 = vmov 0  }
  0x29   :  { %2706 = vmatprep.subr.bf16.mxu0 %v3242_v1  ;;  %v3245_v4 = vld [vmem:[%s4513_s4 + $0x18] sm:$0xff]   ;;  %v3250_v5 = vld [vmem:[%s4509_s0] sm:$0xff]   ;;  %v3638_v8 = vld [vmem:[%s4514_s5 + $0x8] sm:$0xff]   ;;  %3240 = vset.pattern.permute.xlu0 %v3501_v46  ;;  %s3504_s15 = smov 48   ;;  %s3505_s7 = smov 80   ;;  %vm443_vm6 = vcmask 130048  }
  0x2a   :  { %2707 = vmatpush3.bf16.msra.mxu0 %v3242_v1  ;;  %2722 = vmatprep.mubr.bf16.mxu0 %v3250_v5  ;;  %v3246_v6 = vld [vmem:[%s4513_s4 + $0x20] sm:$0xff]   ;;  %v3247_v11 = vld [vmem:[%s4513_s4 + $0x28] sm:$0xff]   ;;  %v3248_v13 = vld [vmem:[%s4513_s4 + $0x30] sm:$0xff]   ;;  %s3506_s26 = smov 112   ;;  %vm456_vm7 = vcmask 261248  }
  0x2b   :  { %2708 = vmatprep.subr.bf16.mxu0 %v3243_v2  ;;  %v3633_v7 = vld [vmem:[%s4514_s5] sm:$0xff]   ;;  %v3249_v14 = vld [vmem:[%s4513_s4 + $0x38] sm:$0xff]   ;;  %v3251_v15 = vld [vmem:[%s4509_s0 + $0x8] sm:$0xff]   ;;  %3241 = vset.pattern.permute.xlu1 %v3501_v46 }
  0x2c   :  { %2731 = vmatpush3.bf16.msra.mxu1 %v3633_v7  ;;  %v3252_v16 = vld [vmem:[%s4509_s0 + $0x10] sm:$0xff]   ;;  %v3253_v17 = vld [vmem:[%s4509_s0 + $0x18] sm:$0xff]   ;;  %v2451_v23 = vld [vmem:[%s4515_s6] ss:$0 sm:$0xff]  ;;  %s3502_s0 = smov 96  }
  0x2d   :  { %2732 = vmatprep.subr.bf16.mxu1 %v3498_v0  ;;  %v3693_v58 = vld [vmem:[%s4510_s1] sm:$0xff]  ;;  %s3503_s1 = smov 32  }
  0x2e   :  { %2709 = vmatpush3.bf16.msra.mxu0 %v3243_v2  ;;  %vm431_vm2 = vcmp.gt.s32.totalorder %v3693_v58, 0  ;;  %vm4523_vm3 = vcmp.gt.s32.totalorder %v3693_v58, 7  ;;  %vm598_vm8 = vcmp.gt.s32.totalorder %v3693_v58, 1  ;;  %vm4524_vm9 = vcmp.gt.s32.totalorder %v3693_v58, 6 }
  0x2f   :  { %2710 = vmatprep.subr.bf16.mxu0 %v3244_v3  ;;  %v3641_v9 = vld [vmem:[#allocation5] sm:$0xff]  ;;  %v312_v10 = vld [vmem:[#allocation6] sm:$0xff]  ;;  %v433_v62 = vsel %vm431_vm2, 1, %v3501_v46  ;;  %vm764_vm12 = vcmp.gt.s32.totalorder %v3693_v58, 2  ;;  %vm4525_vm13 = vcmp.gt.s32.totalorder %v3693_v58, 5 }
  0x30   :  { %383 = vrot.lane.b32.xlu1 %v312_v10, %s3500_s19  ;;  %v313_v12 = vpack.c.bf16 %v3641_v9, %v3641_v9  ;;  %2733 = vmatpush3.bf16.msra.mxu1 %v3638_v8 }
  0x31   :  { %2738 = vmatprep.subr.bf16.mxu1 %v3498_v0 }
  0x32   :  { %2711 = vmatpush3.bf16.msra.mxu0 %v3244_v3  ;;  %v445_v3 = vsel %vm4523_vm3, 1, %v3501_v46  ;;  %vm930_vm3 = vcmp.gt.s32.totalorder %v3693_v58, 3 }
  0x33   :  { %2712 = vmatprep.subr.bf16.mxu0 %v3245_v4  ;;  %2735 = vmatmul.mubr.msk.bf16.vlgmr.msra.gmra.mrb[0].mxu1 %vm308_vm0, %v313_v12 }
  0x34   :  { %411 = vrot.lane.b32.xlu1 %v312_v10, %s3493_s18  ;;  %2739 = vmatpush3.bf16.msra.mxu1 %v3633_v7 }
  0x35   :  { %2742 = vmatprep.mubr.msk.bf16.mxu1 %vm3499_vm1, %v3498_v0  ;;  %2740 = vmatprep.subr.bf16.mxu1 %v3498_v0 }
  0x36   :  { %2713 = vmatpush3.bf16.msra.mxu0 %v3245_v4 }
  0x37   :  { %2714 = vmatprep.subr.bf16.mxu0 %v3246_v6 }
  0x38   :  { %2741 = vmatpush3.bf16.msra.mxu1 %v3638_v8 }
  0x39   :  { %2746 = vmatprep.subr.bf16.mxu1 %v3498_v0 }
  0x3a   :  { %2715 = vmatpush3.bf16.msra.mxu0 %v3246_v6 }
  0x3b   :  { %2716 = vmatprep.subr.bf16.mxu0 %v3247_v11 }
  0x3e   :  { %2717 = vmatpush3.bf16.msra.mxu0 %v3247_v11 }
  0x3f   :  { %2718 = vmatprep.subr.bf16.mxu0 %v3248_v13 }
  0x42   :  { %2719 = vmatpush3.bf16.msra.mxu0 %v3248_v13 }
  0x43   :  { %2720 = vmatprep.subr.bf16.mxu0 %v3249_v14 }
  0x46   :  { %2721 = vmatpush3.bf16.msra.mxu0 %v3249_v14 }
  0x49   :  { %2723 = vmatmul.mubr.bf16.vlgmr.msra.gmra.mrb[0].mxu0 %v3251_v15 }
  0x4a   :  { %2726 = vmatprep.mubr.bf16.mxu0 %v3252_v16 }
  0x51   :  { %2727 = vmatmul.mubr.bf16.gmra.mrb[4].mxu0 %v3253_v17 }
  0x52   :  { %2838 = vmatprep.mubr.msk.f32.mxu0 %vm3499_vm1, %v3498_v0 }
  0xa2   :  { %v384_v4 = vpop.permute.xlu1 %383 }
  0xa6   :  { %v412_v11 = vpop.permute.xlu1 %411 }
 0x106   :  { %v363_v18 = vpop.f32.mrb[0].mxu1 }
 0x107   :  { %v2736_v19 = vpop.f32.mrb[1].mxu1 }
 0x108   :  { %v366_v20 = vpop.f32.mrb[2].mxu1 }
 0x109   :  { %v2737_v21 = vpop.f32.mrb[3].mxu1 }
 0x11c   :  { %v2724_v22 = vpop.f32.mrb[0].mxu0 }
 0x11d   :  { %v233_v24 = vpop.f32.mrb[1].mxu0  ;;  %v242_v26 = vadd.f32 %v2724_v22, %v2451_v23 }
 0x11e   :  { %v2725_v25 = vpop.f32.mrb[2].mxu0  ;;  %v234_v29 = vadd.f32 %v2451_v23, %v233_v24 }
 0x11f   :  { %v245_v27 = vadd.f32 %v2725_v25, %v2451_v23  ;;  %v236_v28 = vpop.f32.mrb[3].mxu0 }
 0x120   :  { %v237_v30 = vadd.f32 %v2451_v23, %v236_v28 }
 0x121   :  { %v2530_v31 = vpack.c.bf16 %v245_v27, %v242_v26 }
 0x122   :  { %v2525_v32 = vpack.c.bf16 %v237_v30, %v234_v29 }
 0x123   :  { %2542 = vst [vmem:[#allocation2 + $0x8] sm:$0xff] %v2530_v31  }
 0x124   :  { %2526 = vst [vmem:[#allocation2] sm:$0xff] %v2525_v32   ;;  %v2728_v33 = vpop.f32.mrb[4].mxu0 }
 0x125   :  { %v249_v34 = vpop.f32.mrb[5].mxu0  ;;  %v258_v36 = vadd.f32 %v2728_v33, %v2451_v23 }
 0x126   :  { %v2729_v35 = vpop.f32.mrb[6].mxu0  ;;  %v250_v39 = vadd.f32 %v2451_v23, %v249_v34 }
 0x127   :  { %v261_v37 = vadd.f32 %v2729_v35, %v2451_v23  ;;  %v252_v38 = vpop.f32.mrb[7].mxu0 }
 0x128   :  { %v253_v40 = vadd.f32 %v2451_v23, %v252_v38 }
 0x129   :  { %v2540_v41 = vpack.c.bf16 %v261_v37, %v258_v36 }
 0x12a   :  { %v2535_v42 = vpack.c.bf16 %v253_v40, %v250_v39 }
 0x12b   :  { %2544 = vst [vmem:[#allocation2 + $0x18] sm:$0xff] %v2540_v41   ;;  %v3680_v43 = vld [vmem:[#allocation2] sm:$0xff]  }
 0x12c   :  { %2543 = vst [vmem:[#allocation2 + $0x10] sm:$0xff] %v2535_v42   ;;  %v370_v44 = vunpack.c.l.bf16 %v3680_v43  ;;  %v537_v34 = vunpack.c.h.bf16 %v3680_v43 }
 0x12e   :  { %v374_v45 = vadd.f32 %v370_v44, %v363_v18 }
 0x130   :  { %3258 = vtanh.f32 %v374_v45  ;;  %v2475_v52 = vmul.f32 -1.442695, %v374_v45 }
 0x132   :  { %v3685_v47 = vld [vmem:[#allocation2 + $0x18] sm:$0xff]  }
 0x133   :  { %v373_v48 = vunpack.c.h.bf16 %v3685_v47  ;;  %v540_v35 = vunpack.c.l.bf16 %v3685_v47 }
 0x135   :  { %v403_v49 = vadd.f32 %v373_v48, %v363_v18 }
 0x137   :  { %3260 = vtanh.f32 %v403_v49  ;;  %v2476_v53 = vmul.f32 -1.442695, %v403_v49 }
 0x138   :  { %3262 = vpow2.f32 %v2475_v52 }
 0x139   :  { %3264 = vpow2.f32 %v2476_v53 }
 0x13a   :  { %v3259_v50 = vpop.eup %3258 }
 0x13b   :  { %388 = vrot.lane.b32.xlu0 %v3259_v50, %s3502_s0 }
 0x141   :  { %v3261_v51 = vpop.eup %3260 }
 0x142   :  { %416 = vrot.lane.b32.xlu0 %v3261_v51, %s3502_s0  ;;  %v3263_v54 = vpop.eup %3262 }
 0x143   :  { %v378_v55 = vadd.f32 1.0, %v3263_v54  ;;  %v3265_v56 = vpop.eup %3264 }
 0x144   :  { %v407_v57 = vadd.f32 1.0, %v3265_v56 }
 0x145   :  { %3266 = vrcp.f32 %v378_v55 }
 0x146   :  { %3268 = vrcp.f32 %v407_v57 }
 0x14f   :  { %v3267_v59 = vpop.eup %3266 }
 0x150   :  { %v3269_v63 = vpop.eup %3268  ;;  %v386_v5 = vmul.f32 %v3267_v59, %v384_v4 }
 0x151   :  { %v414_v12 = vmul.f32 %v3269_v63, %v412_v11 }
 0x1ad   :  { %v389_v60 = vpop.permute.xlu0 %388 }
 0x1ae   :  { %v391_v61 = vmul.f32 %v3267_v59, %v389_v60  ;;  %v612_v60 = vsel %vm4524_vm9, 1, %v3501_v46  ;;  %vm4526_vm9 = vcmp.gt.s32.totalorder %v3693_v58, 4 }
 0x1b0   :  { %393 = vrot.lane.b32.xlu0 %v391_v61, %s3500_s19 }
 0x1b4   :  { %v417_v1 = vpop.permute.xlu0 %416  ;;  %435 = vperm.xlu0 %3240, %v433_v62  }
 0x1b5   :  { %v419_v2 = vmul.f32 %v3269_v63, %v417_v1 }
 0x1b7   :  { %421 = vrot.lane.b32.xlu1 %v419_v2, %s3500_s19 }
 0x1bb   :  { %447 = vperm.xlu1 %3241, %v445_v3  }
 0x222   :  { %v394_v6 = vpop.permute.xlu0 %393 }
 0x223   :  { %v396_v10 = vadd.f32 %v394_v6, %v386_v5 }
 0x225   :  { %3270 = vtanh.f32 %v396_v10 }
 0x229   :  { %v422_v13 = vpop.permute.xlu1 %421 }
 0x22a   :  { %v424_v14 = vadd.f32 %v422_v13, %v414_v12 }
 0x22c   :  { %3272 = vtanh.f32 %v424_v14 }
 0x22f   :  { %v3271_v15 = vpop.eup %3270 }
 0x230   :  { %399 = vrot.lane.b32.xlu1 %v3271_v15, %s3503_s1 }
 0x233   :  { %v3713_v19 = vpop.permute.xlu0 %435 }
 0x234   :  { %459 = vrot.lane.b32.xlu1 %v3641_v9, %s3504_s15  ;;  %vm437_vm4 = vcmp.eq.s32.totalorder %v3713_v19, 1 }
 0x236   :  { %v3273_v16 = vpop.eup %3272 }
 0x237   :  { %427 = vrot.lane.b32.xlu0 %v3273_v16, %s3503_s1 }
 0x23a   :  { %v3711_v17 = vpop.permute.xlu1 %447 }
 0x23b   :  { %468 = vrot.lane.b32.xlu0 %v3641_v9, %s3502_s0  ;;  %v477_v9 = vsel %vm437_vm4, %v396_v10, %v384_v4  ;;  %vm449_vm5 = vcmp.eq.s32.totalorder %v3711_v17, 1 }
 0x23c   :  { %v483_v27 = vsel %vm449_vm5, %v424_v14, %v412_v11 }
 0x2a2   :  { %v400_v18 = vpop.permute.xlu1 %399 }
 0x2a3   :  { %v3715_v20 = vmul.f32 %v3267_v59, %v400_v18  ;;  %v600_v59 = vsel %vm598_vm8, 1, %v3501_v46 }
 0x2a6   :  { %v460_v21 = vpop.permute.xlu1 %459 }
 0x2a7   :  { %v462_v22 = vsel %vm437_vm4, %v3715_v20, %v460_v21 }
 0x2a8   :  { %464 = vrot.lane.b32.xlu1 %v462_v22, %s3505_s7 }
 0x2a9   :  { %v428_v23 = vpop.permute.xlu0 %427 }
 0x2aa   :  { %v3724_v24 = vmul.f32 %v3269_v63, %v428_v23 }
 0x2ac   :  { %479 = vrot.lane.b32.xlu1 %v477_v9, %s3506_s26 }
 0x2ad   :  { %v469_v25 = vpop.permute.xlu0 %468 }
 0x2ae   :  { %v471_v26 = vsel %vm449_vm5, %v3724_v24, %v469_v25 }
 0x2af   :  { %473 = vrot.lane.b32.xlu0 %v471_v26, %s3503_s1 }
 0x2b3   :  { %485 = vrot.lane.b32.xlu0 %v483_v27, %s3493_s18 }
 0x31a   :  { %v465_v28 = vpop.permute.xlu1 %464 }
 0x31b   :  { %467 = vst.msk [vmem:[#allocation5] sm:$0xff] %vm443_vm6, %v465_v28 }
 0x31e   :  { %v480_v29 = vpop.permute.xlu1 %479 }
 0x31f   :  { %482 = vst.msk [vmem:[#allocation6] sm:$0xff] %vm443_vm6, %v480_v29 }
 0x321   :  { %v474_v30 = vpop.permute.xlu0 %473 }
 0x322   :  { %476 = vst.msk [vmem:[#allocation5] sm:$0xff] %vm456_vm7, %v474_v30 }
 0x325   :  { %v486_v31 = vpop.permute.xlu0 %485 }
 0x326   :  { %488 = vst.msk [vmem:[#allocation6] sm:$0xff] %vm456_vm7, %v486_v31 }
 0x329   :  { %v3739_v32 = vld [vmem:[#allocation5] sm:$0xff] }
 0x32a   :  { %v491_v33 = vpack.c.bf16 %v3739_v32, %v3739_v32 }
 0x32c   :  { %2743 = vmatmul.mubr.msk.bf16.vlgmr.msra.gmra.mrb[4].mxu1 %vm308_vm0, %v491_v33  ;;  %v3813_v33 = vld [vmem:[#allocation2 + $0x10] sm:$0xff]  }
 0x32d   :  { %2747 = vmatpush3.bf16.msra.mxu1 %v3633_v7  ;;  %2750 = vmatprep.mubr.msk.bf16.mxu1 %vm3499_vm1, %v3498_v0  ;;  %v490_v45 = vld [vmem:[#allocation6] sm:$0xff] }
 0x32e   :  { %2748 = vmatprep.subr.bf16.mxu1 %v3498_v0 }
 0x331   :  { %2749 = vmatpush3.bf16.msra.mxu1 %v3638_v8 }
 0x332   :  { %2754 = vmatprep.subr.bf16.mxu1 %v3498_v0 }
 0x3ff   :  { %v529_v36 = vpop.f32.mrb[4].mxu1 }
 0x400   :  { %v541_v37 = vadd.f32 %v537_v34, %v529_v36  ;;  %v570_v38 = vadd.f32 %v540_v35, %v529_v36  ;;  %v2744_v39 = vpop.f32.mrb[5].mxu1  ;;  %v706_v35 = vunpack.c.h.bf16 %v3813_v33 }
 0x401   :  { %v532_v40 = vpop.f32.mrb[6].mxu1 }
 0x402   :  { %3274 = vtanh.f32 %v541_v37  ;;  %v2745_v41 = vpop.f32.mrb[7].mxu1  ;;  %v2478_v43 = vmul.f32 -1.442695, %v541_v37  ;;  %v2479_v47 = vmul.f32 -1.442695, %v570_v38 }
 0x403   :  { %3276 = vtanh.f32 %v570_v38 }
 0x404   :  { %3278 = vpow2.f32 %v2478_v43 }
 0x405   :  { %3280 = vpow2.f32 %v2479_v47 }
 0x40c   :  { %v3275_v42 = vpop.eup %3274 }
 0x40d   :  { %v3277_v44 = vpop.eup %3276  ;;  %555 = vrot.lane.b32.xlu1 %v3275_v42, %s3502_s0 }
 0x40e   :  { %583 = vrot.lane.b32.xlu0 %v3277_v44, %s3502_s0  ;;  %v3279_v48 = vpop.eup %3278 }
 0x40f   :  { %v3281_v49 = vpop.eup %3280  ;;  %v545_v50 = vadd.f32 1.0, %v3279_v48 }
 0x410   :  { %v574_v51 = vadd.f32 1.0, %v3281_v49 }
 0x411   :  { %550 = vrot.lane.b32.xlu1 %v490_v45, %s3500_s19  ;;  %3282 = vrcp.f32 %v545_v50 }
 0x412   :  { %578 = vrot.lane.b32.xlu0 %v490_v45, %s3493_s18  ;;  %3284 = vrcp.f32 %v574_v51 }
 0x41b   :  { %v3283_v52 = vpop.eup %3282 }
 0x41c   :  { %v3285_v54 = vpop.eup %3284 }
 0x47f   :  { %v556_v53 = vpop.permute.xlu1 %555 }
 0x480   :  { %v558_v55 = vmul.f32 %v3283_v52, %v556_v53  ;;  %v584_v56 = vpop.permute.xlu0 %583 }
 0x481   :  { %v586_v57 = vmul.f32 %v3285_v54, %v584_v56 }
 0x482   :  { %560 = vrot.lane.b32.xlu1 %v558_v55, %s3500_s19 }
 0x483   :  { %588 = vrot.lane.b32.xlu0 %v586_v57, %s3500_s19  ;;  %v551_v61 = vpop.permute.xlu1 %550 }
 0x484   :  { %v579_v62 = vpop.permute.xlu0 %578  ;;  %v553_v63 = vmul.f32 %v3283_v52, %v551_v61 }
 0x485   :  { %v581_v1 = vmul.f32 %v3285_v54, %v579_v62 }
 0x486   :  { %602 = vperm.xlu1 %3241, %v600_v59   ;;  %v766_v59 = vsel %vm764_vm12, 1, %v3501_v46 }
 0x487   :  { %614 = vperm.xlu0 %3240, %v612_v60   ;;  %v778_v60 = vsel %vm4525_vm13, 1, %v3501_v46 }
 0x4f4   :  { %v561_v2 = vpop.permute.xlu1 %560 }
 0x4f5   :  { %v563_v3 = vadd.f32 %v561_v2, %v553_v63  ;;  %v589_v4 = vpop.permute.xlu0 %588 }
 0x4f6   :  { %v591_v5 = vadd.f32 %v589_v4, %v581_v1 }
 0x4f7   :  { %3286 = vtanh.f32 %v563_v3 }
 0x4f8   :  { %3288 = vtanh.f32 %v591_v5 }
 0x501   :  { %v3287_v6 = vpop.eup %3286 }
 0x502   :  { %v3289_v10 = vpop.eup %3288  ;;  %566 = vrot.lane.b32.xlu1 %v3287_v6, %s3503_s1 }
 0x503   :  { %594 = vrot.lane.b32.xlu0 %v3289_v10, %s3503_s1 }
 0x505   :  { %v3772_v11 = vpop.permute.xlu1 %602 }
 0x506   :  { %625 = vrot.lane.b32.xlu1 %v3739_v32, %s3504_s15  ;;  %v3774_v12 = vpop.permute.xlu0 %614  ;;  %vm604_vm10 = vcmp.eq.s32.totalorder %v3772_v11, 1 }
 0x507   :  { %634 = vrot.lane.b32.xlu0 %v3739_v32, %s3502_s0  ;;  %vm616_vm11 = vcmp.eq.s32.totalorder %v3774_v12, 1  ;;  %v643_v9 = vsel %vm604_vm10, %v563_v3, %v551_v61  ;;  %v3811_v32 = vld [vmem:[#allocation2 + $0x8] sm:$0xff]   ;;  %v2512_v12 = vld [vmem:[%s4512_s3 + $0x38] sm:$0xff] }
 0x508   :  { %v649_v25 = vsel %vm616_vm11, %v591_v5, %v579_v62  ;;  %v703_v34 = vunpack.c.l.bf16 %v3811_v32 }
 0x574   :  { %v567_v13 = vpop.permute.xlu1 %566 }
 0x575   :  { %v595_v14 = vpop.permute.xlu0 %594  ;;  %v3776_v15 = vmul.f32 %v3283_v52, %v567_v13 }
 0x576   :  { %v3779_v16 = vmul.f32 %v3285_v54, %v595_v14 }
 0x578   :  { %v626_v18 = vpop.permute.xlu1 %625 }
 0x579   :  { %v635_v21 = vpop.permute.xlu0 %634  ;;  %v628_v22 = vsel %vm604_vm10, %v3776_v15, %v626_v18 }
 0x57a   :  { %630 = vrot.lane.b32.xlu1 %v628_v22, %s3505_s7  ;;  %v637_v23 = vsel %vm616_vm11, %v3779_v16, %v635_v21 }
 0x57b   :  { %639 = vrot.lane.b32.xlu0 %v637_v23, %s3503_s1 }
 0x57e   :  { %645 = vrot.lane.b32.xlu1 %v643_v9, %s3506_s26 }
 0x57f   :  { %651 = vrot.lane.b32.xlu0 %v649_v25, %s3493_s18 }
 0x5ec   :  { %v631_v26 = vpop.permute.xlu1 %630 }
 0x5ed   :  { %633 = vst.msk [vmem:[#allocation5] sm:$0xff] %vm443_vm6, %v631_v26  ;;  %v640_v27 = vpop.permute.xlu0 %639 }
 0x5ee   :  { %642 = vst.msk [vmem:[#allocation5] sm:$0xff] %vm456_vm7, %v640_v27 }
 0x5f0   :  { %v646_v28 = vpop.permute.xlu1 %645 }
 0x5f1   :  { %648 = vst.msk [vmem:[#allocation6] sm:$0xff] %vm443_vm6, %v646_v28  ;;  %v652_v29 = vpop.permute.xlu0 %651 }
 0x5f2   :  { %654 = vst.msk [vmem:[#allocation6] sm:$0xff] %vm456_vm7, %v652_v29 }
 0x5f5   :  { %v3800_v30 = vld [vmem:[#allocation5] sm:$0xff] }
 0x5f6   :  { %v657_v31 = vpack.c.bf16 %v3800_v30, %v3800_v30 }
 0x5f8   :  { %2751 = vmatmul.mubr.msk.bf16.vlgmr.msra.gmra.mrb[8].mxu1 %vm308_vm0, %v657_v31 }
 0x5f9   :  { %2755 = vmatpush3.bf16.msra.mxu1 %v3633_v7  ;;  %2758 = vmatprep.mubr.msk.bf16.mxu1 %vm3499_vm1, %v3498_v0  ;;  %v656_v45 = vld [vmem:[#allocation6] sm:$0xff] }
 0x5fa   :  { %2756 = vmatprep.subr.bf16.mxu1 %v3498_v0 }
 0x5fd   :  { %2757 = vmatpush3.bf16.msra.mxu1 %v3638_v8 }
 0x5fe   :  { %2762 = vmatprep.subr.bf16.mxu1 %v3498_v0 }
 0x6cb   :  { %v695_v36 = vpop.f32.mrb[8].mxu1 }
 0x6cc   :  { %v707_v37 = vadd.f32 %v703_v34, %v695_v36  ;;  %v736_v38 = vadd.f32 %v706_v35, %v695_v36  ;;  %v2752_v39 = vpop.f32.mrb[9].mxu1 }
 0x6cd   :  { %v698_v40 = vpop.f32.mrb[10].mxu1  ;;  %v872_v39 = vunpack.c.l.bf16 %v3813_v33 }
 0x6ce   :  { %3290 = vtanh.f32 %v707_v37  ;;  %v2753_v41 = vpop.f32.mrb[11].mxu1  ;;  %v2481_v43 = vmul.f32 -1.442695, %v707_v37  ;;  %v2482_v47 = vmul.f32 -1.442695, %v736_v38 }
 0x6cf   :  { %3292 = vtanh.f32 %v736_v38  ;;  %v869_v38 = vunpack.c.h.bf16 %v3811_v32 }
 0x6d0   :  { %3294 = vpow2.f32 %v2481_v43 }
 0x6d1   :  { %3296 = vpow2.f32 %v2482_v47 }
 0x6d8   :  { %v3291_v42 = vpop.eup %3290 }
 0x6d9   :  { %v3293_v44 = vpop.eup %3292  ;;  %721 = vrot.lane.b32.xlu1 %v3291_v42, %s3502_s0 }
 0x6da   :  { %749 = vrot.lane.b32.xlu0 %v3293_v44, %s3502_s0  ;;  %v3295_v48 = vpop.eup %3294 }
 0x6db   :  { %v3297_v49 = vpop.eup %3296  ;;  %v711_v50 = vadd.f32 1.0, %v3295_v48 }
 0x6dc   :  { %v740_v51 = vadd.f32 1.0, %v3297_v49 }
 0x6dd   :  { %716 = vrot.lane.b32.xlu1 %v656_v45, %s3500_s19  ;;  %3298 = vrcp.f32 %v711_v50 }
 0x6de   :  { %744 = vrot.lane.b32.xlu0 %v656_v45, %s3493_s18  ;;  %3300 = vrcp.f32 %v740_v51 }
 0x6e7   :  { %v3299_v52 = vpop.eup %3298 }
 0x6e8   :  { %v3301_v54 = vpop.eup %3300 }
 0x74b   :  { %v722_v53 = vpop.permute.xlu1 %721 }
 0x74c   :  { %v724_v55 = vmul.f32 %v3299_v52, %v722_v53  ;;  %v750_v56 = vpop.permute.xlu0 %749 }
 0x74d   :  { %v752_v57 = vmul.f32 %v3301_v54, %v750_v56 }
 0x74e   :  { %726 = vrot.lane.b32.xlu1 %v724_v55, %s3500_s19 }
 0x74f   :  { %754 = vrot.lane.b32.xlu0 %v752_v57, %s3500_s19  ;;  %v717_v61 = vpop.permute.xlu1 %716 }
 0x750   :  { %v745_v62 = vpop.permute.xlu0 %744  ;;  %v719_v63 = vmul.f32 %v3299_v52, %v717_v61 }
 0x751   :  { %v747_v1 = vmul.f32 %v3301_v54, %v745_v62 }
 0x752   :  { %768 = vperm.xlu1 %3241, %v766_v59  }
 0x753   :  { %780 = vperm.xlu0 %3240, %v778_v60  }
 0x7c0   :  { %v727_v2 = vpop.permute.xlu1 %726 }
 0x7c1   :  { %v729_v3 = vadd.f32 %v727_v2, %v719_v63  ;;  %v755_v4 = vpop.permute.xlu0 %754 }
 0x7c2   :  { %v757_v5 = vadd.f32 %v755_v4, %v747_v1 }
 0x7c3   :  { %3302 = vtanh.f32 %v729_v3 }
 0x7c4   :  { %3304 = vtanh.f32 %v757_v5 }
 0x7cd   :  { %v3303_v6 = vpop.eup %3302 }
 0x7ce   :  { %v3305_v10 = vpop.eup %3304  ;;  %732 = vrot.lane.b32.xlu1 %v3303_v6, %s3503_s1 }
 0x7cf   :  { %760 = vrot.lane.b32.xlu0 %v3305_v10, %s3503_s1 }
 0x7d1   :  { %v3837_v13 = vpop.permute.xlu1 %768 }
 0x7d2   :  { %791 = vrot.lane.b32.xlu1 %v3800_v30, %s3504_s15  ;;  %v3839_v14 = vpop.permute.xlu0 %780  ;;  %vm770_vm14 = vcmp.eq.s32.totalorder %v3837_v13, 1 }
 0x7d3   :  { %800 = vrot.lane.b32.xlu0 %v3800_v30, %s3502_s0  ;;  %vm782_vm15 = vcmp.eq.s32.totalorder %v3839_v14, 1  ;;  %v809_v28 = vsel %vm770_vm14, %v729_v3, %v717_v61  ;;  %v932_v61 = vsel %vm930_vm3, 1, %v3501_v46 }
 0x7d4   :  { %v815_v29 = vsel %vm782_vm15, %v757_v5, %v745_v62  ;;  %v944_v62 = vsel %vm4526_vm9, 1, %v3501_v46 }
 0x840   :  { %v733_v18 = vpop.permute.xlu1 %732 }
 0x841   :  { %v761_v21 = vpop.permute.xlu0 %760  ;;  %v3841_v22 = vmul.f32 %v3299_v52, %v733_v18 }
 0x842   :  { %v3844_v23 = vmul.f32 %v3301_v54, %v761_v21 }
 0x844   :  { %v792_v9 = vpop.permute.xlu1 %791 }
 0x845   :  { %v801_v25 = vpop.permute.xlu0 %800  ;;  %v794_v26 = vsel %vm770_vm14, %v3841_v22, %v792_v9 }
 0x846   :  { %796 = vrot.lane.b32.xlu1 %v794_v26, %s3505_s7  ;;  %v803_v27 = vsel %vm782_vm15, %v3844_v23, %v801_v25 }
 0x847   :  { %805 = vrot.lane.b32.xlu0 %v803_v27, %s3503_s1 }
 0x84a   :  { %811 = vrot.lane.b32.xlu1 %v809_v28, %s3506_s26 }
 0x84b   :  { %817 = vrot.lane.b32.xlu0 %v815_v29, %s3493_s18 }
 0x8b8   :  { %v797_v30 = vpop.permute.xlu1 %796 }
 0x8b9   :  { %799 = vst.msk [vmem:[#allocation5] sm:$0xff] %vm443_vm6, %v797_v30  ;;  %v806_v31 = vpop.permute.xlu0 %805 }
 0x8ba   :  { %808 = vst.msk [vmem:[#allocation5] sm:$0xff] %vm456_vm7, %v806_v31 }
 0x8bc   :  { %v812_v34 = vpop.permute.xlu1 %811 }
 0x8bd   :  { %814 = vst.msk [vmem:[#allocation6] sm:$0xff] %vm443_vm6, %v812_v34  ;;  %v818_v35 = vpop.permute.xlu0 %817 }
 0x8be   :  { %820 = vst.msk [vmem:[#allocation6] sm:$0xff] %vm456_vm7, %v818_v35 }
 0x8c1   :  { %v3865_v36 = vld [vmem:[#allocation5] sm:$0xff] }
 0x8c2   :  { %v823_v37 = vpack.c.bf16 %v3865_v36, %v3865_v36 }
 0x8c4   :  { %2759 = vmatmul.mubr.msk.bf16.vlgmr.msra.gmra.mrb[12].mxu1 %vm308_vm0, %v823_v37 }
 0x8c5   :  { %2763 = vmatpush3.bf16.msra.mxu1 %v3633_v7  ;;  %2766 = vmatprep.mubr.msk.bf16.mxu1 %vm3499_vm1, %v3498_v0  ;;  %v822_v49 = vld [vmem:[#allocation6] sm:$0xff] }
 0x8c6   :  { %2764 = vmatprep.subr.bf16.mxu1 %v3498_v0 }
 0x8c9   :  { %2765 = vmatpush3.bf16.msra.mxu1 %v3638_v8 }
 0x8ca   :  { %2770 = vmatprep.subr.bf16.mxu1 %v3498_v0 }
 0x997   :  { %v861_v40 = vpop.f32.mrb[12].mxu1 }
 0x998   :  { %v873_v41 = vadd.f32 %v869_v38, %v861_v40  ;;  %v902_v42 = vadd.f32 %v872_v39, %v861_v40  ;;  %v2760_v44 = vpop.f32.mrb[13].mxu1 }
 0x999   :  { %v864_v45 = vpop.f32.mrb[14].mxu1  ;;  %v3933_v44 = vld [vmem:[#allocation2 + $0x10] sm:$0xff]  }
 0x99a   :  { %3306 = vtanh.f32 %v873_v41  ;;  %v2761_v43 = vpop.f32.mrb[15].mxu1  ;;  %v2484_v32 = vmul.f32 -1.442695, %v873_v41  ;;  %v2485_v33 = vmul.f32 -1.442695, %v902_v42  ;;  %v3935_v45 = vld [vmem:[#allocation2 + $0x8] sm:$0xff]  }
 0x99b   :  { %3308 = vtanh.f32 %v902_v42  ;;  %v1034_v43 = vunpack.c.l.bf16 %v3933_v44 }
 0x99c   :  { %3310 = vpow2.f32 %v2484_v32 }
 0x99d   :  { %3312 = vpow2.f32 %v2485_v33 }
 0x9a4   :  { %v3307_v47 = vpop.eup %3306 }
 0x9a5   :  { %v3309_v48 = vpop.eup %3308  ;;  %887 = vrot.lane.b32.xlu1 %v3307_v47, %s3502_s0  ;;  %v1036_v47 = vunpack.c.h.bf16 %v3935_v45 }
 0x9a6   :  { %915 = vrot.lane.b32.xlu0 %v3309_v48, %s3502_s0  ;;  %v3311_v50 = vpop.eup %3310 }
 0x9a7   :  { %v3313_v51 = vpop.eup %3312  ;;  %v877_v52 = vadd.f32 1.0, %v3311_v50 }
 0x9a8   :  { %v906_v53 = vadd.f32 1.0, %v3313_v51 }
 0x9a9   :  { %882 = vrot.lane.b32.xlu1 %v822_v49, %s3500_s19  ;;  %3314 = vrcp.f32 %v877_v52 }
 0x9aa   :  { %910 = vrot.lane.b32.xlu0 %v822_v49, %s3493_s18  ;;  %3316 = vrcp.f32 %v906_v53 }
 0x9b3   :  { %v3315_v54 = vpop.eup %3314 }
 0x9b4   :  { %v3317_v56 = vpop.eup %3316 }
 0xa17   :  { %v888_v55 = vpop.permute.xlu1 %887 }
 0xa18   :  { %v890_v57 = vmul.f32 %v3315_v54, %v888_v55  ;;  %v916_v59 = vpop.permute.xlu0 %915 }
 0xa19   :  { %v918_v60 = vmul.f32 %v3317_v56, %v916_v59 }
 0xa1a   :  { %892 = vrot.lane.b32.xlu1 %v890_v57, %s3500_s19 }
 0xa1b   :  { %920 = vrot.lane.b32.xlu0 %v918_v60, %s3500_s19  ;;  %v883_v63 = vpop.permute.xlu1 %882 }
 0xa1c   :  { %v911_v1 = vpop.permute.xlu0 %910  ;;  %v885_v2 = vmul.f32 %v3315_v54, %v883_v63 }
 0xa1d   :  { %v913_v3 = vmul.f32 %v3317_v56, %v911_v1 }
 0xa1e   :  { %934 = vperm.xlu1 %3241, %v932_v61  }
 0xa1f   :  { %946 = vperm.xlu0 %3240, %v944_v62  }
 0xa8c   :  { %v893_v4 = vpop.permute.xlu1 %892 }
 0xa8d   :  { %v895_v5 = vadd.f32 %v893_v4, %v885_v2  ;;  %v921_v6 = vpop.permute.xlu0 %920 }
 0xa8e   :  { %v923_v10 = vadd.f32 %v921_v6, %v913_v3 }
 0xa8f   :  { %3318 = vtanh.f32 %v895_v5 }
 0xa90   :  { %3320 = vtanh.f32 %v923_v10 }
 0xa99   :  { %v3319_v18 = vpop.eup %3318 }
 0xa9a   :  { %v3321_v21 = vpop.eup %3320  ;;  %898 = vrot.lane.b32.xlu1 %v3319_v18, %s3503_s1 }
 0xa9b   :  { %926 = vrot.lane.b32.xlu0 %v3321_v21, %s3503_s1 }
 0xa9d   :  { %v3898_v46 = vpop.permute.xlu1 %934 }
 0xa9e   :  { %957 = vrot.lane.b32.xlu1 %v3865_v36, %s3504_s15  ;;  %v3900_v9 = vpop.permute.xlu0 %946  ;;  %vm936_vm13 = vcmp.eq.s32.totalorder %v3898_v46, 1 }
 0xa9f   :  { %966 = vrot.lane.b32.xlu0 %v3865_v36, %s3502_s0  ;;  %vm948_vm9 = vcmp.eq.s32.totalorder %v3900_v9, 1  ;;  %v975_v35 = vsel %vm936_vm13, %v895_v5, %v883_v63 }
 0xaa0   :  { %v981_v36 = vsel %vm948_vm9, %v923_v10, %v911_v1 }
 0xb0c   :  { %v899_v25 = vpop.permute.xlu1 %898 }
 0xb0d   :  { %v927_v26 = vpop.permute.xlu0 %926  ;;  %v3902_v27 = vmul.f32 %v3315_v54, %v899_v25 }
 0xb0e   :  { %v3905_v28 = vmul.f32 %v3317_v56, %v927_v26 }
 0xb10   :  { %v958_v29 = vpop.permute.xlu1 %957 }
 0xb11   :  { %v967_v30 = vpop.permute.xlu0 %966  ;;  %v960_v31 = vsel %vm936_vm13, %v3902_v27, %v958_v29 }
 0xb12   :  { %962 = vrot.lane.b32.xlu1 %v960_v31, %s3505_s7  ;;  %v969_v34 = vsel %vm948_vm9, %v3905_v28, %v967_v30 }
 0xb13   :  { %971 = vrot.lane.b32.xlu0 %v969_v34, %s3503_s1 }
 0xb16   :  { %977 = vrot.lane.b32.xlu1 %v975_v35, %s3506_s26 }
 0xb17   :  { %983 = vrot.lane.b32.xlu0 %v981_v36, %s3493_s18 }
 0xb84   :  { %v963_v37 = vpop.permute.xlu1 %962 }
 0xb85   :  { %965 = vst.msk [vmem:[#allocation5] sm:$0xff] %vm443_vm6, %v963_v37  ;;  %v972_v38 = vpop.permute.xlu0 %971 }
 0xb86   :  { %974 = vst.msk [vmem:[#allocation5] sm:$0xff] %vm456_vm7, %v972_v38 }
 0xb88   :  { %v978_v39 = vpop.permute.xlu1 %977 }
 0xb89   :  { %980 = vst.msk [vmem:[#allocation6] sm:$0xff] %vm443_vm6, %v978_v39  ;;  %v984_v40 = vpop.permute.xlu0 %983 }
 0xb8a   :  { %986 = vst.msk [vmem:[#allocation6] sm:$0xff] %vm456_vm7, %v984_v40 }
 0xb8d   :  { %v987_v41 = vld [vmem:[#allocation5] sm:$0xff] }
 0xb8e   :  { %v989_v42 = vpack.c.bf16 %v987_v41, %v987_v41 }
 0xb90   :  { %2767 = vmatmul.mubr.msk.bf16.vlgmr.msra.gmra.mrb[16].mxu1 %vm308_vm0, %v989_v42 }
 0xb91   :  { %2771 = vmatpush3.bf16.msra.mxu1 %v3633_v7  ;;  %2774 = vmatprep.mubr.msk.bf16.mxu1 %vm3499_vm1, %v3498_v0  ;;  %v988_v52 = vld [vmem:[#allocation6] sm:$0xff] }
 0xb92   :  { %2772 = vmatprep.subr.bf16.mxu1 %v3498_v0 }
 0xb95   :  { %2773 = vmatpush3.bf16.msra.mxu1 %v3638_v8 }
 0xb96   :  { %2778 = vmatprep.subr.bf16.mxu1 %v3498_v0 }
 0xc63   :  { %v1027_v48 = vpop.f32.mrb[16].mxu1 }
 0xc64   :  { %v1037_v49 = vadd.f32 %v1034_v43, %v1027_v48  ;;  %v1066_v7 = vadd.f32 %v1036_v47, %v1027_v48  ;;  %v2768_v32 = vpop.f32.mrb[17].mxu1 }
 0xc65   :  { %v1030_v33 = vpop.f32.mrb[18].mxu1  ;;  %v3975_v32 = vld [vmem:[%s4514_s5] sm:$0xff]  }
 0xc66   :  { %3322 = vtanh.f32 %v1037_v49  ;;  %v2769_v50 = vpop.f32.mrb[19].mxu1  ;;  %v2487_v53 = vmul.f32 -1.442695, %v1037_v49  ;;  %v2488_v54 = vmul.f32 -1.442695, %v1066_v7  ;;  %v3984_v33 = vld [vmem:[%s4514_s5 + $0x8] sm:$0xff]  }
 0xc67   :  { %3324 = vtanh.f32 %v1066_v7  ;;  %v1184_v50 = vunpack.c.h.bf16 %v3933_v44 }
 0xc68   :  { %3326 = vpow2.f32 %v2487_v53 }
 0xc69   :  { %3328 = vpow2.f32 %v2488_v54 }
 0xc70   :  { %v3323_v51 = vpop.eup %3322 }
 0xc71   :  { %v3325_v8 = vpop.eup %3324  ;;  %1051 = vrot.lane.b32.xlu1 %v3323_v51, %s3502_s0  ;;  %v1186_v51 = vunpack.c.l.bf16 %v3935_v45 }
 0xc72   :  { %1079 = vrot.lane.b32.xlu0 %v3325_v8, %s3502_s0  ;;  %v3327_v55 = vpop.eup %3326 }
 0xc73   :  { %v3329_v56 = vpop.eup %3328  ;;  %v1041_v57 = vadd.f32 1.0, %v3327_v55 }
 0xc74   :  { %v1070_v59 = vadd.f32 1.0, %v3329_v56 }
 0xc75   :  { %1046 = vrot.lane.b32.xlu1 %v988_v52, %s3500_s19  ;;  %3330 = vrcp.f32 %v1041_v57 }
 0xc76   :  { %1074 = vrot.lane.b32.xlu0 %v988_v52, %s3493_s18  ;;  %3332 = vrcp.f32 %v1070_v59 }
 0xc7f   :  { %v3331_v60 = vpop.eup %3330 }
 0xc80   :  { %v3333_v62 = vpop.eup %3332 }
 0xce3   :  { %v1052_v61 = vpop.permute.xlu1 %1051 }
 0xce4   :  { %v1054_v63 = vmul.f32 %v3331_v60, %v1052_v61  ;;  %v1080_v1 = vpop.permute.xlu0 %1079 }
 0xce5   :  { %v1082_v2 = vmul.f32 %v3333_v62, %v1080_v1 }
 0xce6   :  { %1056 = vrot.lane.b32.xlu1 %v1054_v63, %s3500_s19 }
 0xce7   :  { %1084 = vrot.lane.b32.xlu0 %v1082_v2, %s3500_s19  ;;  %v1047_v3 = vpop.permute.xlu1 %1046 }
 0xce8   :  { %v1075_v4 = vpop.permute.xlu0 %1074  ;;  %v1049_v5 = vmul.f32 %v3331_v60, %v1047_v3 }
 0xce9   :  { %v1077_v6 = vmul.f32 %v3333_v62, %v1075_v4 }
 0xd58   :  { %v1057_v10 = vpop.permute.xlu1 %1056 }
 0xd59   :  { %v1059_v18 = vadd.f32 %v1057_v10, %v1049_v5  ;;  %v1085_v21 = vpop.permute.xlu0 %1084 }
 0xd5a   :  { %v1087_v25 = vadd.f32 %v1085_v21, %v1077_v6 }
 0xd5b   :  { %3334 = vtanh.f32 %v1059_v18  ;;  %v1125_v40 = vsel %vm948_vm9, %v1059_v18, %v1047_v3 }
 0xd5c   :  { %3336 = vtanh.f32 %v1087_v25 }
 0xd65   :  { %v3335_v26 = vpop.eup %3334 }
 0xd66   :  { %v3337_v29 = vpop.eup %3336  ;;  %1062 = vrot.lane.b32.xlu1 %v3335_v26, %s3503_s1 }
 0xd67   :  { %1090 = vrot.lane.b32.xlu0 %v3337_v29, %s3503_s1 }
 0xd6a   :  { %1107 = vrot.lane.b32.xlu1 %v987_v41, %s3504_s15 }
 0xd6b   :  { %1116 = vrot.lane.b32.xlu0 %v987_v41, %s3502_s0  ;;  %v1131_v41 = vsel %vm936_vm13, %v1087_v25, %v1075_v4 }
 0xdd8   :  { %v1063_v30 = vpop.permute.xlu1 %1062 }
 0xdd9   :  { %v1091_v31 = vpop.permute.xlu0 %1090  ;;  %v3949_v34 = vmul.f32 %v3331_v60, %v1063_v30 }
 0xdda   :  { %v3951_v35 = vmul.f32 %v3333_v62, %v1091_v31 }
 0xddc   :  { %v1108_v36 = vpop.permute.xlu1 %1107 }
 0xddd   :  { %v1117_v37 = vpop.permute.xlu0 %1116  ;;  %v1110_v38 = vsel %vm948_vm9, %v3949_v34, %v1108_v36 }
 0xdde   :  { %1112 = vrot.lane.b32.xlu1 %v1110_v38, %s3505_s7  ;;  %v1119_v39 = vsel %vm936_vm13, %v3951_v35, %v1117_v37 }
 0xddf   :  { %1121 = vrot.lane.b32.xlu0 %v1119_v39, %s3503_s1 }
 0xde2   :  { %1127 = vrot.lane.b32.xlu1 %v1125_v40, %s3506_s26 }
 0xde3   :  { %1133 = vrot.lane.b32.xlu0 %v1131_v41, %s3493_s18 }
 0xe50   :  { %v1113_v42 = vpop.permute.xlu1 %1112 }
 0xe51   :  { %1115 = vst.msk [vmem:[#allocation5] sm:$0xff] %vm443_vm6, %v1113_v42  ;;  %v1122_v43 = vpop.permute.xlu0 %1121 }
 0xe52   :  { %1124 = vst.msk [vmem:[#allocation5] sm:$0xff] %vm456_vm7, %v1122_v43 }
 0xe54   :  { %v1128_v47 = vpop.permute.xlu1 %1127 }
 0xe55   :  { %1130 = vst.msk [vmem:[#allocation6] sm:$0xff] %vm443_vm6, %v1128_v47  ;;  %v1134_v48 = vpop.permute.xlu0 %1133 }
 0xe56   :  { %1136 = vst.msk [vmem:[#allocation6] sm:$0xff] %vm456_vm7, %v1134_v48 }
 0xe59   :  { %v1137_v49 = vld [vmem:[#allocation5] sm:$0xff] }
 0xe5a   :  { %v1139_v7 = vpack.c.bf16 %v1137_v49, %v1137_v49 }
 0xe5c   :  { %2775 = vmatmul.mubr.msk.bf16.vlgmr.msra.gmra.mrb[20].mxu1 %vm308_vm0, %v1139_v7 }
 0xe5d   :  { %2779 = vmatpush3.bf16.msra.mxu1 %v3975_v32  ;;  %2782 = vmatprep.mubr.msk.bf16.mxu1 %vm3499_vm1, %v3498_v0  ;;  %v1138_v60 = vld [vmem:[#allocation6] sm:$0xff] }
 0xe5e   :  { %2780 = vmatprep.subr.bf16.mxu1 %v3498_v0 }
 0xe61   :  { %2781 = vmatpush3.bf16.msra.mxu1 %v3984_v33 }
 0xe62   :  { %2786 = vmatprep.subr.bf16.mxu1 %v3498_v0 }
 0xf2f   :  { %v1177_v8 = vpop.f32.mrb[20].mxu1 }
 0xf30   :  { %v1187_v52 = vadd.f32 %v1184_v50, %v1177_v8  ;;  %v1216_v53 = vadd.f32 %v1186_v51, %v1177_v8  ;;  %v2776_v54 = vpop.f32.mrb[21].mxu1 }
 0xf31   :  { %v1180_v55 = vpop.f32.mrb[22].mxu1 }
 0xf32   :  { %3338 = vtanh.f32 %v1187_v52  ;;  %v2777_v56 = vpop.f32.mrb[23].mxu1  ;;  %v2490_v44 = vmul.f32 -1.442695, %v1187_v52  ;;  %v2491_v45 = vmul.f32 -1.442695, %v1216_v53 }
 0xf33   :  { %3340 = vtanh.f32 %v1216_v53  ;;  %v4028_v56 = vld [vmem:[#allocation2 + $0x18] sm:$0xff]  }
 0xf34   :  { %3342 = vpow2.f32 %v2490_v44 }
 0xf35   :  { %3344 = vpow2.f32 %v2491_v45 }
 0xf3c   :  { %v3339_v57 = vpop.eup %3338 }
 0xf3d   :  { %v3341_v59 = vpop.eup %3340  ;;  %1201 = vrot.lane.b32.xlu1 %v3339_v57, %s3502_s0  ;;  %v4030_v57 = vld [vmem:[#allocation2] sm:$0xff]  }
 0xf3e   :  { %1229 = vrot.lane.b32.xlu0 %v3341_v59, %s3502_s0  ;;  %v3343_v61 = vpop.eup %3342  ;;  %v1334_v59 = vunpack.c.l.bf16 %v4028_v56 }
 0xf3f   :  { %v3345_v62 = vpop.eup %3344  ;;  %v1191_v63 = vadd.f32 1.0, %v3343_v61 }
 0xf40   :  { %v1220_v1 = vadd.f32 1.0, %v3345_v62 }
 0xf41   :  { %1196 = vrot.lane.b32.xlu1 %v1138_v60, %s3500_s19  ;;  %3346 = vrcp.f32 %v1191_v63 }
 0xf42   :  { %1224 = vrot.lane.b32.xlu0 %v1138_v60, %s3493_s18  ;;  %3348 = vrcp.f32 %v1220_v1  ;;  %v1336_v60 = vunpack.c.h.bf16 %v4030_v57 }
 0xf4b   :  { %v3347_v2 = vpop.eup %3346 }
 0xf4c   :  { %v3349_v4 = vpop.eup %3348 }
 0xfaf   :  { %v1202_v3 = vpop.permute.xlu1 %1201 }
 0xfb0   :  { %v1204_v5 = vmul.f32 %v3347_v2, %v1202_v3  ;;  %v1230_v6 = vpop.permute.xlu0 %1229 }
 0xfb1   :  { %v1232_v10 = vmul.f32 %v3349_v4, %v1230_v6 }
 0xfb2   :  { %1206 = vrot.lane.b32.xlu1 %v1204_v5, %s3500_s19 }
 0xfb3   :  { %1234 = vrot.lane.b32.xlu0 %v1232_v10, %s3500_s19  ;;  %v1197_v18 = vpop.permute.xlu1 %1196 }
 0xfb4   :  { %v1225_v21 = vpop.permute.xlu0 %1224  ;;  %v1199_v25 = vmul.f32 %v3347_v2, %v1197_v18 }
 0xfb5   :  { %v1227_v26 = vmul.f32 %v3349_v4, %v1225_v21 }
0x1024   :  { %v1207_v29 = vpop.permute.xlu1 %1206 }
0x1025   :  { %v1209_v30 = vadd.f32 %v1207_v29, %v1199_v25  ;;  %v1235_v31 = vpop.permute.xlu0 %1234 }
0x1026   :  { %v1237_v36 = vadd.f32 %v1235_v31, %v1227_v26 }
0x1027   :  { %3350 = vtanh.f32 %v1209_v30 }
0x1028   :  { %3352 = vtanh.f32 %v1237_v36  ;;  %v1281_v50 = vsel %vm770_vm14, %v1237_v36, %v1225_v21 }
0x1031   :  { %v3351_v37 = vpop.eup %3350 }
0x1032   :  { %v3353_v38 = vpop.eup %3352  ;;  %1212 = vrot.lane.b32.xlu1 %v3351_v37, %s3503_s1 }
0x1033   :  { %1240 = vrot.lane.b32.xlu0 %v3353_v38, %s3503_s1 }
0x1036   :  { %1257 = vrot.lane.b32.xlu1 %v1137_v49, %s3504_s15 }
0x1037   :  { %1266 = vrot.lane.b32.xlu0 %v1137_v49, %s3502_s0  ;;  %v1275_v49 = vsel %vm782_vm15, %v1209_v30, %v1197_v18 }
0x10a4   :  { %v1213_v39 = vpop.permute.xlu1 %1212 }
0x10a5   :  { %v1241_v40 = vpop.permute.xlu0 %1240  ;;  %v4000_v41 = vmul.f32 %v3347_v2, %v1213_v39 }
0x10a6   :  { %v4002_v42 = vmul.f32 %v3349_v4, %v1241_v40 }
0x10a8   :  { %v1258_v43 = vpop.permute.xlu1 %1257 }
0x10a9   :  { %v1267_v47 = vpop.permute.xlu0 %1266  ;;  %v1260_v48 = vsel %vm782_vm15, %v4000_v41, %v1258_v43 }
0x10aa   :  { %1262 = vrot.lane.b32.xlu1 %v1260_v48, %s3505_s7  ;;  %v1269_v7 = vsel %vm770_vm14, %v4002_v42, %v1267_v47 }
0x10ab   :  { %1271 = vrot.lane.b32.xlu0 %v1269_v7, %s3503_s1 }
0x10ae   :  { %1277 = vrot.lane.b32.xlu1 %v1275_v49, %s3506_s26 }
0x10af   :  { %1283 = vrot.lane.b32.xlu0 %v1281_v50, %s3493_s18 }
0x111c   :  { %v1263_v51 = vpop.permute.xlu1 %1262 }
0x111d   :  { %1265 = vst.msk [vmem:[#allocation5] sm:$0xff] %vm443_vm6, %v1263_v51  ;;  %v1272_v8 = vpop.permute.xlu0 %1271 }
0x111e   :  { %1274 = vst.msk [vmem:[#allocation5] sm:$0xff] %vm456_vm7, %v1272_v8 }
0x1120   :  { %v1278_v52 = vpop.permute.xlu1 %1277 }
0x1121   :  { %1280 = vst.msk [vmem:[#allocation6] sm:$0xff] %vm443_vm6, %v1278_v52  ;;  %v1284_v53 = vpop.permute.xlu0 %1283 }
0x1122   :  { %1286 = vst.msk [vmem:[#allocation6] sm:$0xff] %vm456_vm7, %v1284_v53 }
0x1125   :  { %v1287_v54 = vld [vmem:[#allocation5] sm:$0xff] }
0x1126   :  { %v1289_v55 = vpack.c.bf16 %v1287_v54, %v1287_v54 }
0x1128   :  { %2783 = vmatmul.mubr.msk.bf16.vlgmr.msra.gmra.mrb[24].mxu1 %vm308_vm0, %v1289_v55 }
0x1129   :  { %2787 = vmatpush3.bf16.msra.mxu1 %v3975_v32  ;;  %2790 = vmatprep.mubr.msk.bf16.mxu1 %vm3499_vm1, %v3498_v0 }
0x112a   :  { %2788 = vmatprep.subr.bf16.mxu1 %v3498_v0 }
0x112d   :  { %2789 = vmatpush3.bf16.msra.mxu1 %v3984_v33  ;;  %v1288_v33 = vld [vmem:[#allocation6] sm:$0xff] }
0x11fb   :  { %v1327_v44 = vpop.f32.mrb[24].mxu1 }
0x11fc   :  { %v1337_v45 = vadd.f32 %v1334_v59, %v1327_v44  ;;  %v1366_v61 = vadd.f32 %v1336_v60, %v1327_v44  ;;  %v2784_v62 = vpop.f32.mrb[25].mxu1 }
0x11fd   :  { %v1330_v32 = vpop.f32.mrb[26].mxu1 }
0x11fe   :  { %3354 = vtanh.f32 %v1337_v45  ;;  %v2785_v63 = vpop.f32.mrb[27].mxu1  ;;  %v2493_v3 = vmul.f32 -1.442695, %v1337_v45  ;;  %v2494_v4 = vmul.f32 -1.442695, %v1366_v61 }
0x11ff   :  { %3356 = vtanh.f32 %v1366_v61 }
0x1200   :  { %3358 = vpow2.f32 %v2493_v3  ;;  %v1486_v3 = vunpack.c.l.bf16 %v4030_v57  ;;  %v438_v57 = vsel %vm437_vm4, %v3715_v20, 0.0 }
0x1201   :  { %3360 = vpow2.f32 %v2494_v4 }
0x1208   :  { %v3355_v1 = vpop.eup %3354 }
0x1209   :  { %v3357_v2 = vpop.eup %3356  ;;  %1351 = vrot.lane.b32.xlu1 %v3355_v1, %s3502_s0 }
0x120a   :  { %1379 = vrot.lane.b32.xlu0 %v3357_v2, %s3502_s0  ;;  %v3359_v5 = vpop.eup %3358 }
0x120b   :  { %v3361_v6 = vpop.eup %3360  ;;  %v1341_v10 = vadd.f32 1.0, %v3359_v5 }
0x120c   :  { %v1370_v18 = vadd.f32 1.0, %v3361_v6 }
0x120d   :  { %1346 = vrot.lane.b32.xlu1 %v1288_v33, %s3500_s19  ;;  %3362 = vrcp.f32 %v1341_v10 }
0x120e   :  { %1374 = vrot.lane.b32.xlu0 %v1288_v33, %s3493_s18  ;;  %3364 = vrcp.f32 %v1370_v18  ;;  %v1484_v33 = vunpack.c.h.bf16 %v4028_v56 }
0x1217   :  { %v3363_v21 = vpop.eup %3362 }
0x1218   :  { %v3365_v26 = vpop.eup %3364 }
0x127b   :  { %v1352_v25 = vpop.permute.xlu1 %1351 }
0x127c   :  { %v1354_v29 = vmul.f32 %v3363_v21, %v1352_v25  ;;  %v1380_v30 = vpop.permute.xlu0 %1379 }
0x127d   :  { %v1382_v31 = vmul.f32 %v3365_v26, %v1380_v30 }
0x127e   :  { %1356 = vrot.lane.b32.xlu1 %v1354_v29, %s3500_s19 }
0x127f   :  { %1384 = vrot.lane.b32.xlu0 %v1382_v31, %s3500_s19  ;;  %v1347_v36 = vpop.permute.xlu1 %1346 }
0x1280   :  { %v1375_v37 = vpop.permute.xlu0 %1374  ;;  %v1349_v38 = vmul.f32 %v3363_v21, %v1347_v36 }
0x1281   :  { %v1377_v39 = vmul.f32 %v3365_v26, %v1375_v37 }
0x12f0   :  { %v1357_v40 = vpop.permute.xlu1 %1356 }
0x12f1   :  { %v1359_v43 = vadd.f32 %v1357_v40, %v1349_v38  ;;  %v1385_v47 = vpop.permute.xlu0 %1384 }
0x12f2   :  { %v1387_v48 = vadd.f32 %v1385_v47, %v1377_v39  ;;  %v1100_v39 = vsel %vm936_vm13, %v3951_v35, 0.0  ;;  %v605_v35 = vsel %vm604_vm10, %v3776_v15, 0.0 }
0x12f3   :  { %3366 = vtanh.f32 %v1359_v43 }
0x12f4   :  { %3368 = vtanh.f32 %v1387_v48  ;;  %v1431_v44 = vsel %vm604_vm10, %v1387_v48, %v1375_v37  ;;  %v771_v37 = vsel %vm770_vm14, %v3841_v22, 0.0 }
0x12fd   :  { %v3367_v7 = vpop.eup %3366 }
0x12fe   :  { %v3369_v49 = vpop.eup %3368  ;;  %1362 = vrot.lane.b32.xlu1 %v3367_v7, %s3503_s1 }
0x12ff   :  { %1390 = vrot.lane.b32.xlu0 %v3369_v49, %s3503_s1  ;;  %v937_v49 = vsel %vm936_vm13, %v3902_v27, 0.0 }
0x1302   :  { %1407 = vrot.lane.b32.xlu1 %v1287_v54, %s3504_s15 }
0x1303   :  { %1416 = vrot.lane.b32.xlu0 %v1287_v54, %s3502_s0  ;;  %v1425_v54 = vsel %vm616_vm11, %v1359_v43, %v1347_v36 }
0x1370   :  { %v1363_v50 = vpop.permute.xlu1 %1362 }
0x1371   :  { %v1391_v51 = vpop.permute.xlu0 %1390  ;;  %v4044_v8 = vmul.f32 %v3363_v21, %v1363_v50  ;;  %v3256_v50 = vld [vmem:[#allocation8] sm:$0xff]  }
0x1372   :  { %v1393_v52 = vmul.f32 %v3365_v26, %v1391_v51  ;;  %2794 = vmatprep.subr.bf16.mxu1 %v3256_v50  ;;  %v3257_v51 = vld [vmem:[#allocation8 + $0x8] sm:$0xff]  }
0x1374   :  { %v1408_v53 = vpop.permute.xlu1 %1407  ;;  %v1400_v38 = vsel %vm604_vm10, %v1393_v52, 0.0 }
0x1375   :  { %v1410_v55 = vsel %vm616_vm11, %v4044_v8, %v1408_v53  ;;  %v1417_v59 = vpop.permute.xlu0 %1416 }
0x1376   :  { %v1419_v60 = vsel %vm604_vm10, %v1393_v52, %v1417_v59  ;;  %1412 = vrot.lane.b32.xlu1 %v1410_v55, %s3505_s7  ;;  %v1250_v59 = vsel %vm770_vm14, %v4002_v42, 0.0 }
0x1377   :  { %1421 = vrot.lane.b32.xlu0 %v1419_v60, %s3503_s1 }
0x137a   :  { %1427 = vrot.lane.b32.xlu1 %v1425_v54, %s3506_s26 }
0x137b   :  { %1433 = vrot.lane.b32.xlu0 %v1431_v44, %s3493_s18 }
0x13e8   :  { %v1413_v45 = vpop.permute.xlu1 %1412 }
0x13e9   :  { %1415 = vst.msk [vmem:[#allocation5] sm:$0xff] %vm443_vm6, %v1413_v45  ;;  %v1422_v61 = vpop.permute.xlu0 %1421 }
0x13ea   :  { %1424 = vst.msk [vmem:[#allocation5] sm:$0xff] %vm456_vm7, %v1422_v61 }
0x13ec   :  { %v1428_v62 = vpop.permute.xlu1 %1427 }
0x13ed   :  { %1430 = vst.msk [vmem:[#allocation6] sm:$0xff] %vm443_vm6, %v1428_v62  ;;  %v1434_v32 = vpop.permute.xlu0 %1433 }
0x13ee   :  { %1436 = vst.msk [vmem:[#allocation6] sm:$0xff] %vm456_vm7, %v1434_v32 }
0x13f1   :  { %v4063_v63 = vld [vmem:[#allocation5] sm:$0xff] }
0x13f2   :  { %v1439_v1 = vpack.c.bf16 %v4063_v63, %v4063_v63 }
0x13f4   :  { %2791 = vmatmul.mubr.msk.bf16.vlgmr.msra.gmra.mrb[28].mxu1 %vm308_vm0, %v1439_v1 }
0x13f5   :  { %v4068_v2 = vld [vmem:[#allocation6] sm:$0xff]  ;;  %2795 = vmatpush3.bf16.msra.mxu1 %v3256_v50 }
0x13f6   :  { %1524 = vrot.lane.b32.xlu0 %v4068_v2, %s3493_s18  ;;  %2796 = vmatprep.subr.bf16.mxu1 %v3257_v51 }
0x13f9   :  { %2797 = vmatpush3.bf16.msra.mxu1 %v3257_v51  ;;  %v2505_v51 = vld [vmem:[%s4519_s10] ss:$0 sm:$0xff] }
0x1468   :  { %v4093_v20 = vpop.permute.xlu0 %1524 }
0x14c7   :  { %v1477_v4 = vpop.f32.mrb[28].mxu1 }
0x14c8   :  { %v4074_v5 = vadd.f32 %v1484_v33, %v1477_v4  ;;  %v1516_v6 = vadd.f32 %v1486_v3, %v1477_v4  ;;  %v2792_v10 = vpop.f32.mrb[29].mxu1 }
0x14c9   :  { %v1480_v18 = vpop.f32.mrb[30].mxu1 }
0x14ca   :  { %v2793_v21 = vpop.f32.mrb[31].mxu1  ;;  %3370 = vtanh.f32 %v1516_v6  ;;  %v2497_v26 = vmul.f32 -1.442695, %v1516_v6  ;;  %v2496_v45 = vmul.f32 -1.442695, %v4074_v5 }
0x14cc   :  { %3372 = vpow2.f32 %v2497_v26 }
0x14d4   :  { %v3371_v25 = vpop.eup %3370 }
0x14d5   :  { %1529 = vrot.lane.b32.xlu1 %v3371_v25, %s3502_s0 }
0x14d6   :  { %v3373_v29 = vpop.eup %3372 }
0x14d7   :  { %v1520_v30 = vadd.f32 1.0, %v3373_v29 }
0x14d9   :  { %3374 = vrcp.f32 %v1520_v30 }
0x14e3   :  { %v3375_v31 = vpop.eup %3374 }
0x14e4   :  { %v1527_v40 = vmul.f32 %v3375_v31, %v4093_v20 }
0x1547   :  { %v1530_v56 = vpop.permute.xlu1 %1529 }
0x1548   :  { %v1532_v36 = vmul.f32 %v3375_v31, %v1530_v56  ;;  %v80_v56 = vld [vmem:[#allocation11 + $0x8] sm:$0xff] }
0x154a   :  { %1534 = vrot.lane.b32.xlu1 %v1532_v36, %s3500_s19  ;;  %v81_v36 = vld [vmem:[#allocation11 + $0x10] sm:$0xff] }
0x154e   :  { %440 = vrot.lane.b32.xlu1 %v438_v57, %s3505_s7  ;;  %v949_v57 = vsel %vm948_vm9, %v3905_v28, 0.0  ;;  %v84_v28 = vld [vmem:[#allocation11 + $0x28] sm:$0xff] }
0x1552   :  { %773 = vrot.lane.b32.xlu1 %v771_v37, %s3505_s7  ;;  %v3507_v37 = vmov 0.0|0.0  }
0x1553   :  { %3051 = vmatprep.subr.bf16.mxu0 %v3507_v37  ;;  %3075 = vmatprep.subr.bf16.mxu1 %v3507_v37 }
0x1556   :  { %1402 = vrot.lane.b32.xlu1 %v1400_v38, %s3503_s1 }
0x155a   :  { %1102 = vrot.lane.b32.xlu1 %v1100_v39, %s3503_s1  ;;  %v82_v39 = vld [vmem:[#allocation11 + $0x18] sm:$0xff] }
0x15bc   :  { %v1535_v43 = vpop.permute.xlu1 %1534 }
0x15bd   :  { %v4096_v47 = vadd.f32 %v1535_v43, %v1527_v40  ;;  %v4154_v40 = vpack.c.bf16 %v82_v39, %v81_v36  ;;  %v83_v43 = vld [vmem:[#allocation11 + $0x20] sm:$0xff] }
0x15bf   :  { %3376 = vtanh.f32 %v4096_v47 }
0x15c0   :  { %v441_v22 = vpop.permute.xlu1 %440  ;;  %3378 = vtanh.f32 %v4074_v5 }
0x15c1   :  { %444 = vst.msk [vmem:[#allocation3] sm:$0xff] %vm443_vm6, %v441_v22  ;;  %3380 = vpow2.f32 %v2496_v45  ;;  %v4160_v22 = vpack.c.bf16 %v84_v28, %v83_v43  ;;  %v783_v45 = vsel %vm782_vm15, %v3844_v23, 0.0  ;;  %v91_v23 = vld [vmem:[#allocation11 + $0x60] sm:$0xff] }
0x15c4   :  { %v774_v48 = vpop.permute.xlu1 %773 }
0x15c5   :  { %777 = vst.msk [vmem:[#allocation3 + $0x10] sm:$0xff] %vm443_vm6, %v774_v48  ;;  %v85_v48 = vld [vmem:[#allocation11 + $0x30] sm:$0xff] }
0x15c8   :  { %v1403_v15 = vpop.permute.xlu1 %1402 }
0x15c9   :  { %v3377_v7 = vpop.eup %3376 }
0x15ca   :  { %1540 = vrot.lane.b32.xlu0 %v3377_v7, %s3503_s1  ;;  %v3379_v44 = vpop.eup %3378  ;;  %v86_v7 = vld [vmem:[#allocation11 + $0x38] sm:$0xff] }
0x15cb   :  { %v3381_v61 = vpop.eup %3380 }
0x15cc   :  { %v1103_v54 = vpop.permute.xlu1 %1102  ;;  %v1491_v62 = vadd.f32 1.0, %v3381_v61  ;;  %v89_v61 = vld [vmem:[#allocation11 + $0x50] sm:$0xff] }
0x15ce   :  { %607 = vrot.lane.b32.xlu0 %v605_v35, %s3505_s7  ;;  %3382 = vrcp.f32 %v1491_v62  ;;  %v4166_v35 = vpack.c.bf16 %v86_v7, %v85_v48  ;;  %v90_v62 = vld [vmem:[#allocation11 + $0x58] sm:$0xff] }
0x15d2   :  { %939 = vrot.lane.b32.xlu0 %v937_v49, %s3505_s7  ;;  %v4178_v49 = vld [vmem:[%s4517_s8] ss:$0 sm:$0xff] }
0x15d8   :  { %v4131_v1 = vpop.eup %3382 }
0x163c   :  { %v1541_v52 = vpop.permute.xlu0 %1540 }
0x163d   :  { %v4111_v53 = vmul.f32 %v3375_v31, %v1541_v52  ;;  %v79_v31 = vld [vmem:[#allocation11] sm:$0xff] }
0x163e   :  { %v4149_v38 = vpack.c.bf16 %v80_v56, %v79_v31 }
0x163f   :  { %v1550_v55 = vsel %vm437_vm4, %v4111_v53, 0.0 }
0x1640   :  { %1552 = vrot.lane.b32.xlu0 %v1550_v55, %s3503_s1  ;;  %v608_v27 = vpop.permute.xlu0 %607  ;;  %3053 = vmatpush3.bf16.msra.mxu0 %v4149_v38 }
0x1641   :  { %611 = vst.msk [vmem:[#allocation3 + $0x8] sm:$0xff] %vm443_vm6, %v608_v27  ;;  %3054 = vmatprep.subr.bf16.mxu0 %v3507_v37 }
0x1642   :  { %1405 = vst.msk [vmem:[#allocation3 + $0x8] sm:$0xff] %vm456_vm7, %v1403_v15 }
0x1644   :  { %1252 = vrot.lane.b32.xlu0 %v1250_v59, %s3503_s1  ;;  %v940_v60 = vpop.permute.xlu0 %939  ;;  %3056 = vmatpush3.bf16.msra.mxu0 %v4154_v40 }
0x1645   :  { %943 = vst.msk [vmem:[#allocation3 + $0x18] sm:$0xff] %vm443_vm6, %v940_v60  ;;  %3057 = vmatprep.subr.bf16.mxu0 %v3507_v37  ;;  %v87_v60 = vld [vmem:[#allocation11 + $0x40] sm:$0xff] }
0x1646   :  { %1105 = vst.msk [vmem:[#allocation3 + $0x18] sm:$0xff] %vm456_vm7, %v1103_v54  ;;  %v88_v54 = vld [vmem:[#allocation11 + $0x48] sm:$0xff] }
0x1648   :  { %1501 = vrot.lane.b32.xlu0 %v3379_v44, %s3502_s0  ;;  %3059 = vmatpush3.bf16.msra.mxu0 %v4160_v22  ;;  %v4196_v44 = vpack.c.bf16 %v88_v54, %v87_v60 }
0x1649   :  { %v1588_v4 = vld [vmem:[#allocation3 + $0x8] sm:$0xff]  ;;  %3060 = vmatprep.subr.bf16.mxu0 %v3507_v37 }
0x164c   :  { %1496 = vrot.lane.b32.xlu0 %v4068_v2, %s3500_s19  ;;  %3062 = vmatpush3.bf16.msra.mxu0 %v4166_v35 }
0x164d   :  { %v1590_v10 = vld [vmem:[#allocation3 + $0x18] sm:$0xff]  ;;  %3063 = vmatprep.subr.bf16.mxu0 %v3507_v37 }
0x1650   :  { %3065 = vmatpush3.bf16.msra.mxu0 %v4196_v44 }
0x1651   :  { %3066 = vmatprep.subr.bf16.mxu0 %v3507_v37 }
0x16b2   :  { %v1553_v42 = vpop.permute.xlu0 %1552 }
0x16b3   :  { %1555 = vst.msk [vmem:[#allocation3] sm:$0xff] %vm456_vm7, %v1553_v42  ;;  %v4206_v42 = vpack.c.bf16 %v90_v62, %v89_v61 }
0x16b5   :  { %3068 = vmatpush3.bf16.msra.mxu0 %v4206_v42 }
0x16b6   :  { %v1253_v32 = vpop.permute.xlu0 %1252  ;;  %3069 = vmatprep.subr.bf16.mxu0 %v3507_v37 }
0x16b7   :  { %1255 = vst.msk [vmem:[#allocation3 + $0x10] sm:$0xff] %vm456_vm7, %v1253_v32  ;;  %v450_v32 = vsel %vm449_vm5, %v3724_v24, 0.0  ;;  %v617_v24 = vsel %vm616_vm11, %v3779_v16, 0.0  ;;  %v1094_v16 = vsel %vm948_vm9, %v3949_v34, 0.0 }
0x16ba   :  { %v1502_v33 = vpop.permute.xlu0 %1501  ;;  %v1587_v3 = vld [vmem:[#allocation3] sm:$0xff] }
0x16bb   :  { %v1504_v6 = vmul.f32 %v4131_v1, %v1502_v33  ;;  %v1595_v2 = vpack.c.bf16 %v1588_v4, %v1587_v3  ;;  %v92_v33 = vld [vmem:[#allocation11 + $0x68] sm:$0xff] }
0x16bc   :  { %v4218_v4 = vpack.c.bf16 %v92_v33, %v91_v23 }
0x16bd   :  { %2798 = vmatprep.mubr.msk.bf16.mxu1 %vm308_vm0, %v1595_v2  ;;  %1506 = vrot.lane.b32.xlu0 %v1504_v6, %s3500_s19  ;;  %v93_v6 = vld [vmem:[#allocation11 + $0x70] sm:$0xff]  ;;  %v94_v2 = vld [vmem:[#allocation11 + $0x78] sm:$0xff] }
0x16be   :  { %v1589_v5 = vld [vmem:[#allocation3 + $0x10] sm:$0xff]  ;;  %v4137_v21 = vpop.permute.xlu0 %1496  ;;  %3071 = vmatpush3.bf16.msra.mxu0 %v4218_v4 }
0x16bf   :  { %v1596_v18 = vpack.c.bf16 %v1590_v10, %v1589_v5  ;;  %v1499_v25 = vmul.f32 %v4131_v1, %v4137_v21  ;;  %3072 = vmatprep.subr.bf16.mxu0 %v3507_v37  ;;  %v4228_v10 = vpack.c.bf16 %v94_v2, %v93_v6 }
0x16c1   :  { %2799 = vmatmul.mubr.msk.bf16.vlgmr.msra.gmra.mrb[32].mxu1 %vm308_vm0, %v1596_v18  ;;  %v1244_v18 = vsel %vm782_vm15, %v4000_v41, 0.0 }
0x16c2   :  { %3077 = vmatpush3.bf16.msra.mxu1 %v4149_v38  ;;  %3074 = vmatpush3.bf16.msra.mxu0 %v4228_v10 }
0x16c3   :  { %3078 = vmatprep.subr.bf16.mxu1 %v3507_v37  ;;  %3099 = vmatprep.subr.bf16.mxu0 %v3507_v37 }
0x16c6   :  { %3080 = vmatpush3.bf16.msra.mxu1 %v4154_v40 }
0x16c7   :  { %3081 = vmatprep.subr.bf16.mxu1 %v3507_v37 }
0x16ca   :  { %3083 = vmatpush3.bf16.msra.mxu1 %v4160_v22 }
0x16cb   :  { %3084 = vmatprep.subr.bf16.mxu1 %v3507_v37 }
0x16ce   :  { %3086 = vmatpush3.bf16.msra.mxu1 %v4166_v35 }
0x16cf   :  { %3087 = vmatprep.subr.bf16.mxu1 %v3507_v37 }
0x16d2   :  { %3089 = vmatpush3.bf16.msra.mxu1 %v4196_v44 }
0x16d3   :  { %3090 = vmatprep.subr.bf16.mxu1 %v3507_v37 }
0x16d6   :  { %3092 = vmatpush3.bf16.msra.mxu1 %v4206_v42 }
0x16d7   :  { %3093 = vmatprep.subr.bf16.mxu1 %v3507_v37 }
0x16da   :  { %3095 = vmatpush3.bf16.msra.mxu1 %v4218_v4 }
0x16db   :  { %3096 = vmatprep.subr.bf16.mxu1 %v3507_v37 }
0x16de   :  { %3098 = vmatpush3.bf16.msra.mxu1 %v4228_v10 }
0x16df   :  { %3123 = vmatprep.subr.bf16.mxu1 %v3507_v37 }
0x172f   :  { %v1507_v26 = vpop.permute.xlu0 %1506 }
0x1730   :  { %v4141_v29 = vadd.f32 %v1507_v26, %v1499_v25  ;;  %v1394_v25 = vsel %vm616_vm11, %v4044_v8, 0.0 }
0x1732   :  { %3384 = vtanh.f32 %v4141_v29 }
0x173c   :  { %v3385_v30 = vpop.eup %3384 }
0x173d   :  { %1512 = vrot.lane.b32.xlu0 %v3385_v30, %s3503_s1 }
0x1741   :  { %951 = vrot.lane.b32.xlu0 %v949_v57, %s3503_s1 }
0x1794   :  { %v4180_v50 = vpop.f32.mrb[32].mxu1 }
0x1795   :  { %v1668_v52 = vpop.f32.mrb[33].mxu1 }
0x1796   :  { %v4186_v15 = vadd.f32 %v4178_v49, %v1668_v52  ;;  %v4188_v55 = vpop.f32.mrb[34].mxu1 }
0x1797   :  { %v4190_v27 = vpop.f32.mrb[35].mxu1 }
0x1798   :  { %v4193_v59 = vadd.f32 %v2505_v51, %v4186_v15  ;;  %v4280_v62 = vadd.f32 %v4178_v49, %v4190_v27 }
0x179a   :  { %1739 = vmax.xlane.f32.xlu1 %v4193_v59 }
0x17ab   :  { %785 = vrot.lane.b32.xlu1 %v783_v45, %s3503_s1  ;;  %v4276_v45 = vstv %s4521_s12 }
0x17af   :  { %452 = vrot.lane.b32.xlu1 %v450_v32, %s3503_s1  ;;  %v4216_v3 = vpop.permute.xlu0 %1512 }
0x17b3   :  { %619 = vrot.lane.b32.xlu1 %v617_v24, %s3503_s1  ;;  %v952_v5 = vpop.permute.xlu0 %951  ;;  %v4289_v24 = vmul.f32 %v4131_v1, %v4216_v3 }
0x17b4   :  { %955 = vst.msk [vmem:[#allocation3 + $0x20] sm:$0xff] %vm456_vm7, %v952_v5 }
0x17b5   :  { %v1544_v6 = vsel %vm449_vm5, %v4289_v24, 0.0 }
0x17b7   :  { %1096 = vrot.lane.b32.xlu1 %v1094_v16, %s3505_s7 }
0x17bb   :  { %1246 = vrot.lane.b32.xlu1 %v1244_v18, %s3505_s7 }
0x17bf   :  { %1396 = vrot.lane.b32.xlu1 %v1394_v25, %s3505_s7 }
0x1827   :  { %v1740_v26 = vpop.xlane.xlu1 %1739 }
0x1828   :  { %v1741_v34 = vsub.f32 %v4193_v59, %v1740_v26 }
0x182a   :  { %v1742_v30 = vmul.f32 1.442695, %v1741_v34 }
0x182b   :  { %v786_v31 = vpop.permute.xlu1 %785 }
0x182c   :  { %3386 = vpow2.f32 %v1742_v30  ;;  %789 = vst.msk [vmem:[#allocation3 + $0x28] sm:$0xff] %vm456_vm7, %v786_v31 }
0x182f   :  { %v453_v56 = vpop.permute.xlu1 %452 }
0x1830   :  { %457 = vst.msk [vmem:[#allocation3 + $0x38] sm:$0xff] %vm456_vm7, %v453_v56 }
0x1833   :  { %v620_v41 = vpop.permute.xlu1 %619 }
0x1834   :  { %623 = vst.msk [vmem:[#allocation3 + $0x30] sm:$0xff] %vm456_vm7, %v620_v41 }
0x1836   :  { %v3387_v36 = vpop.eup %3386 }
0x1837   :  { %2839 = vmatmul.mubr.f32.vlgmr.msra.gmra.mrb[8].mxu0 %v3387_v36  ;;  %v1097_v57 = vpop.permute.xlu1 %1096 }
0x1838   :  { %1099 = vst.msk [vmem:[#allocation3 + $0x20] sm:$0xff] %vm443_vm6, %v1097_v57  ;;  %3101 = vmatpush3.bf16.msra.mxu0 %v4149_v38  ;;  %2908 = vmatprep.mubr.msk.f32.mxu0 %vm3499_vm1, %v3498_v0 }
0x1839   :  { %3102 = vmatprep.subr.bf16.mxu0 %v3507_v37 }
0x183b   :  { %v1247_v8 = vpop.permute.xlu1 %1246 }
0x183c   :  { %1249 = vst.msk [vmem:[#allocation3 + $0x28] sm:$0xff] %vm443_vm6, %v1247_v8  ;;  %3104 = vmatpush3.bf16.msra.mxu0 %v4154_v40  ;;  %v4327_v8 = vadd.f32 %v4180_v50, %v4178_v49 }
0x183d   :  { %3105 = vmatprep.subr.bf16.mxu0 %v3507_v37 }
0x183f   :  { %v1397_v39 = vpop.permute.xlu1 %1396  ;;  %v1591_v43 = vld [vmem:[#allocation3 + $0x20] sm:$0xff] }
0x1840   :  { %1399 = vst.msk [vmem:[#allocation3 + $0x30] sm:$0xff] %vm443_vm6, %v1397_v39  ;;  %3107 = vmatpush3.bf16.msra.mxu0 %v4160_v22 }
0x1841   :  { %3108 = vmatprep.subr.bf16.mxu0 %v3507_v37 }
0x1843   :  { %v1592_v28 = vld [vmem:[#allocation3 + $0x28] sm:$0xff] }
0x1844   :  { %v1597_v48 = vpack.c.bf16 %v1592_v28, %v1591_v43  ;;  %3110 = vmatpush3.bf16.msra.mxu0 %v4166_v35 }
0x1845   :  { %3111 = vmatprep.subr.bf16.mxu0 %v3507_v37 }
0x1846   :  { %2802 = vmatprep.mubr.msk.bf16.mxu1 %vm308_vm0, %v1597_v48 }
0x1847   :  { %v1593_v11 = vld [vmem:[#allocation3 + $0x30] sm:$0xff] }
0x1848   :  { %3113 = vmatpush3.bf16.msra.mxu0 %v4196_v44 }
0x1849   :  { %3114 = vmatprep.subr.bf16.mxu0 %v3507_v37 }
0x184c   :  { %3116 = vmatpush3.bf16.msra.mxu0 %v4206_v42 }
0x184d   :  { %3117 = vmatprep.subr.bf16.mxu0 %v3507_v37 }
0x1850   :  { %3119 = vmatpush3.bf16.msra.mxu0 %v4218_v4 }
0x1851   :  { %3120 = vmatprep.subr.bf16.mxu0 %v3507_v37 }
0x1854   :  { %3122 = vmatpush3.bf16.msra.mxu0 %v4228_v10 }
0x1855   :  { %3147 = vmatprep.subr.bf16.mxu0 %v3507_v37 }
0x190a   :  { %v1810_v7 = vpop.f32.mrb[8].mxu0 }
0x190b   :  { %v1814_v51 = vmax.f32 %v1810_v7, 1e-37  ;;  %v2840_v52 = vpop.f32.mrb[9].mxu0 }
0x190d   :  { %3388 = vlog2.f32 %v1814_v51 }
0x1917   :  { %v3389_v60 = vpop.eup %3388 }
0x1918   :  { %v1816_v54 = vmul.f32 0.6931472, %v3389_v60 }
0x191a   :  { %v1817_v61 = vadd.f32 %v1816_v54, %v1740_v26 }
0x191c   :  { %v1819_v32 = vadd.f32 %v4276_v45, %v1817_v61 }
0x191e   :  { %v1820_v23 = vadd.f32 %v1819_v32, %v4280_v62 }
0x1920   :  { %v1821_v33 = vsel %vm604_vm10, %v1820_v23, %v4193_v59  ;;  %v4353_v23 = vadd.f32 %v4188_v55, %v4178_v49 }
0x1921   :  { %1835 = vmax.xlane.f32.xlu0 %v1821_v33 }
0x1937   :  { %1546 = vrot.lane.b32.xlu0 %v1544_v6, %s3505_s7 }
0x19ae   :  { %v1836_v27 = vpop.xlane.xlu0 %1835 }
0x19af   :  { %v1837_v2 = vsub.f32 %v1821_v33, %v1836_v27 }
0x19b1   :  { %v1838_v16 = vmul.f32 1.442695, %v1837_v2 }
0x19b2   :  { %v1547_v5 = vpop.permute.xlu0 %1546 }
0x19b3   :  { %1549 = vst.msk [vmem:[#allocation3 + $0x38] sm:$0xff] %vm443_vm6, %v1547_v5  ;;  %3390 = vpow2.f32 %v1838_v16 }
0x19ba   :  { %v1594_v59 = vld [vmem:[#allocation3 + $0x38] sm:$0xff] }
0x19bb   :  { %v1598_v18 = vpack.c.bf16 %v1594_v59, %v1593_v11 }
0x19bd   :  { %2803 = vmatmul.mubr.msk.bf16.gmra.mrb[36].mxu1 %vm308_vm0, %v1598_v18  ;;  %v3391_v1 = vpop.eup %3390 }
0x19be   :  { %2873 = vmatprep.mubr.msk.f32.mxu1 %vm3499_vm1, %v3498_v0 }
0x19c5   :  { %2874 = vmatmul.mubr.f32.vlgmr.msra.gmra.mrb[40].mxu1 %v3391_v1 }
0x19c6   :  { %3125 = vmatpush3.bf16.msra.mxu1 %v4149_v38  ;;  %2943 = vmatprep.mubr.msk.f32.mxu1 %vm3499_vm1, %v3498_v0 }
0x19c7   :  { %3126 = vmatprep.subr.bf16.mxu1 %v3507_v37 }
0x19ca   :  { %3128 = vmatpush3.bf16.msra.mxu1 %v4154_v40 }
0x19cb   :  { %3129 = vmatprep.subr.bf16.mxu1 %v3507_v37 }
0x19ce   :  { %3131 = vmatpush3.bf16.msra.mxu1 %v4160_v22 }
0x19cf   :  { %3132 = vmatprep.subr.bf16.mxu1 %v3507_v37 }
0x19d2   :  { %3134 = vmatpush3.bf16.msra.mxu1 %v4166_v35 }
0x19d3   :  { %3135 = vmatprep.subr.bf16.mxu1 %v3507_v37 }
0x19d6   :  { %3137 = vmatpush3.bf16.msra.mxu1 %v4196_v44 }
0x19d7   :  { %3138 = vmatprep.subr.bf16.mxu1 %v3507_v37 }
0x19da   :  { %3140 = vmatpush3.bf16.msra.mxu1 %v4206_v42 }
0x19db   :  { %3141 = vmatprep.subr.bf16.mxu1 %v3507_v37 }
0x19de   :  { %3143 = vmatpush3.bf16.msra.mxu1 %v4218_v4 }
0x19df   :  { %3144 = vmatprep.subr.bf16.mxu1 %v3507_v37 }
0x19e2   :  { %3146 = vmatpush3.bf16.msra.mxu1 %v4228_v10 }
0x19e3   :  { %3171 = vmatprep.subr.bf16.mxu1 %v3507_v37 }
0x1a90   :  { %v4317_v3 = vpop.f32.mrb[36].mxu1 }
0x1a91   :  { %v4319_v25 = vpop.f32.mrb[37].mxu1 }
0x1a92   :  { %v4321_v26 = vpop.f32.mrb[38].mxu1 }
0x1a93   :  { %v4323_v34 = vpop.f32.mrb[39].mxu1 }
0x1a98   :  { %v1906_v30 = vpop.f32.mrb[40].mxu1 }
0x1a99   :  { %v1910_v31 = vmax.f32 %v1906_v30, 1e-37  ;;  %v2875_v56 = vpop.f32.mrb[41].mxu1 }
0x1a9b   :  { %3392 = vlog2.f32 %v1910_v31  ;;  %v4378_v31 = vadd.f32 %v4178_v49, %v4319_v25 }
0x1aa5   :  { %v3393_v41 = vpop.eup %3392 }
0x1aa6   :  { %v1912_v36 = vmul.f32 0.6931472, %v3393_v41 }
0x1aa8   :  { %v1913_v57 = vadd.f32 %v1912_v36, %v1836_v27 }
0x1aaa   :  { %v1914_v39 = vadd.f32 %v1913_v57, %v4276_v45 }
0x1aac   :  { %v1915_v43 = vadd.f32 %v1914_v39, %v4327_v8 }
0x1aae   :  { %v1916_v28 = vsel %vm770_vm14, %v1915_v43, %v1821_v33 }
0x1aaf   :  { %1930 = vmax.xlane.f32.xlu1 %v1916_v28 }
0x1b3c   :  { %v1931_v48 = vpop.xlane.xlu1 %1930 }
0x1b3d   :  { %v1932_v7 = vsub.f32 %v1916_v28, %v1931_v48 }
0x1b3f   :  { %v1933_v51 = vmul.f32 1.442695, %v1932_v7 }
0x1b41   :  { %3394 = vpow2.f32 %v1933_v51 }
0x1b4b   :  { %v3395_v52 = vpop.eup %3394 }
0x1b4c   :  { %2909 = vmatmul.mubr.f32.vlgmr.msra.gmra.mrb[10].mxu0 %v3395_v52 }
0x1b4d   :  { %3149 = vmatpush3.bf16.msra.mxu0 %v4149_v38  ;;  %2978 = vmatprep.mubr.msk.f32.mxu0 %vm3499_vm1, %v3498_v0 }
0x1b4e   :  { %3150 = vmatprep.subr.bf16.mxu0 %v3507_v37 }
0x1b51   :  { %3152 = vmatpush3.bf16.msra.mxu0 %v4154_v40 }
0x1b52   :  { %3153 = vmatprep.subr.bf16.mxu0 %v3507_v37 }
0x1b55   :  { %3155 = vmatpush3.bf16.msra.mxu0 %v4160_v22 }
0x1b56   :  { %3156 = vmatprep.subr.bf16.mxu0 %v3507_v37 }
0x1b59   :  { %3158 = vmatpush3.bf16.msra.mxu0 %v4166_v35 }
0x1b5a   :  { %3159 = vmatprep.subr.bf16.mxu0 %v3507_v37 }
0x1b5d   :  { %3161 = vmatpush3.bf16.msra.mxu0 %v4196_v44 }
0x1b5e   :  { %3162 = vmatprep.subr.bf16.mxu0 %v3507_v37 }
0x1b61   :  { %3164 = vmatpush3.bf16.msra.mxu0 %v4206_v42 }
0x1b62   :  { %3165 = vmatprep.subr.bf16.mxu0 %v3507_v37 }
0x1b65   :  { %3167 = vmatpush3.bf16.msra.mxu0 %v4218_v4 }
0x1b66   :  { %3168 = vmatprep.subr.bf16.mxu0 %v3507_v37 }
0x1b69   :  { %3170 = vmatpush3.bf16.msra.mxu0 %v4228_v10 }
0x1b6a   :  { %3195 = vmatprep.subr.bf16.mxu0 %v3507_v37 }
0x1c1f   :  { %v2001_v13 = vpop.f32.mrb[10].mxu0 }
0x1c20   :  { %v2005_v50 = vmax.f32 %v2001_v13, 1e-37  ;;  %v2910_v60 = vpop.f32.mrb[11].mxu0 }
0x1c22   :  { %3396 = vlog2.f32 %v2005_v50 }
0x1c2c   :  { %v3397_v54 = vpop.eup %3396 }
0x1c2d   :  { %v2007_v61 = vmul.f32 0.6931472, %v3397_v54 }
0x1c2f   :  { %v2008_v32 = vadd.f32 %v2007_v61, %v1931_v48 }
0x1c31   :  { %v2009_v33 = vadd.f32 %v2008_v32, %v4276_v45  ;;  %v4417_v32 = vadd.f32 %v4317_v3, %v4178_v49  ;;  %v2510_v3 = vld [vmem:[%s4512_s3 + $0x28] sm:$0xff] }
0x1c33   :  { %v2010_v6 = vadd.f32 %v2009_v33, %v4353_v23 }
0x1c35   :  { %v2011_v27 = vsel %vm936_vm13, %v2010_v6, %v1916_v28 }
0x1c36   :  { %2025 = vmax.xlane.f32.xlu0 %v2011_v27 }
0x1cc3   :  { %v2026_v2 = vpop.xlane.xlu0 %2025 }
0x1cc4   :  { %v2027_v5 = vsub.f32 %v2011_v27, %v2026_v2 }
0x1cc6   :  { %v2028_v16 = vmul.f32 1.442695, %v2027_v5  ;;  %v2508_v5 = vld [vmem:[%s4512_s3 + $0x18] sm:$0xff] }
0x1cc8   :  { %3398 = vpow2.f32 %v2028_v16 }
0x1cd2   :  { %v3399_v11 = vpop.eup %3398 }
0x1cd3   :  { %2944 = vmatmul.mubr.f32.vlgmr.msra.gmra.mrb[42].mxu1 %v3399_v11 }
0x1cd4   :  { %3173 = vmatpush3.bf16.msra.mxu1 %v4149_v38  ;;  %3013 = vmatprep.mubr.msk.f32.mxu1 %vm3499_vm1, %v3498_v0 }
0x1cd5   :  { %3174 = vmatprep.subr.bf16.mxu1 %v3507_v37 }
0x1cd8   :  { %3176 = vmatpush3.bf16.msra.mxu1 %v4154_v40 }
0x1cd9   :  { %3177 = vmatprep.subr.bf16.mxu1 %v3507_v37 }
0x1cdc   :  { %3179 = vmatpush3.bf16.msra.mxu1 %v4160_v22 }
0x1cdd   :  { %3180 = vmatprep.subr.bf16.mxu1 %v3507_v37 }
0x1ce0   :  { %3182 = vmatpush3.bf16.msra.mxu1 %v4166_v35 }
0x1ce1   :  { %3183 = vmatprep.subr.bf16.mxu1 %v3507_v37 }
0x1ce4   :  { %3185 = vmatpush3.bf16.msra.mxu1 %v4196_v44 }
0x1ce5   :  { %3186 = vmatprep.subr.bf16.mxu1 %v3507_v37 }
0x1ce8   :  { %3188 = vmatpush3.bf16.msra.mxu1 %v4206_v42 }
0x1ce9   :  { %3189 = vmatprep.subr.bf16.mxu1 %v3507_v37 }
0x1cec   :  { %3191 = vmatpush3.bf16.msra.mxu1 %v4218_v4 }
0x1ced   :  { %3192 = vmatprep.subr.bf16.mxu1 %v3507_v37 }
0x1cf0   :  { %3194 = vmatpush3.bf16.msra.mxu1 %v4228_v10 }
0x1da6   :  { %v2096_v46 = vpop.f32.mrb[42].mxu1 }
0x1da7   :  { %v2100_v55 = vmax.f32 %v2096_v46, 1e-37  ;;  %v2945_v59 = vpop.f32.mrb[43].mxu1  ;;  %v1707_v46 = vlaneseq }
0x1da9   :  { %3400 = vlog2.f32 %v2100_v55  ;;  %v1708_v59 = vand.u32 127, %v1707_v46  ;;  %v76_v46 = vld [vmem:[%s4511_s2] sm:$0xff] }
0x1db3   :  { %v3401_v18 = vpop.eup %3400 }
0x1db4   :  { %v2102_v1 = vmul.f32 0.6931472, %v3401_v18 }
0x1db6   :  { %v2103_v30 = vadd.f32 %v2102_v1, %v2026_v2  ;;  %v1710_v2 = vld [vmem:[%s4512_s3] sm:$0xff] }
0x1db8   :  { %v2104_v56 = vadd.f32 %v2103_v30, %v4276_v45 }
0x1dba   :  { %v2105_v41 = vadd.f32 %v2104_v56, %v4378_v31 }
0x1dbc   :  { %v2106_v36 = vsel %vm948_vm9, %v2105_v41, %v2011_v27 }
0x1dbd   :  { %2120 = vmax.xlane.f32.xlu0 %v2106_v36 }
0x1e4a   :  { %v2121_v57 = vpop.xlane.xlu0 %2120 }
0x1e4b   :  { %v2122_v39 = vsub.f32 %v2106_v36, %v2121_v57 }
0x1e4d   :  { %v2123_v43 = vmul.f32 1.442695, %v2122_v39 }
0x1e4f   :  { %3402 = vpow2.f32 %v2123_v43 }
0x1e59   :  { %v3403_v28 = vpop.eup %3402 }
0x1e5a   :  { %2979 = vmatmul.mubr.f32.vlgmr.msra.gmra.mrb[12].mxu0 %v3403_v28 }
0x1e5b   :  { %3197 = vmatpush3.bf16.msra.mxu0 %v4149_v38  ;;  %3048 = vmatprep.mubr.msk.f32.mxu0 %vm3499_vm1, %v3498_v0 }
0x1e5c   :  { %3198 = vmatprep.subr.bf16.mxu0 %v3507_v37 }
0x1e5f   :  { %3200 = vmatpush3.bf16.msra.mxu0 %v4154_v40 }
0x1e60   :  { %3201 = vmatprep.subr.bf16.mxu0 %v3507_v37 }
0x1e63   :  { %3203 = vmatpush3.bf16.msra.mxu0 %v4160_v22 }
0x1e64   :  { %3204 = vmatprep.subr.bf16.mxu0 %v3507_v37 }
0x1e67   :  { %3206 = vmatpush3.bf16.msra.mxu0 %v4166_v35 }
0x1e68   :  { %3207 = vmatprep.subr.bf16.mxu0 %v3507_v37 }
0x1e6b   :  { %3209 = vmatpush3.bf16.msra.mxu0 %v4196_v44  ;;  %v1688_v44 = vadd.f32 %v4178_v49, %v4323_v34  ;;  %v2509_v34 = vld [vmem:[%s4512_s3 + $0x20] sm:$0xff] }
0x1e6c   :  { %3210 = vmatprep.subr.bf16.mxu0 %v3507_v37 }
0x1e6f   :  { %3212 = vmatpush3.bf16.msra.mxu0 %v4206_v42 }
0x1e70   :  { %3213 = vmatprep.subr.bf16.mxu0 %v3507_v37 }
0x1e73   :  { %3215 = vmatpush3.bf16.msra.mxu0 %v4218_v4 }
0x1e74   :  { %3216 = vmatprep.subr.bf16.mxu0 %v3507_v37  ;;  %v2506_v37 = vld [vmem:[%s4512_s3 + $0x8] sm:$0xff] }
0x1e77   :  { %3218 = vmatpush3.bf16.msra.mxu0 %v4228_v10  ;;  %v2507_v10 = vld [vmem:[%s4512_s3 + $0x10] sm:$0xff] }
0x1f2d   :  { %v2191_v0 = vpop.f32.mrb[12].mxu0 }
0x1f2e   :  { %v2195_v9 = vmax.f32 %v2191_v0, 1e-37  ;;  %v2980_v38 = vpop.f32.mrb[13].mxu0 }
0x1f30   :  { %3404 = vlog2.f32 %v2195_v9 }
0x1f3a   :  { %v3405_v40 = vpop.eup %3404 }
0x1f3b   :  { %v2197_v22 = vmul.f32 0.6931472, %v3405_v40 }
0x1f3d   :  { %v2198_v35 = vadd.f32 %v2197_v22, %v2121_v57 }
0x1f3f   :  { %v2199_v42 = vadd.f32 %v2198_v35, %v4276_v45 }
0x1f41   :  { %v2200_v25 = vadd.f32 %v2199_v42, %v1688_v44 }
0x1f43   :  { %v2201_v4 = vsel %vm782_vm15, %v2200_v25, %v2106_v36 }
0x1f44   :  { %2215 = vmax.xlane.f32.xlu1 %v2201_v4 }
0x1f55   :  { %1731 = vperm.xlu1 %3241, %v2506_v37  }
0x1f59   :  { %1827 = vperm.xlu1 %3241, %v2507_v10  }
0x1f5d   :  { %2017 = vperm.xlu1 %3241, %v2509_v34  }
0x1fd1   :  { %v2216_v48 = vpop.xlane.xlu1 %2215 }
0x1fd2   :  { %v2217_v7 = vsub.f32 %v2201_v4, %v2216_v48 }
0x1fd4   :  { %v2218_v14 = vmul.f32 1.442695, %v2217_v7 }
0x1fd5   :  { %v1732_v18 = vpop.permute.xlu1 %1731 }
0x1fd6   :  { %3406 = vpow2.f32 %v2218_v14  ;;  %vm1733_vm1 = vcmp.eq.s32.totalorder %v1732_v18, %v1708_v59 }
0x1fd7   :  { %v1734_v41 = vsel %vm1733_vm1, %v4280_v62, 0.0 }
0x1fe0   :  { %v3407_v51 = vpop.eup %3406 }
0x1fe1   :  { %3014 = vmatmul.mubr.f32.vlgmr.msra.gmra.mrb[44].mxu1 %v3407_v51 }
0x20b4   :  { %v2286_v52 = vpop.f32.mrb[44].mxu1 }
0x20b5   :  { %v2290_v13 = vmax.f32 %v2286_v52, 1e-37  ;;  %v3015_v50 = vpop.f32.mrb[45].mxu1 }
0x20b7   :  { %3408 = vlog2.f32 %v2290_v13 }
0x20c1   :  { %v3409_v60 = vpop.eup %3408 }
0x20c2   :  { %v2292_v54 = vmul.f32 0.6931472, %v3409_v60 }
0x20c4   :  { %v2293_v61 = vadd.f32 %v2292_v54, %v2216_v48 }
0x20c6   :  { %v2294_v33 = vadd.f32 %v2293_v61, %v4276_v45 }
0x20c8   :  { %v2295_v6 = vadd.f32 %v2294_v33, %v4417_v32 }
0x20ca   :  { %v2296_v27 = vsel %vm616_vm11, %v2295_v6, %v2201_v4  ;;  %v1828_v4 = vpop.permute.xlu1 %1827 }
0x20cb   :  { %2310 = vmax.xlane.f32.xlu0 %v2296_v27  ;;  %vm1829_vm13 = vcmp.eq.s32.totalorder %v1828_v4, %v1708_v59 }
0x20cc   :  { %v1830_v7 = vsel %vm1829_vm13, %v4327_v8, 0.0 }
0x20ce   :  { %v2018_v37 = vpop.permute.xlu1 %2017 }
0x20cf   :  { %vm2019_vm14 = vcmp.eq.s32.totalorder %v2018_v37, %v1708_v59 }
0x20d0   :  { %v2020_v51 = vsel %vm2019_vm14, %v4378_v31, 0.0 }
0x20e1   :  { %1712 = vperm.xlu0 %3240, %v1710_v2  }
0x20e5   :  { %1922 = vperm.xlu0 %3240, %v2508_v5  }
0x20e9   :  { %2112 = vperm.xlu0 %3240, %v2510_v3  }
0x20ed   :  { %2302 = vperm.xlu0 %3240, %v2512_v12  }
0x2158   :  { %v2311_v16 = vpop.xlane.xlu0 %2310 }
0x2159   :  { %v2312_v11 = vsub.f32 %v2296_v27, %v2311_v16 }
0x215b   :  { %v2313_v55 = vmul.f32 1.442695, %v2312_v11 }
0x215d   :  { %3410 = vpow2.f32 %v2313_v55 }
0x2160   :  { %v1713_v1 = vpop.permute.xlu0 %1712 }
0x2161   :  { %vm1714_vm0 = vcmp.eq.s32.totalorder %v1713_v1, %v1708_v59 }
0x2162   :  { %v1715_v30 = vsel %vm1714_vm0, %v4186_v15, 0.0  ;;  %v1696_v15 = vadd.f32 %v4321_v26, %v4178_v49  ;;  %v2511_v26 = vld [vmem:[%s4512_s3 + $0x30] sm:$0xff] }
0x2163   :  { %1716 = vadd.xlane.f32.xlu0 %v1715_v30 }
0x2164   :  { %v1923_v56 = vpop.permute.xlu0 %1922 }
0x2165   :  { %vm1924_vm9 = vcmp.eq.s32.totalorder %v1923_v56, %v1708_v59 }
0x2166   :  { %v1925_v39 = vsel %vm1924_vm9, %v4353_v23, 0.0 }
0x2167   :  { %v3411_v36 = vpop.eup %3410  ;;  %1735 = vadd.xlane.f32.xlu0 %v1734_v41 }
0x2168   :  { %3049 = vmatmul.mubr.f32.vlgmr.msra.gmra.mrb[14].mxu0 %v3411_v36  ;;  %v2113_v57 = vpop.permute.xlu0 %2112 }
0x2169   :  { %vm2114_vm10 = vcmp.eq.s32.totalorder %v2113_v57, %v1708_v59 }
0x216a   :  { %v2115_v28 = vsel %vm2114_vm10, %v1688_v44, 0.0  ;;  %v2513_v44 = vld [vmem:[%s4520_s11] ss:$0 sm:$0xff] }
0x216b   :  { %1926 = vadd.xlane.f32.xlu0 %v1925_v39 }
0x216c   :  { %v2303_v43 = vpop.permute.xlu0 %2302 }
0x216d   :  { %vm2304_vm11 = vcmp.eq.s32.totalorder %v2303_v43, %v1708_v59 }
0x216e   :  { %v2305_v0 = vsel %vm2304_vm11, %v1696_v15, 0.0 }
0x216f   :  { %2116 = vadd.xlane.f32.xlu0 %v2115_v28 }
0x2173   :  { %2306 = vadd.xlane.f32.xlu0 %v2305_v0 }
0x21f0   :  { %v1717_v33 = vpop.xlane.xlu0 %1716 }
0x21f1   :  { %v1718_v17 = vsel %vm431_vm2, %v1717_v33, 0.0  ;;  %vm4528_vm2 = vcmp.gt.s32.totalorder %v3693_v58, 5 }
0x21f4   :  { %v1736_v6 = vpop.xlane.xlu0 %1735 }
0x21f8   :  { %v1927_v2 = vpop.xlane.xlu0 %1926 }
0x21f9   :  { %v1928_v19 = vsel %vm930_vm3, %v1927_v2, 0.0  ;;  %vm4529_vm3 = vcmp.gt.s32.totalorder %v3693_v58, 6 }
0x223b   :  { %v2381_v9 = vpop.f32.mrb[14].mxu0 }
0x223c   :  { %v2385_v62 = vmax.f32 %v2381_v9, 1e-37  ;;  %v3050_v38 = vpop.f32.mrb[15].mxu0 }
0x223e   :  { %3412 = vlog2.f32 %v2385_v62 }
0x2248   :  { %v3413_v40 = vpop.eup %3412 }
0x2249   :  { %v2387_v22 = vmul.f32 0.6931472, %v3413_v40 }
0x224b   :  { %v2388_v35 = vadd.f32 %v2387_v22, %v2311_v16  ;;  %v2117_v16 = vpop.xlane.xlu0 %2116 }
0x224c   :  { %v2118_v55 = vsel %vm4528_vm2, %v2117_v16, 0.0 }
0x224d   :  { %v2389_v23 = vadd.f32 %v2388_v35, %v4276_v45 }
0x224f   :  { %v2390_v42 = vadd.f32 %v2389_v23, %v1696_v15  ;;  %v2307_v56 = vpop.xlane.xlu0 %2306 }
0x2251   :  { %v2391_v25 = vsel %vm449_vm5, %v2390_v42, %v2296_v27 }
0x2252   :  { %v2398_v49 = vadd.f32 %v2513_v44, %v2391_v25 }
0x2254   :  { %2399 = vmax.xlane.f32.xlu1 %v2398_v49 }
0x2265   :  { %2207 = vperm.xlu1 %3241, %v2511_v26  }
0x22e1   :  { %v2400_v10 = vpop.xlane.xlu1 %2399 }
0x22e2   :  { %v2401_v34 = vsub.f32 %v2398_v49, %v2400_v10 }
0x22e4   :  { %v2402_v45 = vmul.f32 1.442695, %v2401_v34 }
0x22e5   :  { %v2208_v14 = vpop.permute.xlu1 %2207 }
0x22e6   :  { %3414 = vpow2.f32 %v2402_v45  ;;  %vm2209_vm15 = vcmp.eq.s32.totalorder %v2208_v14, %v1708_v59 }
0x22e7   :  { %v2210_v52 = vsel %vm2209_vm15, %v4417_v32, 0.0 }
0x22f0   :  { %v3415_v48 = vpop.eup %3414 }
0x22f1   :  { %2404 = vadd.xlane.f32.xlu1 %v3415_v48 }
0x22f5   :  { %1831 = vadd.xlane.f32.xlu1 %v1830_v7 }
0x22f9   :  { %2021 = vadd.xlane.f32.xlu1 %v2020_v51 }
0x22fd   :  { %2211 = vadd.xlane.f32.xlu1 %v2210_v52 }
0x230e   :  { %1557 = vrot.lane.b32.xlu1 %v4063_v63, %s3504_s15 }
0x2312   :  { %1566 = vrot.lane.b32.xlu1 %v4063_v63, %s3502_s0  ;;  %v1575_v63 = vsel %vm449_vm5, %v4141_v29, %v4137_v21 }
0x237e   :  { %v2405_v13 = vpop.xlane.xlu1 %2404 }
0x237f   :  { %3416 = vlog2.f32 %v2405_v13 }
0x2382   :  { %v1832_v50 = vpop.xlane.xlu1 %1831 }
0x2383   :  { %v1833_v21 = vsel %vm764_vm12, %v1832_v50, 0.0 }
0x2386   :  { %v2022_v60 = vpop.xlane.xlu1 %2021 }
0x2389   :  { %v3417_v27 = vpop.eup %3416 }
0x238a   :  { %v2212_v8 = vpop.xlane.xlu1 %2211 }
0x238b   :  { %v2213_v1 = vsel %vm4529_vm3, %v2212_v8, 0.0 }
0x238e   :  { %v1558_v54 = vpop.permute.xlu1 %1557 }
0x238f   :  { %v1560_v31 = vsel %vm449_vm5, %v4289_v24, %v1558_v54  ;;  %v1581_v24 = vsel %vm437_vm4, %v4096_v47, %v4093_v20  ;;  %v2407_v20 = vmul.f32 0.6931472, %v3417_v27  ;;  %vm2410_vm5 = vcmask 7168  }
0x2390   :  { %1562 = vrot.lane.b32.xlu0 %v1560_v31, %s3505_s7 }
0x2391   :  { %v2408_v12 = vadd.f32 %v2407_v20, %v2400_v10 }
0x2392   :  { %v1567_v61 = vpop.permute.xlu1 %1566 }
0x2393   :  { %v1569_v32 = vsel %vm437_vm4, %v4111_v53, %v1567_v61  ;;  %v1737_v53 = vsel %vm598_vm8, %v1736_v6, 0.0  ;;  %vm4527_vm4 = vcmp.gt.s32.totalorder %v3693_v58, 4  ;;  %v2409_v59 = vmul.f32 %v2408_v12, %v76_v46 }
0x2394   :  { %1577 = vrot.lane.b32.xlu0 %v1575_v63, %s3506_s26  ;;  %1571 = vrot.lane.b32.xlu1 %v1569_v32, %s3503_s1  ;;  %v1738_v29 = vadd.f32 %v1737_v53, %v1718_v17  ;;  %v2023_v3 = vsel %vm4527_vm4, %v2022_v60, 0.0  ;;  %vm4530_vm8 = vcmp.gt.s32.totalorder %v3693_v58, 7 }
0x2395   :  { %v2411_v30 = vsel %vm2410_vm5, %v2409_v59, 0.0  ;;  %v2308_v36 = vsel %vm4530_vm8, %v2307_v56, 0.0 }
0x2396   :  { %v1834_v5 = vadd.f32 %v1833_v21, %v1738_v29 }
0x2398   :  { %1583 = vrot.lane.b32.xlu1 %v1581_v24, %s3493_s18  ;;  %v1929_v47 = vadd.f32 %v1928_v19, %v1834_v5  ;;  %s3508_s18 = smov [#allocation13]  }
0x2399   :  { %s2441_s0 = sshll.u32 %s3508_s18, 4  ;;  %s2442_s0 = int_to_ptr.vmem [resolvable:$true] %s2441_s0 }
0x239a   :  { %v2024_v11 = vadd.f32 %v2023_v3, %v1929_v47  ;;  %s3464_s7 = scalar_lea.vmem %s2442_s0, 128  ;;  %p3469_p3 = scmp.lt.s32.totalorder %s2442_s0, %s2442_s0 }
0x239b   :  { %p3465_p2 = scmp.ne.s32.totalorder %s2442_s0, %s3464_s7  ;;  %p3470_p4 = scmp.lt.s32.totalorder %s3464_s7, %s3464_s7 }
0x239c   :  { %v2119_v18 = vadd.f32 %v2118_v55, %v2024_v11 }
0x239d   :  { %p3471_p5 = por %p3470_p4, %p3469_p3 }
0x239e   :  { %v2214_v41 = vadd.f32 %v2213_v1, %v2119_v18 }
0x239f   :  { %p3472_p6 = pnand %p3471_p5, %p3465_p2 }
0x23a0   :  { %v2309_v57 = vadd.f32 %v2308_v36, %v2214_v41 }
0x23a2   :  { %v2421_v39 = vsel %vm2410_vm5, %v2309_v57, 0.0 }
0x23b3   :  { %2412 = vadd.xlane.f32.xlu0 %v2411_v30 }
0x23bc   :  { %2422 = vadd.xlane.f32.xlu1 %v2421_v39 }
0x2402   :  { %v1563_v43 = vpop.permute.xlu0 %1562 }
0x2403   :  { %1565 = vst.msk [vmem:[#allocation5] sm:$0xff] %vm443_vm6, %v1563_v43 }
0x2406   :  { %v1578_v28 = vpop.permute.xlu0 %1577  ;;  %v1572_v15 = vpop.permute.xlu1 %1571 }
0x2407   :  { %1580 = vst.msk [vmem:[#allocation6] sm:$0xff] %vm443_vm6, %v1578_v28 }
0x2408   :  { %1574 = vst.msk [vmem:[#allocation5] sm:$0xff] %vm456_vm7, %v1572_v15 }
0x240a   :  { %v1584_v0 = vpop.permute.xlu1 %1583 }
0x240b   :  { %1586 = vst.msk [vmem:[#allocation6] sm:$0xff] %vm456_vm7, %v1584_v0 }
0x2440   :  { %v2413_v9 = vpop.xlane.xlu0 %2412 }
0x2441   :  { %v2414_v62 = vrot.slane %v2413_v9, 4 }
0x2443   :  { %v2415_v38 = vadd.f32 %v2414_v62, %v2413_v9 }
0x2445   :  { %v2416_v58 = vrot.slane %v2415_v38, 2 }
0x2447   :  { %v2417_v40 = vadd.f32 %v2416_v58, %v2415_v38 }
0x2449   :  { %v2423_v22 = vpop.xlane.xlu1 %2422  ;;  %v2418_v35 = vrot.slane %v2417_v40, 1 }
0x244a   :  { %v2424_v23 = vrot.slane %v2423_v22, 4 }
0x244b   :  { %v2419_v44 = vadd.f32 %v2418_v35, %v2417_v40 }
0x244c   :  { %v2425_v42 = vadd.f32 %v2424_v23, %v2423_v22 }
0x244d   :  { %3219 = vpush %v2419_v44 }
0x244e   :  { %v2426_v25 = vrot.slane %v2425_v42, 2 }
0x2450   :  { %v2427_v49 = vadd.f32 %v2426_v25, %v2425_v42 }
0x2452   :  { %v2428_v26 = vrot.slane %v2427_v49, 1 }
0x2454   :  { %v2429_v4 = vadd.f32 %v2428_v26, %v2427_v49 }
0x2456   :  { %3221 = vpush %v2429_v4 }
0x247e   :  { %s3220_s2 = spop %3219 }
0x2487   :  { %s3222_s1 = spop %3221 }
0x2488   :  { %s2431_s15 = ssub.f32 %s3220_s2, %s3222_s1 }
0x248a   :  { %v2432_v37 = vstv %s2431_s15 }
0x248b   :  { %2434 = vst [vmem:[#allocation13] sm:$0xff] %v2432_v37 }
0x248c   :  { %3475 = shalt.err (!%p3472_p6)
}
0x248d   :  { %s3476_s8 = scalar_lea.hbm %s4522_s13, 128 }
0x248e   :  { %p3477_p7 = scmp.ne.s32.totalorder %s4522_s13, %s3476_s8  ;;  %p3480_p8 = scmp.lt.u32.totalorder %s3476_s8, %s4522_s13 }
0x2490   :  { %p3482_p9 = pnand %p3480_p8, %p3477_p7 }
0x2492   :  { %3485 = shalt.err (!%p3482_p9)
}
0x2493   :  { %2444 = dma.vmem_to_hbm [thread:$0]  %s2442_s0, 128, %s4522_s13, [#allocation10]  }
0x2494   :  { %3490 = dma.done.wait [#allocation10], 128  }
0x2495   :  { %3491 = vsyncadd [#allocation10], 4294967168 }
0x2496   :  { %2448 = vsyncpa [#allocation9], 1 }
0x2497   :  { %2449 = vsyncpa [#allocation12], 1 }
0x2498   :  { %2450 = vsyncpa [#allocation10], 1 }

</bundles_post_ra>
